<compile_context>
chip_gen: v6e
topology: v6e:2x2x1
jax: 0.10.0
libtpu: 0.0.40
codegen_flags: <defaults>
</compile_context>

<pallas_src>
import math
import functools

import jax
import jax.numpy as jnp
from jax.experimental import pallas as pl
from jax.experimental.pallas import tpu as pltpu


MATMUL_DTYPE = jnp.bfloat16   # MXU operand dtype; accumulation is always f32


# ----------------------------- kernel helpers ------------------------------

def _mm(a, w):
    # Plain 2-D `a @ w` (weights pre-transposed on host), f32 accumulation on the MXU.
    return jnp.dot(a.astype(w.dtype), w, preferred_element_type=jnp.float32)


def _layer_norm(x, w, b, eps=1e-5):
    mu = jnp.mean(x, axis=-1, keepdims=True)
    var = jnp.mean((x - mu) ** 2, axis=-1, keepdims=True)
    return (x - mu) * jax.lax.rsqrt(var + eps) * w + b


def _mha(q_in, kv_in, tb, lq, lk,
         wq, bq, wk, bk, wv, bv, wo, bo, nhead):
    """torch.nn.MultiheadAttention (batch_first, no mask, eval) for a tile of tb samples.

    q_in:  [tb*lq, D] f32, kv_in: [tb*lk, D] f32
    wq/wk/wv/wo: [D, D] pre-transposed ([in, out]); bq/bk/bv/bo: [1, D] f32.
    Returns [tb*lq, D] f32.
    """
    d_model = q_in.shape[-1]
    dh = d_model // nhead
    scale = 1.0 / math.sqrt(dh)

    # Fused full-width projections: one MXU matmul each, all heads + all samples at once.
    q3 = (_mm(q_in, wq) + bq).reshape(tb, lq, d_model)
    k3 = (_mm(kv_in, wk) + bk).reshape(tb, lk, d_model)
    v3 = (_mm(kv_in, wv) + bv).reshape(tb, lk, d_model)

    heads = []
    for h in range(nhead):           # dh is tiny; scores/AV batched over the sample tile
        hs = slice(h * dh, (h + 1) * dh)
        qh = q3[:, :, hs].astype(MATMUL_DTYPE)
        kh = k3[:, :, hs].astype(MATMUL_DTYPE)
        vh = v3[:, :, hs].astype(MATMUL_DTYPE)
        s = jnp.einsum('tqd,tkd->tqk', qh, kh,
                       preferred_element_type=jnp.float32) * scale
        s = s - jnp.max(s, axis=-1, keepdims=True)
        p = jnp.exp(s)                                              # f32 epilogue (v5e-safe)
        p = p * pl.reciprocal(jnp.sum(p, axis=-1, keepdims=True), approx=True)
        heads.append(jnp.einsum('tqk,tkd->tqd', p.astype(MATMUL_DTYPE), vh,
                                preferred_element_type=jnp.float32))

    attn = jnp.concatenate(heads, axis=-1).reshape(tb * lq, d_model)
    return _mm(attn, wo) + bo        # single full-width out-projection


# -------------------------------- the kernel -------------------------------

def _decoder_kernel(mem_ref, qemb_ref,
                    sa_wq, sa_wk, sa_wv, sa_bq, sa_bk, sa_bv, sa_wo, sa_bo,
                    ca_wq, ca_wk, ca_wv, ca_bq, ca_bk, ca_bv, ca_wo, ca_bo,
                    f1w, f1b, f2w, f2b,
                    n1w, n1b, n2w, n2b, n3w, n3b,
                    lw, lb,
                    out_ref, *, num_layers, nhead):
    tb, s, d = mem_ref.shape          # samples in this tile, seq_len, d_model
    c = qemb_ref.shape[0]             # n_classes (decoder query count)

    # pos-encoded memory (PE added on the host), batch folded into rows
    mem2 = mem_ref[...].reshape(tb * s, d)                       # [tb*S, D] f32
    # tgt = query_embed.weight, identical start for every sample in the tile
    x2 = jnp.tile(qemb_ref[...], (tb, 1))                        # [tb*C, D] f32

    for l in range(num_layers):       # post-norm TransformerDecoderLayer, eval mode
        # self-attention block
        sa = _mha(x2, x2, tb, c, c,
                  sa_wq[l], sa_bq[l], sa_wk[l], sa_bk[l], sa_wv[l], sa_bv[l],
                  sa_wo[l], sa_bo[l], nhead)
        x2 = _layer_norm(x2 + sa, n1w[l], n1b[l])
        # cross-attention block (memory = pos-encoded sample embeddings)
        ca = _mha(x2, mem2, tb, c, s,
                  ca_wq[l], ca_bq[l], ca_wk[l], ca_bk[l], ca_wv[l], ca_bv[l],
                  ca_wo[l], ca_bo[l], nhead)
        x2 = _layer_norm(x2 + ca, n2w[l], n2b[l])
        # feed-forward block (ReLU)
        h = jnp.maximum(_mm(x2, f1w[l]) + f1b[l], 0.0)
        ff = _mm(h, f2w[l]) + f2b[l]
        x2 = _layer_norm(x2 + ff, n3w[l], n3b[l])

    # final linear d_model -> 1 as a lane reduce (no N=1 matmul, no trailing-1 store)
    logits = jnp.sum(x2.reshape(tb, c, d) * lw[...], axis=-1) + lb[...]   # [tb, C]
    out_ref[0] = logits.astype(out_ref.dtype)


# ------------------------------- host wrapper -------------------------------

_PARAM_ORDER = ['sa_wq', 'sa_wk', 'sa_wv', 'sa_bq', 'sa_bk', 'sa_bv', 'sa_wo', 'sa_bo',
                'ca_wq', 'ca_wk', 'ca_wv', 'ca_bq', 'ca_bk', 'ca_bv', 'ca_wo', 'ca_bo',
                'f1w', 'f1b', 'f2w', 'f2b',
                'n1w', 'n1b', 'n2w', 'n2b', 'n3w', 'n3b',
                'lw', 'lb']


def _full_spec(shape):
    zeros = (0,) * len(shape)
    return pl.BlockSpec(tuple(shape), lambda b: zeros)


def positional_encoding(seq_len, d_model):
    position = jnp.arange(seq_len, dtype=jnp.float32)[:, None]
    div_term = jnp.exp(jnp.arange(0, d_model, 2, dtype=jnp.float32)
                       * (-math.log(10000.0) / d_model))
    pe = jnp.zeros((seq_len, d_model), jnp.float32)
    pe = pe.at[:, 0::2].set(jnp.sin(position * div_term))
    pe = pe.at[:, 1::2].set(jnp.cos(position * div_term))
    return pe


def init_params(key, d_model, nhead, num_layers, n_classes, dim_feedforward):
    """Weights are stored pre-split (Q/K/V) and pre-transposed to [in, out] layout
    (relative to torch), so the kernel runs plain `x @ w` with no in-kernel relayouts."""
    D, L, C, F = d_model, num_layers, n_classes, dim_feedforward
    ks = iter(jax.random.split(key, 40))

    def u(shape, s, dtype=jnp.float32):
        return jax.random.uniform(next(ks), shape, jnp.float32, -s, s).astype(dtype)

    sd = 1.0 / math.sqrt(D)
    sf = 1.0 / math.sqrt(F)
    wd = MATMUL_DTYPE
    p = {'qemb': jax.random.normal(next(ks), (C, D), jnp.float32)}
    for pre in ('sa', 'ca'):
        p[f'{pre}_wq'] = u((L, D, D), sd, wd)
        p[f'{pre}_wk'] = u((L, D, D), sd, wd)
        p[f'{pre}_wv'] = u((L, D, D), sd, wd)
        p[f'{pre}_bq'] = u((L, 1, D), sd)
        p[f'{pre}_bk'] = u((L, 1, D), sd)
        p[f'{pre}_bv'] = u((L, 1, D), sd)
        p[f'{pre}_wo'] = u((L, D, D), sd, wd)
        p[f'{pre}_bo'] = u((L, 1, D), sd)
    p['f1w'] = u((L, D, F), sd, wd)
    p['f1b'] = u((L, 1, F), sd)
    p['f2w'] = u((L, F, D), sf, wd)
    p['f2b'] = u((L, 1, D), sf)
    for i in (1, 2, 3):
        p[f'n{i}w'] = jnp.ones((L, 1, D), jnp.float32)
        p[f'n{i}b'] = jnp.zeros((L, 1, D), jnp.float32)
    p['lw'] = u((1, D), 0.1)
    p['lb'] = jnp.zeros((1, 1), jnp.float32)
    return p


def transformer_decoder_pallas(embeddings, params, *, nhead, num_layers, n_classes):
    """embeddings: [B, S, D] (stacked per-sample [S, D] embeddings) -> [B, n_classes]."""
    B, S, D = embeddings.shape
    C = n_classes

    # Hoist the positional-encoding add out of the kernel (dropout == identity, eval mode).
    mem = embeddings + positional_encoding(S, D)[None]

    # Batch tiling: as many samples per grid step as possible, but keep >= 2 "parallel"
    # steps when B >= 2 so both v7x TensorCores are busy (harmless on 1-TC v5e/v6e).
    num_tiles = 2 if B >= 2 else 1
    tb = -(-B // num_tiles)
    b_pad = num_tiles * tb
    if b_pad != B:
        mem = jnp.pad(mem, ((0, b_pad - B), (0, 0), (0, 0)))

    plist = [params[k] for k in _PARAM_ORDER]
    inputs = [mem, params['qemb']] + plist

    in_specs = ([pl.BlockSpec((tb, S, D), lambda b: (b, 0, 0)),   # per-step sample tile
                 _full_spec((C, D))]                              # query embeddings
                + [_full_spec(p.shape) for p in plist])           # layer-stacked params
    out_specs = pl.BlockSpec((1, tb, C), lambda b: (b, 0, 0))

    kernel = functools.partial(_decoder_kernel, num_layers=num_layers, nhead=nhead)

    out = pl.pallas_call(
        kernel,
        out_shape=jax.ShapeDtypeStruct((num_tiles, tb, C), jnp.float32),
        grid_spec=pltpu.PrefetchScalarGridSpec(
            num_scalar_prefetch=0,
            grid=(num_tiles,),
            in_specs=in_specs,
            out_specs=out_specs),
        compiler_params=pltpu.CompilerParams(dimension_semantics=("parallel",)),
    )(*inputs)
    return out.reshape(b_pad, C)[:B]   # [B, n_classes]


# ----------------------------------- main -----------------------------------

if __name__ == "__main__":
    d_model = 32
    nhead = 4
    num_layers = 2
    n_classes = 8
    dim_feedforward = 64
    batch = 4          # 2 parallel grid steps x 2-sample tiles (exercises batch folding)
    seq_len = 16

    key = jax.random.PRNGKey(0)
    k_emb, k_par = jax.random.split(key)

    # list of per-sample embeddings [S, D] -> stacked [B, S, D]
    embeddings = jax.random.normal(k_emb, (batch, seq_len, d_model), jnp.float32)
    params = init_params(k_par, d_model, nhead, num_layers, n_classes, dim_feedforward)

    out = transformer_decoder_pallas(
        embeddings, params, nhead=nhead, num_layers=num_layers, n_classes=n_classes)
    out = jax.block_until_ready(out)

    assert out.shape == (batch, n_classes), out.shape
    assert bool(jnp.all(jnp.isfinite(out)))
    print("KERNEL_OK")
</pallas_src>

<mosaic_0001>
module attributes {stable_mosaic.version = 11 : i64} {
  func.func @_decoder_kernel(%arg0: i32, %arg1: memref<2x16x32xf32, #tpu.memory_space<vmem>>, %arg2: memref<8x32xf32, #tpu.memory_space<vmem>>, %arg3: memref<2x32x32xbf16, #tpu.memory_space<vmem>>, %arg4: memref<2x32x32xbf16, #tpu.memory_space<vmem>>, %arg5: memref<2x32x32xbf16, #tpu.memory_space<vmem>>, %arg6: memref<2x1x32xf32, #tpu.memory_space<vmem>>, %arg7: memref<2x1x32xf32, #tpu.memory_space<vmem>>, %arg8: memref<2x1x32xf32, #tpu.memory_space<vmem>>, %arg9: memref<2x32x32xbf16, #tpu.memory_space<vmem>>, %arg10: memref<2x1x32xf32, #tpu.memory_space<vmem>>, %arg11: memref<2x32x32xbf16, #tpu.memory_space<vmem>>, %arg12: memref<2x32x32xbf16, #tpu.memory_space<vmem>>, %arg13: memref<2x32x32xbf16, #tpu.memory_space<vmem>>, %arg14: memref<2x1x32xf32, #tpu.memory_space<vmem>>, %arg15: memref<2x1x32xf32, #tpu.memory_space<vmem>>, %arg16: memref<2x1x32xf32, #tpu.memory_space<vmem>>, %arg17: memref<2x32x32xbf16, #tpu.memory_space<vmem>>, %arg18: memref<2x1x32xf32, #tpu.memory_space<vmem>>, %arg19: memref<2x32x64xbf16, #tpu.memory_space<vmem>>, %arg20: memref<2x1x64xf32, #tpu.memory_space<vmem>>, %arg21: memref<2x64x32xbf16, #tpu.memory_space<vmem>>, %arg22: memref<2x1x32xf32, #tpu.memory_space<vmem>>, %arg23: memref<2x1x32xf32, #tpu.memory_space<vmem>>, %arg24: memref<2x1x32xf32, #tpu.memory_space<vmem>>, %arg25: memref<2x1x32xf32, #tpu.memory_space<vmem>>, %arg26: memref<2x1x32xf32, #tpu.memory_space<vmem>>, %arg27: memref<2x1x32xf32, #tpu.memory_space<vmem>>, %arg28: memref<2x1x32xf32, #tpu.memory_space<vmem>>, %arg29: memref<1x32xf32, #tpu.memory_space<vmem>>, %arg30: memref<1x1xf32, #tpu.memory_space<vmem>>, %arg31: memref<1x2x8xf32, #tpu.memory_space<vmem>>) attributes {dimension_semantics = [#tpu.dimension_semantics<parallel>], iteration_bounds = array<i64: 2>, scalar_prefetch = 0 : i64, scratch_operands = 0 : i64, tpu.core_type = #tpu.core_type<tc>, window_params = [{transform_indices = @transform_0, window_bounds = array<i64: 2, 16, 32>}, {pipeline_mode = #tpu.pipeline_mode<synchronous>, transform_indices = @transform_1, window_bounds = array<i64: 8, 32>}, {pipeline_mode = #tpu.pipeline_mode<synchronous>, transform_indices = @transform_2, window_bounds = array<i64: 2, 32, 32>}, {pipeline_mode = #tpu.pipeline_mode<synchronous>, transform_indices = @transform_3, window_bounds = array<i64: 2, 32, 32>}, {pipeline_mode = #tpu.pipeline_mode<synchronous>, transform_indices = @transform_4, window_bounds = array<i64: 2, 32, 32>}, {pipeline_mode = #tpu.pipeline_mode<synchronous>, transform_indices = @transform_5, window_bounds = array<i64: 2, 1, 32>}, {pipeline_mode = #tpu.pipeline_mode<synchronous>, transform_indices = @transform_6, window_bounds = array<i64: 2, 1, 32>}, {pipeline_mode = #tpu.pipeline_mode<synchronous>, transform_indices = @transform_7, window_bounds = array<i64: 2, 1, 32>}, {pipeline_mode = #tpu.pipeline_mode<synchronous>, transform_indices = @transform_8, window_bounds = array<i64: 2, 32, 32>}, {pipeline_mode = #tpu.pipeline_mode<synchronous>, transform_indices = @transform_9, window_bounds = array<i64: 2, 1, 32>}, {pipeline_mode = #tpu.pipeline_mode<synchronous>, transform_indices = @transform_10, window_bounds = array<i64: 2, 32, 32>}, {pipeline_mode = #tpu.pipeline_mode<synchronous>, transform_indices = @transform_11, window_bounds = array<i64: 2, 32, 32>}, {pipeline_mode = #tpu.pipeline_mode<synchronous>, transform_indices = @transform_12, window_bounds = array<i64: 2, 32, 32>}, {pipeline_mode = #tpu.pipeline_mode<synchronous>, transform_indices = @transform_13, window_bounds = array<i64: 2, 1, 32>}, {pipeline_mode = #tpu.pipeline_mode<synchronous>, transform_indices = @transform_14, window_bounds = array<i64: 2, 1, 32>}, {pipeline_mode = #tpu.pipeline_mode<synchronous>, transform_indices = @transform_15, window_bounds = array<i64: 2, 1, 32>}, {pipeline_mode = #tpu.pipeline_mode<synchronous>, transform_indices = @transform_16, window_bounds = array<i64: 2, 32, 32>}, {pipeline_mode = #tpu.pipeline_mode<synchronous>, transform_indices = @transform_17, window_bounds = array<i64: 2, 1, 32>}, {pipeline_mode = #tpu.pipeline_mode<synchronous>, transform_indices = @transform_18, window_bounds = array<i64: 2, 32, 64>}, {pipeline_mode = #tpu.pipeline_mode<synchronous>, transform_indices = @transform_19, window_bounds = array<i64: 2, 1, 64>}, {pipeline_mode = #tpu.pipeline_mode<synchronous>, transform_indices = @transform_20, window_bounds = array<i64: 2, 64, 32>}, {pipeline_mode = #tpu.pipeline_mode<synchronous>, transform_indices = @transform_21, window_bounds = array<i64: 2, 1, 32>}, {pipeline_mode = #tpu.pipeline_mode<synchronous>, transform_indices = @transform_22, window_bounds = array<i64: 2, 1, 32>}, {pipeline_mode = #tpu.pipeline_mode<synchronous>, transform_indices = @transform_23, window_bounds = array<i64: 2, 1, 32>}, {pipeline_mode = #tpu.pipeline_mode<synchronous>, transform_indices = @transform_24, window_bounds = array<i64: 2, 1, 32>}, {pipeline_mode = #tpu.pipeline_mode<synchronous>, transform_indices = @transform_25, window_bounds = array<i64: 2, 1, 32>}, {pipeline_mode = #tpu.pipeline_mode<synchronous>, transform_indices = @transform_26, window_bounds = array<i64: 2, 1, 32>}, {pipeline_mode = #tpu.pipeline_mode<synchronous>, transform_indices = @transform_27, window_bounds = array<i64: 2, 1, 32>}, {pipeline_mode = #tpu.pipeline_mode<synchronous>, transform_indices = @transform_28, window_bounds = array<i64: 1, 32>}, {pipeline_mode = #tpu.pipeline_mode<synchronous>, transform_indices = @transform_29, window_bounds = array<i64: 1, 1>}, {transform_indices = @transform_30, window_bounds = array<i64: 1, 2, 8>}]} {
    %c0 = arith.constant 0 : index
    %c0_0 = arith.constant 0 : index
    %c0_1 = arith.constant 0 : index
    %0 = vector.load %arg1[%c0, %c0_0, %c0_1] : memref<2x16x32xf32, #tpu.memory_space<vmem>>, vector<2x16x32xf32>
    %1 = vector.shape_cast %0 : vector<2x16x32xf32> to vector<32x32xf32>
    %c0_2 = arith.constant 0 : index
    %c0_3 = arith.constant 0 : index
    %2 = vector.load %arg2[%c0_2, %c0_3] : memref<8x32xf32, #tpu.memory_space<vmem>>, vector<8x32xf32>
    %3 = tpu.concatenate %2, %2 in 0 : vector<8x32xf32>, vector<8x32xf32> -> vector<16x32xf32>
    %c0_4 = arith.constant 0 : index
    %c0_5 = arith.constant 0 : index
    %c0_6 = arith.constant 0 : index
    %4 = vector.load %arg3[%c0_4, %c0_5, %c0_6] : memref<2x32x32xbf16, #tpu.memory_space<vmem>>, vector<1x32x32xbf16>
    %5 = vector.shape_cast %4 : vector<1x32x32xbf16> to vector<32x32xbf16>
    %c0_7 = arith.constant 0 : index
    %c0_8 = arith.constant 0 : index
    %c0_9 = arith.constant 0 : index
    %6 = vector.load %arg6[%c0_7, %c0_8, %c0_9] : memref<2x1x32xf32, #tpu.memory_space<vmem>>, vector<1x1x32xf32>
    %7 = vector.shape_cast %6 : vector<1x1x32xf32> to vector<1x32xf32>
    %c0_10 = arith.constant 0 : index
    %c0_11 = arith.constant 0 : index
    %c0_12 = arith.constant 0 : index
    %8 = vector.load %arg4[%c0_10, %c0_11, %c0_12] : memref<2x32x32xbf16, #tpu.memory_space<vmem>>, vector<1x32x32xbf16>
    %9 = vector.shape_cast %8 : vector<1x32x32xbf16> to vector<32x32xbf16>
    %c0_13 = arith.constant 0 : index
    %c0_14 = arith.constant 0 : index
    %c0_15 = arith.constant 0 : index
    %10 = vector.load %arg7[%c0_13, %c0_14, %c0_15] : memref<2x1x32xf32, #tpu.memory_space<vmem>>, vector<1x1x32xf32>
    %11 = vector.shape_cast %10 : vector<1x1x32xf32> to vector<1x32xf32>
    %c0_16 = arith.constant 0 : index
    %c0_17 = arith.constant 0 : index
    %c0_18 = arith.constant 0 : index
    %12 = vector.load %arg5[%c0_16, %c0_17, %c0_18] : memref<2x32x32xbf16, #tpu.memory_space<vmem>>, vector<1x32x32xbf16>
    %13 = vector.shape_cast %12 : vector<1x32x32xbf16> to vector<32x32xbf16>
    %c0_19 = arith.constant 0 : index
    %c0_20 = arith.constant 0 : index
    %c0_21 = arith.constant 0 : index
    %14 = vector.load %arg8[%c0_19, %c0_20, %c0_21] : memref<2x1x32xf32, #tpu.memory_space<vmem>>, vector<1x1x32xf32>
    %15 = vector.shape_cast %14 : vector<1x1x32xf32> to vector<1x32xf32>
    %c0_22 = arith.constant 0 : index
    %c0_23 = arith.constant 0 : index
    %c0_24 = arith.constant 0 : index
    %16 = vector.load %arg9[%c0_22, %c0_23, %c0_24] : memref<2x32x32xbf16, #tpu.memory_space<vmem>>, vector<1x32x32xbf16>
    %17 = vector.shape_cast %16 : vector<1x32x32xbf16> to vector<32x32xbf16>
    %c0_25 = arith.constant 0 : index
    %c0_26 = arith.constant 0 : index
    %c0_27 = arith.constant 0 : index
    %18 = vector.load %arg10[%c0_25, %c0_26, %c0_27] : memref<2x1x32xf32, #tpu.memory_space<vmem>>, vector<1x1x32xf32>
    %19 = vector.shape_cast %18 : vector<1x1x32xf32> to vector<1x32xf32>
    %20 = arith.truncf %3 : vector<16x32xf32> to vector<16x32xbf16>
    %cst = arith.constant dense<0.000000e+00> : vector<16x32xf32>
    %21 = tpu.matmul %20, %5, %cst {dimension_numbers = #tpu.dot_dimension_numbers<[1], [0], [0], [1], [0, 0, 1, 1], [], []>} : vector<16x32xbf16>, vector<32x32xbf16>, vector<16x32xf32> -> vector<16x32xf32>
    %22 = vector.broadcast %7 : vector<1x32xf32> to vector<16x32xf32>
    %23 = arith.addf %21, %22 : vector<16x32xf32>
    %24 = vector.shape_cast %23 : vector<16x32xf32> to vector<2x8x32xf32>
    %25 = arith.truncf %3 : vector<16x32xf32> to vector<16x32xbf16>
    %cst_28 = arith.constant dense<0.000000e+00> : vector<16x32xf32>
    %26 = tpu.matmul %25, %9, %cst_28 {dimension_numbers = #tpu.dot_dimension_numbers<[1], [0], [0], [1], [0, 0, 1, 1], [], []>} : vector<16x32xbf16>, vector<32x32xbf16>, vector<16x32xf32> -> vector<16x32xf32>
    %27 = vector.broadcast %11 : vector<1x32xf32> to vector<16x32xf32>
    %28 = arith.addf %26, %27 : vector<16x32xf32>
    %29 = vector.shape_cast %28 : vector<16x32xf32> to vector<2x8x32xf32>
    %30 = arith.truncf %3 : vector<16x32xf32> to vector<16x32xbf16>
    %cst_29 = arith.constant dense<0.000000e+00> : vector<16x32xf32>
    %31 = tpu.matmul %30, %13, %cst_29 {dimension_numbers = #tpu.dot_dimension_numbers<[1], [0], [0], [1], [0, 0, 1, 1], [], []>} : vector<16x32xbf16>, vector<32x32xbf16>, vector<16x32xf32> -> vector<16x32xf32>
    %32 = vector.broadcast %15 : vector<1x32xf32> to vector<16x32xf32>
    %33 = arith.addf %31, %32 : vector<16x32xf32>
    %34 = vector.shape_cast %33 : vector<16x32xf32> to vector<2x8x32xf32>
    %35 = vector.extract_strided_slice %24 {offsets = [0, 0, 0], sizes = [2, 8, 8], strides = [1, 1, 1]} : vector<2x8x32xf32> to vector<2x8x8xf32>
    %36 = arith.truncf %35 : vector<2x8x8xf32> to vector<2x8x8xbf16>
    %37 = vector.extract_strided_slice %29 {offsets = [0, 0, 0], sizes = [2, 8, 8], strides = [1, 1, 1]} : vector<2x8x32xf32> to vector<2x8x8xf32>
    %38 = arith.truncf %37 : vector<2x8x8xf32> to vector<2x8x8xbf16>
    %39 = vector.extract_strided_slice %34 {offsets = [0, 0, 0], sizes = [2, 8, 8], strides = [1, 1, 1]} : vector<2x8x32xf32> to vector<2x8x8xf32>
    %40 = arith.truncf %39 : vector<2x8x8xf32> to vector<2x8x8xbf16>
    "tpu.trace_start"() <{level = 10 : i32, message = "tqd,tkd->tqk"}> : () -> ()
    %cst_30 = arith.constant dense<0.000000e+00> : vector<2x8x8xf32>
    %41 = tpu.matmul %36, %38, %cst_30 {dimension_numbers = #tpu.dot_dimension_numbers<[2], [2], [1], [1], [0, 0, 0, 1, 1, 1], [0], [0]>} : vector<2x8x8xbf16>, vector<2x8x8xbf16>, vector<2x8x8xf32> -> vector<2x8x8xf32>
    "tpu.trace_stop"() : () -> ()
    %cst_31 = arith.constant 0.353553385 : f32
    %42 = vector.broadcast %cst_31 : f32 to vector<2x8x8xf32>
    %43 = arith.mulf %41, %42 : vector<2x8x8xf32>
    %cst_32 = arith.constant dense<0xFF800000> : vector<2x8xf32>
    %44 = vector.multi_reduction <maximumf>, %43, %cst_32 [2] : vector<2x8x8xf32> to vector<2x8xf32>
    %45 = vector.shape_cast %44 : vector<2x8xf32> to vector<2x8x1xf32>
    %46 = vector.broadcast %45 : vector<2x8x1xf32> to vector<2x8x8xf32>
    %47 = arith.subf %43, %46 : vector<2x8x8xf32>
    %48 = math.exp %47 : vector<2x8x8xf32>
    %cst_33 = arith.constant dense<0.000000e+00> : vector<2x8xf32>
    %49 = vector.multi_reduction <add>, %48, %cst_33 [2] : vector<2x8x8xf32> to vector<2x8xf32>
    %50 = vector.shape_cast %49 : vector<2x8xf32> to vector<2x8x1xf32>
    %51 = tpu.reciprocal %50 {approx = true} : vector<2x8x1xf32> -> vector<2x8x1xf32>
    %52 = vector.broadcast %51 : vector<2x8x1xf32> to vector<2x8x8xf32>
    %53 = arith.mulf %48, %52 : vector<2x8x8xf32>
    %54 = arith.truncf %53 : vector<2x8x8xf32> to vector<2x8x8xbf16>
    "tpu.trace_start"() <{level = 10 : i32, message = "tqk,tkd->tqd"}> : () -> ()
    %cst_34 = arith.constant dense<0.000000e+00> : vector<2x8x8xf32>
    %55 = tpu.matmul %54, %40, %cst_34 {dimension_numbers = #tpu.dot_dimension_numbers<[2], [1], [1], [2], [0, 0, 0, 1, 1, 2], [0], [0]>} : vector<2x8x8xbf16>, vector<2x8x8xbf16>, vector<2x8x8xf32> -> vector<2x8x8xf32>
    "tpu.trace_stop"() : () -> ()
    %56 = vector.extract_strided_slice %24 {offsets = [0, 0, 8], sizes = [2, 8, 8], strides = [1, 1, 1]} : vector<2x8x32xf32> to vector<2x8x8xf32>
    %57 = arith.truncf %56 : vector<2x8x8xf32> to vector<2x8x8xbf16>
    %58 = vector.extract_strided_slice %29 {offsets = [0, 0, 8], sizes = [2, 8, 8], strides = [1, 1, 1]} : vector<2x8x32xf32> to vector<2x8x8xf32>
    %59 = arith.truncf %58 : vector<2x8x8xf32> to vector<2x8x8xbf16>
    %60 = vector.extract_strided_slice %34 {offsets = [0, 0, 8], sizes = [2, 8, 8], strides = [1, 1, 1]} : vector<2x8x32xf32> to vector<2x8x8xf32>
    %61 = arith.truncf %60 : vector<2x8x8xf32> to vector<2x8x8xbf16>
    "tpu.trace_start"() <{level = 10 : i32, message = "tqd,tkd->tqk"}> : () -> ()
    %cst_35 = arith.constant dense<0.000000e+00> : vector<2x8x8xf32>
    %62 = tpu.matmul %57, %59, %cst_35 {dimension_numbers = #tpu.dot_dimension_numbers<[2], [2], [1], [1], [0, 0, 0, 1, 1, 1], [0], [0]>} : vector<2x8x8xbf16>, vector<2x8x8xbf16>, vector<2x8x8xf32> -> vector<2x8x8xf32>
    "tpu.trace_stop"() : () -> ()
    %cst_36 = arith.constant 0.353553385 : f32
    %63 = vector.broadcast %cst_36 : f32 to vector<2x8x8xf32>
    %64 = arith.mulf %62, %63 : vector<2x8x8xf32>
    %cst_37 = arith.constant dense<0xFF800000> : vector<2x8xf32>
    %65 = vector.multi_reduction <maximumf>, %64, %cst_37 [2] : vector<2x8x8xf32> to vector<2x8xf32>
    %66 = vector.shape_cast %65 : vector<2x8xf32> to vector<2x8x1xf32>
    %67 = vector.broadcast %66 : vector<2x8x1xf32> to vector<2x8x8xf32>
    %68 = arith.subf %64, %67 : vector<2x8x8xf32>
    %69 = math.exp %68 : vector<2x8x8xf32>
    %cst_38 = arith.constant dense<0.000000e+00> : vector<2x8xf32>
    %70 = vector.multi_reduction <add>, %69, %cst_38 [2] : vector<2x8x8xf32> to vector<2x8xf32>
    %71 = vector.shape_cast %70 : vector<2x8xf32> to vector<2x8x1xf32>
    %72 = tpu.reciprocal %71 {approx = true} : vector<2x8x1xf32> -> vector<2x8x1xf32>
    %73 = vector.broadcast %72 : vector<2x8x1xf32> to vector<2x8x8xf32>
    %74 = arith.mulf %69, %73 : vector<2x8x8xf32>
    %75 = arith.truncf %74 : vector<2x8x8xf32> to vector<2x8x8xbf16>
    "tpu.trace_start"() <{level = 10 : i32, message = "tqk,tkd->tqd"}> : () -> ()
    %cst_39 = arith.constant dense<0.000000e+00> : vector<2x8x8xf32>
    %76 = tpu.matmul %75, %61, %cst_39 {dimension_numbers = #tpu.dot_dimension_numbers<[2], [1], [1], [2], [0, 0, 0, 1, 1, 2], [0], [0]>} : vector<2x8x8xbf16>, vector<2x8x8xbf16>, vector<2x8x8xf32> -> vector<2x8x8xf32>
    "tpu.trace_stop"() : () -> ()
    %77 = vector.extract_strided_slice %24 {offsets = [0, 0, 16], sizes = [2, 8, 8], strides = [1, 1, 1]} : vector<2x8x32xf32> to vector<2x8x8xf32>
    %78 = arith.truncf %77 : vector<2x8x8xf32> to vector<2x8x8xbf16>
    %79 = vector.extract_strided_slice %29 {offsets = [0, 0, 16], sizes = [2, 8, 8], strides = [1, 1, 1]} : vector<2x8x32xf32> to vector<2x8x8xf32>
    %80 = arith.truncf %79 : vector<2x8x8xf32> to vector<2x8x8xbf16>
    %81 = vector.extract_strided_slice %34 {offsets = [0, 0, 16], sizes = [2, 8, 8], strides = [1, 1, 1]} : vector<2x8x32xf32> to vector<2x8x8xf32>
    %82 = arith.truncf %81 : vector<2x8x8xf32> to vector<2x8x8xbf16>
    "tpu.trace_start"() <{level = 10 : i32, message = "tqd,tkd->tqk"}> : () -> ()
    %cst_40 = arith.constant dense<0.000000e+00> : vector<2x8x8xf32>
    %83 = tpu.matmul %78, %80, %cst_40 {dimension_numbers = #tpu.dot_dimension_numbers<[2], [2], [1], [1], [0, 0, 0, 1, 1, 1], [0], [0]>} : vector<2x8x8xbf16>, vector<2x8x8xbf16>, vector<2x8x8xf32> -> vector<2x8x8xf32>
    "tpu.trace_stop"() : () -> ()
    %cst_41 = arith.constant 0.353553385 : f32
    %84 = vector.broadcast %cst_41 : f32 to vector<2x8x8xf32>
    %85 = arith.mulf %83, %84 : vector<2x8x8xf32>
    %cst_42 = arith.constant dense<0xFF800000> : vector<2x8xf32>
    %86 = vector.multi_reduction <maximumf>, %85, %cst_42 [2] : vector<2x8x8xf32> to vector<2x8xf32>
    %87 = vector.shape_cast %86 : vector<2x8xf32> to vector<2x8x1xf32>
    %88 = vector.broadcast %87 : vector<2x8x1xf32> to vector<2x8x8xf32>
    %89 = arith.subf %85, %88 : vector<2x8x8xf32>
    %90 = math.exp %89 : vector<2x8x8xf32>
    %cst_43 = arith.constant dense<0.000000e+00> : vector<2x8xf32>
    %91 = vector.multi_reduction <add>, %90, %cst_43 [2] : vector<2x8x8xf32> to vector<2x8xf32>
    %92 = vector.shape_cast %91 : vector<2x8xf32> to vector<2x8x1xf32>
    %93 = tpu.reciprocal %92 {approx = true} : vector<2x8x1xf32> -> vector<2x8x1xf32>
    %94 = vector.broadcast %93 : vector<2x8x1xf32> to vector<2x8x8xf32>
    %95 = arith.mulf %90, %94 : vector<2x8x8xf32>
    %96 = arith.truncf %95 : vector<2x8x8xf32> to vector<2x8x8xbf16>
    "tpu.trace_start"() <{level = 10 : i32, message = "tqk,tkd->tqd"}> : () -> ()
    %cst_44 = arith.constant dense<0.000000e+00> : vector<2x8x8xf32>
    %97 = tpu.matmul %96, %82, %cst_44 {dimension_numbers = #tpu.dot_dimension_numbers<[2], [1], [1], [2], [0, 0, 0, 1, 1, 2], [0], [0]>} : vector<2x8x8xbf16>, vector<2x8x8xbf16>, vector<2x8x8xf32> -> vector<2x8x8xf32>
    "tpu.trace_stop"() : () -> ()
    %98 = vector.extract_strided_slice %24 {offsets = [0, 0, 24], sizes = [2, 8, 8], strides = [1, 1, 1]} : vector<2x8x32xf32> to vector<2x8x8xf32>
    %99 = arith.truncf %98 : vector<2x8x8xf32> to vector<2x8x8xbf16>
    %100 = vector.extract_strided_slice %29 {offsets = [0, 0, 24], sizes = [2, 8, 8], strides = [1, 1, 1]} : vector<2x8x32xf32> to vector<2x8x8xf32>
    %101 = arith.truncf %100 : vector<2x8x8xf32> to vector<2x8x8xbf16>
    %102 = vector.extract_strided_slice %34 {offsets = [0, 0, 24], sizes = [2, 8, 8], strides = [1, 1, 1]} : vector<2x8x32xf32> to vector<2x8x8xf32>
    %103 = arith.truncf %102 : vector<2x8x8xf32> to vector<2x8x8xbf16>
    "tpu.trace_start"() <{level = 10 : i32, message = "tqd,tkd->tqk"}> : () -> ()
    %cst_45 = arith.constant dense<0.000000e+00> : vector<2x8x8xf32>
    %104 = tpu.matmul %99, %101, %cst_45 {dimension_numbers = #tpu.dot_dimension_numbers<[2], [2], [1], [1], [0, 0, 0, 1, 1, 1], [0], [0]>} : vector<2x8x8xbf16>, vector<2x8x8xbf16>, vector<2x8x8xf32> -> vector<2x8x8xf32>
    "tpu.trace_stop"() : () -> ()
    %cst_46 = arith.constant 0.353553385 : f32
    %105 = vector.broadcast %cst_46 : f32 to vector<2x8x8xf32>
    %106 = arith.mulf %104, %105 : vector<2x8x8xf32>
    %cst_47 = arith.constant dense<0xFF800000> : vector<2x8xf32>
    %107 = vector.multi_reduction <maximumf>, %106, %cst_47 [2] : vector<2x8x8xf32> to vector<2x8xf32>
    %108 = vector.shape_cast %107 : vector<2x8xf32> to vector<2x8x1xf32>
    %109 = vector.broadcast %108 : vector<2x8x1xf32> to vector<2x8x8xf32>
    %110 = arith.subf %106, %109 : vector<2x8x8xf32>
    %111 = math.exp %110 : vector<2x8x8xf32>
    %cst_48 = arith.constant dense<0.000000e+00> : vector<2x8xf32>
    %112 = vector.multi_reduction <add>, %111, %cst_48 [2] : vector<2x8x8xf32> to vector<2x8xf32>
    %113 = vector.shape_cast %112 : vector<2x8xf32> to vector<2x8x1xf32>
    %114 = tpu.reciprocal %113 {approx = true} : vector<2x8x1xf32> -> vector<2x8x1xf32>
    %115 = vector.broadcast %114 : vector<2x8x1xf32> to vector<2x8x8xf32>
    %116 = arith.mulf %111, %115 : vector<2x8x8xf32>
    %117 = arith.truncf %116 : vector<2x8x8xf32> to vector<2x8x8xbf16>
    "tpu.trace_start"() <{level = 10 : i32, message = "tqk,tkd->tqd"}> : () -> ()
    %cst_49 = arith.constant dense<0.000000e+00> : vector<2x8x8xf32>
    %118 = tpu.matmul %117, %103, %cst_49 {dimension_numbers = #tpu.dot_dimension_numbers<[2], [1], [1], [2], [0, 0, 0, 1, 1, 2], [0], [0]>} : vector<2x8x8xbf16>, vector<2x8x8xbf16>, vector<2x8x8xf32> -> vector<2x8x8xf32>
    "tpu.trace_stop"() : () -> ()
    %119 = tpu.concatenate %55, %76, %97, %118 in 2 : vector<2x8x8xf32>, vector<2x8x8xf32>, vector<2x8x8xf32>, vector<2x8x8xf32> -> vector<2x8x32xf32>
    %120 = vector.shape_cast %119 : vector<2x8x32xf32> to vector<16x32xf32>
    %121 = arith.truncf %120 : vector<16x32xf32> to vector<16x32xbf16>
    %cst_50 = arith.constant dense<0.000000e+00> : vector<16x32xf32>
    %122 = tpu.matmul %121, %17, %cst_50 {dimension_numbers = #tpu.dot_dimension_numbers<[1], [0], [0], [1], [0, 0, 1, 1], [], []>} : vector<16x32xbf16>, vector<32x32xbf16>, vector<16x32xf32> -> vector<16x32xf32>
    %123 = vector.broadcast %19 : vector<1x32xf32> to vector<16x32xf32>
    %124 = arith.addf %122, %123 : vector<16x32xf32>
    %125 = arith.addf %3, %124 : vector<16x32xf32>
    %c0_51 = arith.constant 0 : index
    %c0_52 = arith.constant 0 : index
    %c0_53 = arith.constant 0 : index
    %126 = vector.load %arg23[%c0_51, %c0_52, %c0_53] : memref<2x1x32xf32, #tpu.memory_space<vmem>>, vector<1x1x32xf32>
    %127 = vector.shape_cast %126 : vector<1x1x32xf32> to vector<1x32xf32>
    %c0_54 = arith.constant 0 : index
    %c0_55 = arith.constant 0 : index
    %c0_56 = arith.constant 0 : index
    %128 = vector.load %arg24[%c0_54, %c0_55, %c0_56] : memref<2x1x32xf32, #tpu.memory_space<vmem>>, vector<1x1x32xf32>
    %129 = vector.shape_cast %128 : vector<1x1x32xf32> to vector<1x32xf32>
    %cst_57 = arith.constant dense<0.000000e+00> : vector<16xf32>
    %130 = vector.multi_reduction <add>, %125, %cst_57 [1] : vector<16x32xf32> to vector<16xf32>
    %131 = vector.shape_cast %130 : vector<16xf32> to vector<16x1xf32>
    %cst_58 = arith.constant 3.200000e+01 : f32
    %132 = vector.broadcast %cst_58 : f32 to vector<16x1xf32>
    %133 = arith.divf %131, %132 : vector<16x1xf32>
    %134 = vector.broadcast %133 : vector<16x1xf32> to vector<16x32xf32>
    %135 = arith.subf %125, %134 : vector<16x32xf32>
    %136 = arith.mulf %135, %135 : vector<16x32xf32>
    %cst_59 = arith.constant dense<0.000000e+00> : vector<16xf32>
    %137 = vector.multi_reduction <add>, %136, %cst_59 [1] : vector<16x32xf32> to vector<16xf32>
    %138 = vector.shape_cast %137 : vector<16xf32> to vector<16x1xf32>
    %cst_60 = arith.constant 3.200000e+01 : f32
    %139 = vector.broadcast %cst_60 : f32 to vector<16x1xf32>
    %140 = arith.divf %138, %139 : vector<16x1xf32>
    %141 = vector.broadcast %133 : vector<16x1xf32> to vector<16x32xf32>
    %142 = arith.subf %125, %141 : vector<16x32xf32>
    %cst_61 = arith.constant 9.99999974E-6 : f32
    %143 = vector.broadcast %cst_61 : f32 to vector<16x1xf32>
    %144 = arith.addf %140, %143 : vector<16x1xf32>
    %145 = math.rsqrt %144 : vector<16x1xf32>
    %146 = vector.broadcast %145 : vector<16x1xf32> to vector<16x32xf32>
    %147 = arith.mulf %142, %146 : vector<16x32xf32>
    %148 = vector.broadcast %127 : vector<1x32xf32> to vector<16x32xf32>
    %149 = arith.mulf %147, %148 : vector<16x32xf32>
    %150 = vector.broadcast %129 : vector<1x32xf32> to vector<16x32xf32>
    %151 = arith.addf %149, %150 : vector<16x32xf32>
    %c0_62 = arith.constant 0 : index
    %c0_63 = arith.constant 0 : index
    %c0_64 = arith.constant 0 : index
    %152 = vector.load %arg11[%c0_62, %c0_63, %c0_64] : memref<2x32x32xbf16, #tpu.memory_space<vmem>>, vector<1x32x32xbf16>
    %153 = vector.shape_cast %152 : vector<1x32x32xbf16> to vector<32x32xbf16>
    %c0_65 = arith.constant 0 : index
    %c0_66 = arith.constant 0 : index
    %c0_67 = arith.constant 0 : index
    %154 = vector.load %arg14[%c0_65, %c0_66, %c0_67] : memref<2x1x32xf32, #tpu.memory_space<vmem>>, vector<1x1x32xf32>
    %155 = vector.shape_cast %154 : vector<1x1x32xf32> to vector<1x32xf32>
    %c0_68 = arith.constant 0 : index
    %c0_69 = arith.constant 0 : index
    %c0_70 = arith.constant 0 : index
    %156 = vector.load %arg12[%c0_68, %c0_69, %c0_70] : memref<2x32x32xbf16, #tpu.memory_space<vmem>>, vector<1x32x32xbf16>
    %157 = vector.shape_cast %156 : vector<1x32x32xbf16> to vector<32x32xbf16>
    %c0_71 = arith.constant 0 : index
    %c0_72 = arith.constant 0 : index
    %c0_73 = arith.constant 0 : index
    %158 = vector.load %arg15[%c0_71, %c0_72, %c0_73] : memref<2x1x32xf32, #tpu.memory_space<vmem>>, vector<1x1x32xf32>
    %159 = vector.shape_cast %158 : vector<1x1x32xf32> to vector<1x32xf32>
    %c0_74 = arith.constant 0 : index
    %c0_75 = arith.constant 0 : index
    %c0_76 = arith.constant 0 : index
    %160 = vector.load %arg13[%c0_74, %c0_75, %c0_76] : memref<2x32x32xbf16, #tpu.memory_space<vmem>>, vector<1x32x32xbf16>
    %161 = vector.shape_cast %160 : vector<1x32x32xbf16> to vector<32x32xbf16>
    %c0_77 = arith.constant 0 : index
    %c0_78 = arith.constant 0 : index
    %c0_79 = arith.constant 0 : index
    %162 = vector.load %arg16[%c0_77, %c0_78, %c0_79] : memref<2x1x32xf32, #tpu.memory_space<vmem>>, vector<1x1x32xf32>
    %163 = vector.shape_cast %162 : vector<1x1x32xf32> to vector<1x32xf32>
    %c0_80 = arith.constant 0 : index
    %c0_81 = arith.constant 0 : index
    %c0_82 = arith.constant 0 : index
    %164 = vector.load %arg17[%c0_80, %c0_81, %c0_82] : memref<2x32x32xbf16, #tpu.memory_space<vmem>>, vector<1x32x32xbf16>
    %165 = vector.shape_cast %164 : vector<1x32x32xbf16> to vector<32x32xbf16>
    %c0_83 = arith.constant 0 : index
    %c0_84 = arith.constant 0 : index
    %c0_85 = arith.constant 0 : index
    %166 = vector.load %arg18[%c0_83, %c0_84, %c0_85] : memref<2x1x32xf32, #tpu.memory_space<vmem>>, vector<1x1x32xf32>
    %167 = vector.shape_cast %166 : vector<1x1x32xf32> to vector<1x32xf32>
    %168 = arith.truncf %151 : vector<16x32xf32> to vector<16x32xbf16>
    %cst_86 = arith.constant dense<0.000000e+00> : vector<16x32xf32>
    %169 = tpu.matmul %168, %153, %cst_86 {dimension_numbers = #tpu.dot_dimension_numbers<[1], [0], [0], [1], [0, 0, 1, 1], [], []>} : vector<16x32xbf16>, vector<32x32xbf16>, vector<16x32xf32> -> vector<16x32xf32>
    %170 = vector.broadcast %155 : vector<1x32xf32> to vector<16x32xf32>
    %171 = arith.addf %169, %170 : vector<16x32xf32>
    %172 = vector.shape_cast %171 : vector<16x32xf32> to vector<2x8x32xf32>
    %173 = arith.truncf %1 : vector<32x32xf32> to vector<32x32xbf16>
    %cst_87 = arith.constant dense<0.000000e+00> : vector<32x32xf32>
    %174 = tpu.matmul %173, %157, %cst_87 {dimension_numbers = #tpu.dot_dimension_numbers<[1], [0], [0], [1], [0, 0, 1, 1], [], []>} : vector<32x32xbf16>, vector<32x32xbf16>, vector<32x32xf32> -> vector<32x32xf32>
    %175 = vector.broadcast %159 : vector<1x32xf32> to vector<32x32xf32>
    %176 = arith.addf %174, %175 : vector<32x32xf32>
    %177 = vector.shape_cast %176 : vector<32x32xf32> to vector<2x16x32xf32>
    %178 = arith.truncf %1 : vector<32x32xf32> to vector<32x32xbf16>
    %cst_88 = arith.constant dense<0.000000e+00> : vector<32x32xf32>
    %179 = tpu.matmul %178, %161, %cst_88 {dimension_numbers = #tpu.dot_dimension_numbers<[1], [0], [0], [1], [0, 0, 1, 1], [], []>} : vector<32x32xbf16>, vector<32x32xbf16>, vector<32x32xf32> -> vector<32x32xf32>
    %180 = vector.broadcast %163 : vector<1x32xf32> to vector<32x32xf32>
    %181 = arith.addf %179, %180 : vector<32x32xf32>
    %182 = vector.shape_cast %181 : vector<32x32xf32> to vector<2x16x32xf32>
    %183 = vector.extract_strided_slice %172 {offsets = [0, 0, 0], sizes = [2, 8, 8], strides = [1, 1, 1]} : vector<2x8x32xf32> to vector<2x8x8xf32>
    %184 = arith.truncf %183 : vector<2x8x8xf32> to vector<2x8x8xbf16>
    %185 = vector.extract_strided_slice %177 {offsets = [0, 0, 0], sizes = [2, 16, 8], strides = [1, 1, 1]} : vector<2x16x32xf32> to vector<2x16x8xf32>
    %186 = arith.truncf %185 : vector<2x16x8xf32> to vector<2x16x8xbf16>
    %187 = vector.extract_strided_slice %182 {offsets = [0, 0, 0], sizes = [2, 16, 8], strides = [1, 1, 1]} : vector<2x16x32xf32> to vector<2x16x8xf32>
    %188 = arith.truncf %187 : vector<2x16x8xf32> to vector<2x16x8xbf16>
    "tpu.trace_start"() <{level = 10 : i32, message = "tqd,tkd->tqk"}> : () -> ()
    %cst_89 = arith.constant dense<0.000000e+00> : vector<2x8x16xf32>
    %189 = tpu.matmul %184, %186, %cst_89 {dimension_numbers = #tpu.dot_dimension_numbers<[2], [2], [1], [1], [0, 0, 0, 1, 1, 1], [0], [0]>} : vector<2x8x8xbf16>, vector<2x16x8xbf16>, vector<2x8x16xf32> -> vector<2x8x16xf32>
    "tpu.trace_stop"() : () -> ()
    %cst_90 = arith.constant 0.353553385 : f32
    %190 = vector.broadcast %cst_90 : f32 to vector<2x8x16xf32>
    %191 = arith.mulf %189, %190 : vector<2x8x16xf32>
    %cst_91 = arith.constant dense<0xFF800000> : vector<2x8xf32>
    %192 = vector.multi_reduction <maximumf>, %191, %cst_91 [2] : vector<2x8x16xf32> to vector<2x8xf32>
    %193 = vector.shape_cast %192 : vector<2x8xf32> to vector<2x8x1xf32>
    %194 = vector.broadcast %193 : vector<2x8x1xf32> to vector<2x8x16xf32>
    %195 = arith.subf %191, %194 : vector<2x8x16xf32>
    %196 = math.exp %195 : vector<2x8x16xf32>
    %cst_92 = arith.constant dense<0.000000e+00> : vector<2x8xf32>
    %197 = vector.multi_reduction <add>, %196, %cst_92 [2] : vector<2x8x16xf32> to vector<2x8xf32>
    %198 = vector.shape_cast %197 : vector<2x8xf32> to vector<2x8x1xf32>
    %199 = tpu.reciprocal %198 {approx = true} : vector<2x8x1xf32> -> vector<2x8x1xf32>
    %200 = vector.broadcast %199 : vector<2x8x1xf32> to vector<2x8x16xf32>
    %201 = arith.mulf %196, %200 : vector<2x8x16xf32>
    %202 = arith.truncf %201 : vector<2x8x16xf32> to vector<2x8x16xbf16>
    "tpu.trace_start"() <{level = 10 : i32, message = "tqk,tkd->tqd"}> : () -> ()
    %cst_93 = arith.constant dense<0.000000e+00> : vector<2x8x8xf32>
    %203 = tpu.matmul %202, %188, %cst_93 {dimension_numbers = #tpu.dot_dimension_numbers<[2], [1], [1], [2], [0, 0, 0, 1, 1, 2], [0], [0]>} : vector<2x8x16xbf16>, vector<2x16x8xbf16>, vector<2x8x8xf32> -> vector<2x8x8xf32>
    "tpu.trace_stop"() : () -> ()
    %204 = vector.extract_strided_slice %172 {offsets = [0, 0, 8], sizes = [2, 8, 8], strides = [1, 1, 1]} : vector<2x8x32xf32> to vector<2x8x8xf32>
    %205 = arith.truncf %204 : vector<2x8x8xf32> to vector<2x8x8xbf16>
    %206 = vector.extract_strided_slice %177 {offsets = [0, 0, 8], sizes = [2, 16, 8], strides = [1, 1, 1]} : vector<2x16x32xf32> to vector<2x16x8xf32>
    %207 = arith.truncf %206 : vector<2x16x8xf32> to vector<2x16x8xbf16>
    %208 = vector.extract_strided_slice %182 {offsets = [0, 0, 8], sizes = [2, 16, 8], strides = [1, 1, 1]} : vector<2x16x32xf32> to vector<2x16x8xf32>
    %209 = arith.truncf %208 : vector<2x16x8xf32> to vector<2x16x8xbf16>
    "tpu.trace_start"() <{level = 10 : i32, message = "tqd,tkd->tqk"}> : () -> ()
    %cst_94 = arith.constant dense<0.000000e+00> : vector<2x8x16xf32>
    %210 = tpu.matmul %205, %207, %cst_94 {dimension_numbers = #tpu.dot_dimension_numbers<[2], [2], [1], [1], [0, 0, 0, 1, 1, 1], [0], [0]>} : vector<2x8x8xbf16>, vector<2x16x8xbf16>, vector<2x8x16xf32> -> vector<2x8x16xf32>
    "tpu.trace_stop"() : () -> ()
    %cst_95 = arith.constant 0.353553385 : f32
    %211 = vector.broadcast %cst_95 : f32 to vector<2x8x16xf32>
    %212 = arith.mulf %210, %211 : vector<2x8x16xf32>
    %cst_96 = arith.constant dense<0xFF800000> : vector<2x8xf32>
    %213 = vector.multi_reduction <maximumf>, %212, %cst_96 [2] : vector<2x8x16xf32> to vector<2x8xf32>
    %214 = vector.shape_cast %213 : vector<2x8xf32> to vector<2x8x1xf32>
    %215 = vector.broadcast %214 : vector<2x8x1xf32> to vector<2x8x16xf32>
    %216 = arith.subf %212, %215 : vector<2x8x16xf32>
    %217 = math.exp %216 : vector<2x8x16xf32>
    %cst_97 = arith.constant dense<0.000000e+00> : vector<2x8xf32>
    %218 = vector.multi_reduction <add>, %217, %cst_97 [2] : vector<2x8x16xf32> to vector<2x8xf32>
    %219 = vector.shape_cast %218 : vector<2x8xf32> to vector<2x8x1xf32>
    %220 = tpu.reciprocal %219 {approx = true} : vector<2x8x1xf32> -> vector<2x8x1xf32>
    %221 = vector.broadcast %220 : vector<2x8x1xf32> to vector<2x8x16xf32>
    %222 = arith.mulf %217, %221 : vector<2x8x16xf32>
    %223 = arith.truncf %222 : vector<2x8x16xf32> to vector<2x8x16xbf16>
    "tpu.trace_start"() <{level = 10 : i32, message = "tqk,tkd->tqd"}> : () -> ()
    %cst_98 = arith.constant dense<0.000000e+00> : vector<2x8x8xf32>
    %224 = tpu.matmul %223, %209, %cst_98 {dimension_numbers = #tpu.dot_dimension_numbers<[2], [1], [1], [2], [0, 0, 0, 1, 1, 2], [0], [0]>} : vector<2x8x16xbf16>, vector<2x16x8xbf16>, vector<2x8x8xf32> -> vector<2x8x8xf32>
    "tpu.trace_stop"() : () -> ()
    %225 = vector.extract_strided_slice %172 {offsets = [0, 0, 16], sizes = [2, 8, 8], strides = [1, 1, 1]} : vector<2x8x32xf32> to vector<2x8x8xf32>
    %226 = arith.truncf %225 : vector<2x8x8xf32> to vector<2x8x8xbf16>
    %227 = vector.extract_strided_slice %177 {offsets = [0, 0, 16], sizes = [2, 16, 8], strides = [1, 1, 1]} : vector<2x16x32xf32> to vector<2x16x8xf32>
    %228 = arith.truncf %227 : vector<2x16x8xf32> to vector<2x16x8xbf16>
    %229 = vector.extract_strided_slice %182 {offsets = [0, 0, 16], sizes = [2, 16, 8], strides = [1, 1, 1]} : vector<2x16x32xf32> to vector<2x16x8xf32>
    %230 = arith.truncf %229 : vector<2x16x8xf32> to vector<2x16x8xbf16>
    "tpu.trace_start"() <{level = 10 : i32, message = "tqd,tkd->tqk"}> : () -> ()
    %cst_99 = arith.constant dense<0.000000e+00> : vector<2x8x16xf32>
    %231 = tpu.matmul %226, %228, %cst_99 {dimension_numbers = #tpu.dot_dimension_numbers<[2], [2], [1], [1], [0, 0, 0, 1, 1, 1], [0], [0]>} : vector<2x8x8xbf16>, vector<2x16x8xbf16>, vector<2x8x16xf32> -> vector<2x8x16xf32>
    "tpu.trace_stop"() : () -> ()
    %cst_100 = arith.constant 0.353553385 : f32
    %232 = vector.broadcast %cst_100 : f32 to vector<2x8x16xf32>
    %233 = arith.mulf %231, %232 : vector<2x8x16xf32>
    %cst_101 = arith.constant dense<0xFF800000> : vector<2x8xf32>
    %234 = vector.multi_reduction <maximumf>, %233, %cst_101 [2] : vector<2x8x16xf32> to vector<2x8xf32>
    %235 = vector.shape_cast %234 : vector<2x8xf32> to vector<2x8x1xf32>
    %236 = vector.broadcast %235 : vector<2x8x1xf32> to vector<2x8x16xf32>
    %237 = arith.subf %233, %236 : vector<2x8x16xf32>
    %238 = math.exp %237 : vector<2x8x16xf32>
    %cst_102 = arith.constant dense<0.000000e+00> : vector<2x8xf32>
    %239 = vector.multi_reduction <add>, %238, %cst_102 [2] : vector<2x8x16xf32> to vector<2x8xf32>
    %240 = vector.shape_cast %239 : vector<2x8xf32> to vector<2x8x1xf32>
    %241 = tpu.reciprocal %240 {approx = true} : vector<2x8x1xf32> -> vector<2x8x1xf32>
    %242 = vector.broadcast %241 : vector<2x8x1xf32> to vector<2x8x16xf32>
    %243 = arith.mulf %238, %242 : vector<2x8x16xf32>
    %244 = arith.truncf %243 : vector<2x8x16xf32> to vector<2x8x16xbf16>
    "tpu.trace_start"() <{level = 10 : i32, message = "tqk,tkd->tqd"}> : () -> ()
    %cst_103 = arith.constant dense<0.000000e+00> : vector<2x8x8xf32>
    %245 = tpu.matmul %244, %230, %cst_103 {dimension_numbers = #tpu.dot_dimension_numbers<[2], [1], [1], [2], [0, 0, 0, 1, 1, 2], [0], [0]>} : vector<2x8x16xbf16>, vector<2x16x8xbf16>, vector<2x8x8xf32> -> vector<2x8x8xf32>
    "tpu.trace_stop"() : () -> ()
    %246 = vector.extract_strided_slice %172 {offsets = [0, 0, 24], sizes = [2, 8, 8], strides = [1, 1, 1]} : vector<2x8x32xf32> to vector<2x8x8xf32>
    %247 = arith.truncf %246 : vector<2x8x8xf32> to vector<2x8x8xbf16>
    %248 = vector.extract_strided_slice %177 {offsets = [0, 0, 24], sizes = [2, 16, 8], strides = [1, 1, 1]} : vector<2x16x32xf32> to vector<2x16x8xf32>
    %249 = arith.truncf %248 : vector<2x16x8xf32> to vector<2x16x8xbf16>
    %250 = vector.extract_strided_slice %182 {offsets = [0, 0, 24], sizes = [2, 16, 8], strides = [1, 1, 1]} : vector<2x16x32xf32> to vector<2x16x8xf32>
    %251 = arith.truncf %250 : vector<2x16x8xf32> to vector<2x16x8xbf16>
    "tpu.trace_start"() <{level = 10 : i32, message = "tqd,tkd->tqk"}> : () -> ()
    %cst_104 = arith.constant dense<0.000000e+00> : vector<2x8x16xf32>
    %252 = tpu.matmul %247, %249, %cst_104 {dimension_numbers = #tpu.dot_dimension_numbers<[2], [2], [1], [1], [0, 0, 0, 1, 1, 1], [0], [0]>} : vector<2x8x8xbf16>, vector<2x16x8xbf16>, vector<2x8x16xf32> -> vector<2x8x16xf32>
    "tpu.trace_stop"() : () -> ()
    %cst_105 = arith.constant 0.353553385 : f32
    %253 = vector.broadcast %cst_105 : f32 to vector<2x8x16xf32>
    %254 = arith.mulf %252, %253 : vector<2x8x16xf32>
    %cst_106 = arith.constant dense<0xFF800000> : vector<2x8xf32>
    %255 = vector.multi_reduction <maximumf>, %254, %cst_106 [2] : vector<2x8x16xf32> to vector<2x8xf32>
    %256 = vector.shape_cast %255 : vector<2x8xf32> to vector<2x8x1xf32>
    %257 = vector.broadcast %256 : vector<2x8x1xf32> to vector<2x8x16xf32>
    %258 = arith.subf %254, %257 : vector<2x8x16xf32>
    %259 = math.exp %258 : vector<2x8x16xf32>
    %cst_107 = arith.constant dense<0.000000e+00> : vector<2x8xf32>
    %260 = vector.multi_reduction <add>, %259, %cst_107 [2] : vector<2x8x16xf32> to vector<2x8xf32>
    %261 = vector.shape_cast %260 : vector<2x8xf32> to vector<2x8x1xf32>
    %262 = tpu.reciprocal %261 {approx = true} : vector<2x8x1xf32> -> vector<2x8x1xf32>
    %263 = vector.broadcast %262 : vector<2x8x1xf32> to vector<2x8x16xf32>
    %264 = arith.mulf %259, %263 : vector<2x8x16xf32>
    %265 = arith.truncf %264 : vector<2x8x16xf32> to vector<2x8x16xbf16>
    "tpu.trace_start"() <{level = 10 : i32, message = "tqk,tkd->tqd"}> : () -> ()
    %cst_108 = arith.constant dense<0.000000e+00> : vector<2x8x8xf32>
    %266 = tpu.matmul %265, %251, %cst_108 {dimension_numbers = #tpu.dot_dimension_numbers<[2], [1], [1], [2], [0, 0, 0, 1, 1, 2], [0], [0]>} : vector<2x8x16xbf16>, vector<2x16x8xbf16>, vector<2x8x8xf32> -> vector<2x8x8xf32>
    "tpu.trace_stop"() : () -> ()
    %267 = tpu.concatenate %203, %224, %245, %266 in 2 : vector<2x8x8xf32>, vector<2x8x8xf32>, vector<2x8x8xf32>, vector<2x8x8xf32> -> vector<2x8x32xf32>
    %268 = vector.shape_cast %267 : vector<2x8x32xf32> to vector<16x32xf32>
    %269 = arith.truncf %268 : vector<16x32xf32> to vector<16x32xbf16>
    %cst_109 = arith.constant dense<0.000000e+00> : vector<16x32xf32>
    %270 = tpu.matmul %269, %165, %cst_109 {dimension_numbers = #tpu.dot_dimension_numbers<[1], [0], [0], [1], [0, 0, 1, 1], [], []>} : vector<16x32xbf16>, vector<32x32xbf16>, vector<16x32xf32> -> vector<16x32xf32>
    %271 = vector.broadcast %167 : vector<1x32xf32> to vector<16x32xf32>
    %272 = arith.addf %270, %271 : vector<16x32xf32>
    %273 = arith.addf %151, %272 : vector<16x32xf32>
    %c0_110 = arith.constant 0 : index
    %c0_111 = arith.constant 0 : index
    %c0_112 = arith.constant 0 : index
    %274 = vector.load %arg25[%c0_110, %c0_111, %c0_112] : memref<2x1x32xf32, #tpu.memory_space<vmem>>, vector<1x1x32xf32>
    %275 = vector.shape_cast %274 : vector<1x1x32xf32> to vector<1x32xf32>
    %c0_113 = arith.constant 0 : index
    %c0_114 = arith.constant 0 : index
    %c0_115 = arith.constant 0 : index
    %276 = vector.load %arg26[%c0_113, %c0_114, %c0_115] : memref<2x1x32xf32, #tpu.memory_space<vmem>>, vector<1x1x32xf32>
    %277 = vector.shape_cast %276 : vector<1x1x32xf32> to vector<1x32xf32>
    %cst_116 = arith.constant dense<0.000000e+00> : vector<16xf32>
    %278 = vector.multi_reduction <add>, %273, %cst_116 [1] : vector<16x32xf32> to vector<16xf32>
    %279 = vector.shape_cast %278 : vector<16xf32> to vector<16x1xf32>
    %cst_117 = arith.constant 3.200000e+01 : f32
    %280 = vector.broadcast %cst_117 : f32 to vector<16x1xf32>
    %281 = arith.divf %279, %280 : vector<16x1xf32>
    %282 = vector.broadcast %281 : vector<16x1xf32> to vector<16x32xf32>
    %283 = arith.subf %273, %282 : vector<16x32xf32>
    %284 = arith.mulf %283, %283 : vector<16x32xf32>
    %cst_118 = arith.constant dense<0.000000e+00> : vector<16xf32>
    %285 = vector.multi_reduction <add>, %284, %cst_118 [1] : vector<16x32xf32> to vector<16xf32>
    %286 = vector.shape_cast %285 : vector<16xf32> to vector<16x1xf32>
    %cst_119 = arith.constant 3.200000e+01 : f32
    %287 = vector.broadcast %cst_119 : f32 to vector<16x1xf32>
    %288 = arith.divf %286, %287 : vector<16x1xf32>
    %289 = vector.broadcast %281 : vector<16x1xf32> to vector<16x32xf32>
    %290 = arith.subf %273, %289 : vector<16x32xf32>
    %cst_120 = arith.constant 9.99999974E-6 : f32
    %291 = vector.broadcast %cst_120 : f32 to vector<16x1xf32>
    %292 = arith.addf %288, %291 : vector<16x1xf32>
    %293 = math.rsqrt %292 : vector<16x1xf32>
    %294 = vector.broadcast %293 : vector<16x1xf32> to vector<16x32xf32>
    %295 = arith.mulf %290, %294 : vector<16x32xf32>
    %296 = vector.broadcast %275 : vector<1x32xf32> to vector<16x32xf32>
    %297 = arith.mulf %295, %296 : vector<16x32xf32>
    %298 = vector.broadcast %277 : vector<1x32xf32> to vector<16x32xf32>
    %299 = arith.addf %297, %298 : vector<16x32xf32>
    %c0_121 = arith.constant 0 : index
    %c0_122 = arith.constant 0 : index
    %c0_123 = arith.constant 0 : index
    %300 = vector.load %arg19[%c0_121, %c0_122, %c0_123] : memref<2x32x64xbf16, #tpu.memory_space<vmem>>, vector<1x32x64xbf16>
    %301 = vector.shape_cast %300 : vector<1x32x64xbf16> to vector<32x64xbf16>
    %302 = arith.truncf %299 : vector<16x32xf32> to vector<16x32xbf16>
    %cst_124 = arith.constant dense<0.000000e+00> : vector<16x64xf32>
    %303 = tpu.matmul %302, %301, %cst_124 {dimension_numbers = #tpu.dot_dimension_numbers<[1], [0], [0], [1], [0, 0, 1, 1], [], []>} : vector<16x32xbf16>, vector<32x64xbf16>, vector<16x64xf32> -> vector<16x64xf32>
    %c0_125 = arith.constant 0 : index
    %c0_126 = arith.constant 0 : index
    %c0_127 = arith.constant 0 : index
    %304 = vector.load %arg20[%c0_125, %c0_126, %c0_127] : memref<2x1x64xf32, #tpu.memory_space<vmem>>, vector<1x1x64xf32>
    %305 = vector.shape_cast %304 : vector<1x1x64xf32> to vector<1x64xf32>
    %306 = vector.broadcast %305 : vector<1x64xf32> to vector<16x64xf32>
    %307 = arith.addf %303, %306 : vector<16x64xf32>
    %cst_128 = arith.constant 0.000000e+00 : f32
    %308 = vector.broadcast %cst_128 : f32 to vector<16x64xf32>
    %309 = arith.maximumf %307, %308 : vector<16x64xf32>
    %c0_129 = arith.constant 0 : index
    %c0_130 = arith.constant 0 : index
    %c0_131 = arith.constant 0 : index
    %310 = vector.load %arg21[%c0_129, %c0_130, %c0_131] : memref<2x64x32xbf16, #tpu.memory_space<vmem>>, vector<1x64x32xbf16>
    %311 = vector.shape_cast %310 : vector<1x64x32xbf16> to vector<64x32xbf16>
    %312 = arith.truncf %309 : vector<16x64xf32> to vector<16x64xbf16>
    %cst_132 = arith.constant dense<0.000000e+00> : vector<16x32xf32>
    %313 = tpu.matmul %312, %311, %cst_132 {dimension_numbers = #tpu.dot_dimension_numbers<[1], [0], [0], [1], [0, 0, 1, 1], [], []>} : vector<16x64xbf16>, vector<64x32xbf16>, vector<16x32xf32> -> vector<16x32xf32>
    %c0_133 = arith.constant 0 : index
    %c0_134 = arith.constant 0 : index
    %c0_135 = arith.constant 0 : index
    %314 = vector.load %arg22[%c0_133, %c0_134, %c0_135] : memref<2x1x32xf32, #tpu.memory_space<vmem>>, vector<1x1x32xf32>
    %315 = vector.shape_cast %314 : vector<1x1x32xf32> to vector<1x32xf32>
    %316 = vector.broadcast %315 : vector<1x32xf32> to vector<16x32xf32>
    %317 = arith.addf %313, %316 : vector<16x32xf32>
    %318 = arith.addf %299, %317 : vector<16x32xf32>
    %c0_136 = arith.constant 0 : index
    %c0_137 = arith.constant 0 : index
    %c0_138 = arith.constant 0 : index
    %319 = vector.load %arg27[%c0_136, %c0_137, %c0_138] : memref<2x1x32xf32, #tpu.memory_space<vmem>>, vector<1x1x32xf32>
    %320 = vector.shape_cast %319 : vector<1x1x32xf32> to vector<1x32xf32>
    %c0_139 = arith.constant 0 : index
    %c0_140 = arith.constant 0 : index
    %c0_141 = arith.constant 0 : index
    %321 = vector.load %arg28[%c0_139, %c0_140, %c0_141] : memref<2x1x32xf32, #tpu.memory_space<vmem>>, vector<1x1x32xf32>
    %322 = vector.shape_cast %321 : vector<1x1x32xf32> to vector<1x32xf32>
    %cst_142 = arith.constant dense<0.000000e+00> : vector<16xf32>
    %323 = vector.multi_reduction <add>, %318, %cst_142 [1] : vector<16x32xf32> to vector<16xf32>
    %324 = vector.shape_cast %323 : vector<16xf32> to vector<16x1xf32>
    %cst_143 = arith.constant 3.200000e+01 : f32
    %325 = vector.broadcast %cst_143 : f32 to vector<16x1xf32>
    %326 = arith.divf %324, %325 : vector<16x1xf32>
    %327 = vector.broadcast %326 : vector<16x1xf32> to vector<16x32xf32>
    %328 = arith.subf %318, %327 : vector<16x32xf32>
    %329 = arith.mulf %328, %328 : vector<16x32xf32>
    %cst_144 = arith.constant dense<0.000000e+00> : vector<16xf32>
    %330 = vector.multi_reduction <add>, %329, %cst_144 [1] : vector<16x32xf32> to vector<16xf32>
    %331 = vector.shape_cast %330 : vector<16xf32> to vector<16x1xf32>
    %cst_145 = arith.constant 3.200000e+01 : f32
    %332 = vector.broadcast %cst_145 : f32 to vector<16x1xf32>
    %333 = arith.divf %331, %332 : vector<16x1xf32>
    %334 = vector.broadcast %326 : vector<16x1xf32> to vector<16x32xf32>
    %335 = arith.subf %318, %334 : vector<16x32xf32>
    %cst_146 = arith.constant 9.99999974E-6 : f32
    %336 = vector.broadcast %cst_146 : f32 to vector<16x1xf32>
    %337 = arith.addf %333, %336 : vector<16x1xf32>
    %338 = math.rsqrt %337 : vector<16x1xf32>
    %339 = vector.broadcast %338 : vector<16x1xf32> to vector<16x32xf32>
    %340 = arith.mulf %335, %339 : vector<16x32xf32>
    %341 = vector.broadcast %320 : vector<1x32xf32> to vector<16x32xf32>
    %342 = arith.mulf %340, %341 : vector<16x32xf32>
    %343 = vector.broadcast %322 : vector<1x32xf32> to vector<16x32xf32>
    %344 = arith.addf %342, %343 : vector<16x32xf32>
    %c1 = arith.constant 1 : index
    %c0_147 = arith.constant 0 : index
    %c0_148 = arith.constant 0 : index
    %345 = vector.load %arg3[%c1, %c0_147, %c0_148] : memref<2x32x32xbf16, #tpu.memory_space<vmem>>, vector<1x32x32xbf16>
    %346 = vector.shape_cast %345 : vector<1x32x32xbf16> to vector<32x32xbf16>
    %c1_149 = arith.constant 1 : index
    %c0_150 = arith.constant 0 : index
    %c0_151 = arith.constant 0 : index
    %347 = vector.load %arg6[%c1_149, %c0_150, %c0_151] : memref<2x1x32xf32, #tpu.memory_space<vmem>>, vector<1x1x32xf32>
    %348 = vector.shape_cast %347 : vector<1x1x32xf32> to vector<1x32xf32>
    %c1_152 = arith.constant 1 : index
    %c0_153 = arith.constant 0 : index
    %c0_154 = arith.constant 0 : index
    %349 = vector.load %arg4[%c1_152, %c0_153, %c0_154] : memref<2x32x32xbf16, #tpu.memory_space<vmem>>, vector<1x32x32xbf16>
    %350 = vector.shape_cast %349 : vector<1x32x32xbf16> to vector<32x32xbf16>
    %c1_155 = arith.constant 1 : index
    %c0_156 = arith.constant 0 : index
    %c0_157 = arith.constant 0 : index
    %351 = vector.load %arg7[%c1_155, %c0_156, %c0_157] : memref<2x1x32xf32, #tpu.memory_space<vmem>>, vector<1x1x32xf32>
    %352 = vector.shape_cast %351 : vector<1x1x32xf32> to vector<1x32xf32>
    %c1_158 = arith.constant 1 : index
    %c0_159 = arith.constant 0 : index
    %c0_160 = arith.constant 0 : index
    %353 = vector.load %arg5[%c1_158, %c0_159, %c0_160] : memref<2x32x32xbf16, #tpu.memory_space<vmem>>, vector<1x32x32xbf16>
    %354 = vector.shape_cast %353 : vector<1x32x32xbf16> to vector<32x32xbf16>
    %c1_161 = arith.constant 1 : index
    %c0_162 = arith.constant 0 : index
    %c0_163 = arith.constant 0 : index
    %355 = vector.load %arg8[%c1_161, %c0_162, %c0_163] : memref<2x1x32xf32, #tpu.memory_space<vmem>>, vector<1x1x32xf32>
    %356 = vector.shape_cast %355 : vector<1x1x32xf32> to vector<1x32xf32>
    %c1_164 = arith.constant 1 : index
    %c0_165 = arith.constant 0 : index
    %c0_166 = arith.constant 0 : index
    %357 = vector.load %arg9[%c1_164, %c0_165, %c0_166] : memref<2x32x32xbf16, #tpu.memory_space<vmem>>, vector<1x32x32xbf16>
    %358 = vector.shape_cast %357 : vector<1x32x32xbf16> to vector<32x32xbf16>
    %c1_167 = arith.constant 1 : index
    %c0_168 = arith.constant 0 : index
    %c0_169 = arith.constant 0 : index
    %359 = vector.load %arg10[%c1_167, %c0_168, %c0_169] : memref<2x1x32xf32, #tpu.memory_space<vmem>>, vector<1x1x32xf32>
    %360 = vector.shape_cast %359 : vector<1x1x32xf32> to vector<1x32xf32>
    %361 = arith.truncf %344 : vector<16x32xf32> to vector<16x32xbf16>
    %cst_170 = arith.constant dense<0.000000e+00> : vector<16x32xf32>
    %362 = tpu.matmul %361, %346, %cst_170 {dimension_numbers = #tpu.dot_dimension_numbers<[1], [0], [0], [1], [0, 0, 1, 1], [], []>} : vector<16x32xbf16>, vector<32x32xbf16>, vector<16x32xf32> -> vector<16x32xf32>
    %363 = vector.broadcast %348 : vector<1x32xf32> to vector<16x32xf32>
    %364 = arith.addf %362, %363 : vector<16x32xf32>
    %365 = vector.shape_cast %364 : vector<16x32xf32> to vector<2x8x32xf32>
    %366 = arith.truncf %344 : vector<16x32xf32> to vector<16x32xbf16>
    %cst_171 = arith.constant dense<0.000000e+00> : vector<16x32xf32>
    %367 = tpu.matmul %366, %350, %cst_171 {dimension_numbers = #tpu.dot_dimension_numbers<[1], [0], [0], [1], [0, 0, 1, 1], [], []>} : vector<16x32xbf16>, vector<32x32xbf16>, vector<16x32xf32> -> vector<16x32xf32>
    %368 = vector.broadcast %352 : vector<1x32xf32> to vector<16x32xf32>
    %369 = arith.addf %367, %368 : vector<16x32xf32>
    %370 = vector.shape_cast %369 : vector<16x32xf32> to vector<2x8x32xf32>
    %371 = arith.truncf %344 : vector<16x32xf32> to vector<16x32xbf16>
    %cst_172 = arith.constant dense<0.000000e+00> : vector<16x32xf32>
    %372 = tpu.matmul %371, %354, %cst_172 {dimension_numbers = #tpu.dot_dimension_numbers<[1], [0], [0], [1], [0, 0, 1, 1], [], []>} : vector<16x32xbf16>, vector<32x32xbf16>, vector<16x32xf32> -> vector<16x32xf32>
    %373 = vector.broadcast %356 : vector<1x32xf32> to vector<16x32xf32>
    %374 = arith.addf %372, %373 : vector<16x32xf32>
    %375 = vector.shape_cast %374 : vector<16x32xf32> to vector<2x8x32xf32>
    %376 = vector.extract_strided_slice %365 {offsets = [0, 0, 0], sizes = [2, 8, 8], strides = [1, 1, 1]} : vector<2x8x32xf32> to vector<2x8x8xf32>
    %377 = arith.truncf %376 : vector<2x8x8xf32> to vector<2x8x8xbf16>
    %378 = vector.extract_strided_slice %370 {offsets = [0, 0, 0], sizes = [2, 8, 8], strides = [1, 1, 1]} : vector<2x8x32xf32> to vector<2x8x8xf32>
    %379 = arith.truncf %378 : vector<2x8x8xf32> to vector<2x8x8xbf16>
    %380 = vector.extract_strided_slice %375 {offsets = [0, 0, 0], sizes = [2, 8, 8], strides = [1, 1, 1]} : vector<2x8x32xf32> to vector<2x8x8xf32>
    %381 = arith.truncf %380 : vector<2x8x8xf32> to vector<2x8x8xbf16>
    "tpu.trace_start"() <{level = 10 : i32, message = "tqd,tkd->tqk"}> : () -> ()
    %cst_173 = arith.constant dense<0.000000e+00> : vector<2x8x8xf32>
    %382 = tpu.matmul %377, %379, %cst_173 {dimension_numbers = #tpu.dot_dimension_numbers<[2], [2], [1], [1], [0, 0, 0, 1, 1, 1], [0], [0]>} : vector<2x8x8xbf16>, vector<2x8x8xbf16>, vector<2x8x8xf32> -> vector<2x8x8xf32>
    "tpu.trace_stop"() : () -> ()
    %cst_174 = arith.constant 0.353553385 : f32
    %383 = vector.broadcast %cst_174 : f32 to vector<2x8x8xf32>
    %384 = arith.mulf %382, %383 : vector<2x8x8xf32>
    %cst_175 = arith.constant dense<0xFF800000> : vector<2x8xf32>
    %385 = vector.multi_reduction <maximumf>, %384, %cst_175 [2] : vector<2x8x8xf32> to vector<2x8xf32>
    %386 = vector.shape_cast %385 : vector<2x8xf32> to vector<2x8x1xf32>
    %387 = vector.broadcast %386 : vector<2x8x1xf32> to vector<2x8x8xf32>
    %388 = arith.subf %384, %387 : vector<2x8x8xf32>
    %389 = math.exp %388 : vector<2x8x8xf32>
    %cst_176 = arith.constant dense<0.000000e+00> : vector<2x8xf32>
    %390 = vector.multi_reduction <add>, %389, %cst_176 [2] : vector<2x8x8xf32> to vector<2x8xf32>
    %391 = vector.shape_cast %390 : vector<2x8xf32> to vector<2x8x1xf32>
    %392 = tpu.reciprocal %391 {approx = true} : vector<2x8x1xf32> -> vector<2x8x1xf32>
    %393 = vector.broadcast %392 : vector<2x8x1xf32> to vector<2x8x8xf32>
    %394 = arith.mulf %389, %393 : vector<2x8x8xf32>
    %395 = arith.truncf %394 : vector<2x8x8xf32> to vector<2x8x8xbf16>
    "tpu.trace_start"() <{level = 10 : i32, message = "tqk,tkd->tqd"}> : () -> ()
    %cst_177 = arith.constant dense<0.000000e+00> : vector<2x8x8xf32>
    %396 = tpu.matmul %395, %381, %cst_177 {dimension_numbers = #tpu.dot_dimension_numbers<[2], [1], [1], [2], [0, 0, 0, 1, 1, 2], [0], [0]>} : vector<2x8x8xbf16>, vector<2x8x8xbf16>, vector<2x8x8xf32> -> vector<2x8x8xf32>
    "tpu.trace_stop"() : () -> ()
    %397 = vector.extract_strided_slice %365 {offsets = [0, 0, 8], sizes = [2, 8, 8], strides = [1, 1, 1]} : vector<2x8x32xf32> to vector<2x8x8xf32>
    %398 = arith.truncf %397 : vector<2x8x8xf32> to vector<2x8x8xbf16>
    %399 = vector.extract_strided_slice %370 {offsets = [0, 0, 8], sizes = [2, 8, 8], strides = [1, 1, 1]} : vector<2x8x32xf32> to vector<2x8x8xf32>
    %400 = arith.truncf %399 : vector<2x8x8xf32> to vector<2x8x8xbf16>
    %401 = vector.extract_strided_slice %375 {offsets = [0, 0, 8], sizes = [2, 8, 8], strides = [1, 1, 1]} : vector<2x8x32xf32> to vector<2x8x8xf32>
    %402 = arith.truncf %401 : vector<2x8x8xf32> to vector<2x8x8xbf16>
    "tpu.trace_start"() <{level = 10 : i32, message = "tqd,tkd->tqk"}> : () -> ()
    %cst_178 = arith.constant dense<0.000000e+00> : vector<2x8x8xf32>
    %403 = tpu.matmul %398, %400, %cst_178 {dimension_numbers = #tpu.dot_dimension_numbers<[2], [2], [1], [1], [0, 0, 0, 1, 1, 1], [0], [0]>} : vector<2x8x8xbf16>, vector<2x8x8xbf16>, vector<2x8x8xf32> -> vector<2x8x8xf32>
    "tpu.trace_stop"() : () -> ()
    %cst_179 = arith.constant 0.353553385 : f32
    %404 = vector.broadcast %cst_179 : f32 to vector<2x8x8xf32>
    %405 = arith.mulf %403, %404 : vector<2x8x8xf32>
    %cst_180 = arith.constant dense<0xFF800000> : vector<2x8xf32>
    %406 = vector.multi_reduction <maximumf>, %405, %cst_180 [2] : vector<2x8x8xf32> to vector<2x8xf32>
    %407 = vector.shape_cast %406 : vector<2x8xf32> to vector<2x8x1xf32>
    %408 = vector.broadcast %407 : vector<2x8x1xf32> to vector<2x8x8xf32>
    %409 = arith.subf %405, %408 : vector<2x8x8xf32>
    %410 = math.exp %409 : vector<2x8x8xf32>
    %cst_181 = arith.constant dense<0.000000e+00> : vector<2x8xf32>
    %411 = vector.multi_reduction <add>, %410, %cst_181 [2] : vector<2x8x8xf32> to vector<2x8xf32>
    %412 = vector.shape_cast %411 : vector<2x8xf32> to vector<2x8x1xf32>
    %413 = tpu.reciprocal %412 {approx = true} : vector<2x8x1xf32> -> vector<2x8x1xf32>
    %414 = vector.broadcast %413 : vector<2x8x1xf32> to vector<2x8x8xf32>
    %415 = arith.mulf %410, %414 : vector<2x8x8xf32>
    %416 = arith.truncf %415 : vector<2x8x8xf32> to vector<2x8x8xbf16>
    "tpu.trace_start"() <{level = 10 : i32, message = "tqk,tkd->tqd"}> : () -> ()
    %cst_182 = arith.constant dense<0.000000e+00> : vector<2x8x8xf32>
    %417 = tpu.matmul %416, %402, %cst_182 {dimension_numbers = #tpu.dot_dimension_numbers<[2], [1], [1], [2], [0, 0, 0, 1, 1, 2], [0], [0]>} : vector<2x8x8xbf16>, vector<2x8x8xbf16>, vector<2x8x8xf32> -> vector<2x8x8xf32>
    "tpu.trace_stop"() : () -> ()
    %418 = vector.extract_strided_slice %365 {offsets = [0, 0, 16], sizes = [2, 8, 8], strides = [1, 1, 1]} : vector<2x8x32xf32> to vector<2x8x8xf32>
    %419 = arith.truncf %418 : vector<2x8x8xf32> to vector<2x8x8xbf16>
    %420 = vector.extract_strided_slice %370 {offsets = [0, 0, 16], sizes = [2, 8, 8], strides = [1, 1, 1]} : vector<2x8x32xf32> to vector<2x8x8xf32>
    %421 = arith.truncf %420 : vector<2x8x8xf32> to vector<2x8x8xbf16>
    %422 = vector.extract_strided_slice %375 {offsets = [0, 0, 16], sizes = [2, 8, 8], strides = [1, 1, 1]} : vector<2x8x32xf32> to vector<2x8x8xf32>
    %423 = arith.truncf %422 : vector<2x8x8xf32> to vector<2x8x8xbf16>
    "tpu.trace_start"() <{level = 10 : i32, message = "tqd,tkd->tqk"}> : () -> ()
    %cst_183 = arith.constant dense<0.000000e+00> : vector<2x8x8xf32>
    %424 = tpu.matmul %419, %421, %cst_183 {dimension_numbers = #tpu.dot_dimension_numbers<[2], [2], [1], [1], [0, 0, 0, 1, 1, 1], [0], [0]>} : vector<2x8x8xbf16>, vector<2x8x8xbf16>, vector<2x8x8xf32> -> vector<2x8x8xf32>
    "tpu.trace_stop"() : () -> ()
    %cst_184 = arith.constant 0.353553385 : f32
    %425 = vector.broadcast %cst_184 : f32 to vector<2x8x8xf32>
    %426 = arith.mulf %424, %425 : vector<2x8x8xf32>
    %cst_185 = arith.constant dense<0xFF800000> : vector<2x8xf32>
    %427 = vector.multi_reduction <maximumf>, %426, %cst_185 [2] : vector<2x8x8xf32> to vector<2x8xf32>
    %428 = vector.shape_cast %427 : vector<2x8xf32> to vector<2x8x1xf32>
    %429 = vector.broadcast %428 : vector<2x8x1xf32> to vector<2x8x8xf32>
    %430 = arith.subf %426, %429 : vector<2x8x8xf32>
    %431 = math.exp %430 : vector<2x8x8xf32>
    %cst_186 = arith.constant dense<0.000000e+00> : vector<2x8xf32>
    %432 = vector.multi_reduction <add>, %431, %cst_186 [2] : vector<2x8x8xf32> to vector<2x8xf32>
    %433 = vector.shape_cast %432 : vector<2x8xf32> to vector<2x8x1xf32>
    %434 = tpu.reciprocal %433 {approx = true} : vector<2x8x1xf32> -> vector<2x8x1xf32>
    %435 = vector.broadcast %434 : vector<2x8x1xf32> to vector<2x8x8xf32>
    %436 = arith.mulf %431, %435 : vector<2x8x8xf32>
    %437 = arith.truncf %436 : vector<2x8x8xf32> to vector<2x8x8xbf16>
    "tpu.trace_start"() <{level = 10 : i32, message = "tqk,tkd->tqd"}> : () -> ()
    %cst_187 = arith.constant dense<0.000000e+00> : vector<2x8x8xf32>
    %438 = tpu.matmul %437, %423, %cst_187 {dimension_numbers = #tpu.dot_dimension_numbers<[2], [1], [1], [2], [0, 0, 0, 1, 1, 2], [0], [0]>} : vector<2x8x8xbf16>, vector<2x8x8xbf16>, vector<2x8x8xf32> -> vector<2x8x8xf32>
    "tpu.trace_stop"() : () -> ()
    %439 = vector.extract_strided_slice %365 {offsets = [0, 0, 24], sizes = [2, 8, 8], strides = [1, 1, 1]} : vector<2x8x32xf32> to vector<2x8x8xf32>
    %440 = arith.truncf %439 : vector<2x8x8xf32> to vector<2x8x8xbf16>
    %441 = vector.extract_strided_slice %370 {offsets = [0, 0, 24], sizes = [2, 8, 8], strides = [1, 1, 1]} : vector<2x8x32xf32> to vector<2x8x8xf32>
    %442 = arith.truncf %441 : vector<2x8x8xf32> to vector<2x8x8xbf16>
    %443 = vector.extract_strided_slice %375 {offsets = [0, 0, 24], sizes = [2, 8, 8], strides = [1, 1, 1]} : vector<2x8x32xf32> to vector<2x8x8xf32>
    %444 = arith.truncf %443 : vector<2x8x8xf32> to vector<2x8x8xbf16>
    "tpu.trace_start"() <{level = 10 : i32, message = "tqd,tkd->tqk"}> : () -> ()
    %cst_188 = arith.constant dense<0.000000e+00> : vector<2x8x8xf32>
    %445 = tpu.matmul %440, %442, %cst_188 {dimension_numbers = #tpu.dot_dimension_numbers<[2], [2], [1], [1], [0, 0, 0, 1, 1, 1], [0], [0]>} : vector<2x8x8xbf16>, vector<2x8x8xbf16>, vector<2x8x8xf32> -> vector<2x8x8xf32>
    "tpu.trace_stop"() : () -> ()
    %cst_189 = arith.constant 0.353553385 : f32
    %446 = vector.broadcast %cst_189 : f32 to vector<2x8x8xf32>
    %447 = arith.mulf %445, %446 : vector<2x8x8xf32>
    %cst_190 = arith.constant dense<0xFF800000> : vector<2x8xf32>
    %448 = vector.multi_reduction <maximumf>, %447, %cst_190 [2] : vector<2x8x8xf32> to vector<2x8xf32>
    %449 = vector.shape_cast %448 : vector<2x8xf32> to vector<2x8x1xf32>
    %450 = vector.broadcast %449 : vector<2x8x1xf32> to vector<2x8x8xf32>
    %451 = arith.subf %447, %450 : vector<2x8x8xf32>
    %452 = math.exp %451 : vector<2x8x8xf32>
    %cst_191 = arith.constant dense<0.000000e+00> : vector<2x8xf32>
    %453 = vector.multi_reduction <add>, %452, %cst_191 [2] : vector<2x8x8xf32> to vector<2x8xf32>
    %454 = vector.shape_cast %453 : vector<2x8xf32> to vector<2x8x1xf32>
    %455 = tpu.reciprocal %454 {approx = true} : vector<2x8x1xf32> -> vector<2x8x1xf32>
    %456 = vector.broadcast %455 : vector<2x8x1xf32> to vector<2x8x8xf32>
    %457 = arith.mulf %452, %456 : vector<2x8x8xf32>
    %458 = arith.truncf %457 : vector<2x8x8xf32> to vector<2x8x8xbf16>
    "tpu.trace_start"() <{level = 10 : i32, message = "tqk,tkd->tqd"}> : () -> ()
    %cst_192 = arith.constant dense<0.000000e+00> : vector<2x8x8xf32>
    %459 = tpu.matmul %458, %444, %cst_192 {dimension_numbers = #tpu.dot_dimension_numbers<[2], [1], [1], [2], [0, 0, 0, 1, 1, 2], [0], [0]>} : vector<2x8x8xbf16>, vector<2x8x8xbf16>, vector<2x8x8xf32> -> vector<2x8x8xf32>
    "tpu.trace_stop"() : () -> ()
    %460 = tpu.concatenate %396, %417, %438, %459 in 2 : vector<2x8x8xf32>, vector<2x8x8xf32>, vector<2x8x8xf32>, vector<2x8x8xf32> -> vector<2x8x32xf32>
    %461 = vector.shape_cast %460 : vector<2x8x32xf32> to vector<16x32xf32>
    %462 = arith.truncf %461 : vector<16x32xf32> to vector<16x32xbf16>
    %cst_193 = arith.constant dense<0.000000e+00> : vector<16x32xf32>
    %463 = tpu.matmul %462, %358, %cst_193 {dimension_numbers = #tpu.dot_dimension_numbers<[1], [0], [0], [1], [0, 0, 1, 1], [], []>} : vector<16x32xbf16>, vector<32x32xbf16>, vector<16x32xf32> -> vector<16x32xf32>
    %464 = vector.broadcast %360 : vector<1x32xf32> to vector<16x32xf32>
    %465 = arith.addf %463, %464 : vector<16x32xf32>
    %466 = arith.addf %344, %465 : vector<16x32xf32>
    %c1_194 = arith.constant 1 : index
    %c0_195 = arith.constant 0 : index
    %c0_196 = arith.constant 0 : index
    %467 = vector.load %arg23[%c1_194, %c0_195, %c0_196] : memref<2x1x32xf32, #tpu.memory_space<vmem>>, vector<1x1x32xf32>
    %468 = vector.shape_cast %467 : vector<1x1x32xf32> to vector<1x32xf32>
    %c1_197 = arith.constant 1 : index
    %c0_198 = arith.constant 0 : index
    %c0_199 = arith.constant 0 : index
    %469 = vector.load %arg24[%c1_197, %c0_198, %c0_199] : memref<2x1x32xf32, #tpu.memory_space<vmem>>, vector<1x1x32xf32>
    %470 = vector.shape_cast %469 : vector<1x1x32xf32> to vector<1x32xf32>
    %cst_200 = arith.constant dense<0.000000e+00> : vector<16xf32>
    %471 = vector.multi_reduction <add>, %466, %cst_200 [1] : vector<16x32xf32> to vector<16xf32>
    %472 = vector.shape_cast %471 : vector<16xf32> to vector<16x1xf32>
    %cst_201 = arith.constant 3.200000e+01 : f32
    %473 = vector.broadcast %cst_201 : f32 to vector<16x1xf32>
    %474 = arith.divf %472, %473 : vector<16x1xf32>
    %475 = vector.broadcast %474 : vector<16x1xf32> to vector<16x32xf32>
    %476 = arith.subf %466, %475 : vector<16x32xf32>
    %477 = arith.mulf %476, %476 : vector<16x32xf32>
    %cst_202 = arith.constant dense<0.000000e+00> : vector<16xf32>
    %478 = vector.multi_reduction <add>, %477, %cst_202 [1] : vector<16x32xf32> to vector<16xf32>
    %479 = vector.shape_cast %478 : vector<16xf32> to vector<16x1xf32>
    %cst_203 = arith.constant 3.200000e+01 : f32
    %480 = vector.broadcast %cst_203 : f32 to vector<16x1xf32>
    %481 = arith.divf %479, %480 : vector<16x1xf32>
    %482 = vector.broadcast %474 : vector<16x1xf32> to vector<16x32xf32>
    %483 = arith.subf %466, %482 : vector<16x32xf32>
    %cst_204 = arith.constant 9.99999974E-6 : f32
    %484 = vector.broadcast %cst_204 : f32 to vector<16x1xf32>
    %485 = arith.addf %481, %484 : vector<16x1xf32>
    %486 = math.rsqrt %485 : vector<16x1xf32>
    %487 = vector.broadcast %486 : vector<16x1xf32> to vector<16x32xf32>
    %488 = arith.mulf %483, %487 : vector<16x32xf32>
    %489 = vector.broadcast %468 : vector<1x32xf32> to vector<16x32xf32>
    %490 = arith.mulf %488, %489 : vector<16x32xf32>
    %491 = vector.broadcast %470 : vector<1x32xf32> to vector<16x32xf32>
    %492 = arith.addf %490, %491 : vector<16x32xf32>
    %c1_205 = arith.constant 1 : index
    %c0_206 = arith.constant 0 : index
    %c0_207 = arith.constant 0 : index
    %493 = vector.load %arg11[%c1_205, %c0_206, %c0_207] : memref<2x32x32xbf16, #tpu.memory_space<vmem>>, vector<1x32x32xbf16>
    %494 = vector.shape_cast %493 : vector<1x32x32xbf16> to vector<32x32xbf16>
    %c1_208 = arith.constant 1 : index
    %c0_209 = arith.constant 0 : index
    %c0_210 = arith.constant 0 : index
    %495 = vector.load %arg14[%c1_208, %c0_209, %c0_210] : memref<2x1x32xf32, #tpu.memory_space<vmem>>, vector<1x1x32xf32>
    %496 = vector.shape_cast %495 : vector<1x1x32xf32> to vector<1x32xf32>
    %c1_211 = arith.constant 1 : index
    %c0_212 = arith.constant 0 : index
    %c0_213 = arith.constant 0 : index
    %497 = vector.load %arg12[%c1_211, %c0_212, %c0_213] : memref<2x32x32xbf16, #tpu.memory_space<vmem>>, vector<1x32x32xbf16>
    %498 = vector.shape_cast %497 : vector<1x32x32xbf16> to vector<32x32xbf16>
    %c1_214 = arith.constant 1 : index
    %c0_215 = arith.constant 0 : index
    %c0_216 = arith.constant 0 : index
    %499 = vector.load %arg15[%c1_214, %c0_215, %c0_216] : memref<2x1x32xf32, #tpu.memory_space<vmem>>, vector<1x1x32xf32>
    %500 = vector.shape_cast %499 : vector<1x1x32xf32> to vector<1x32xf32>
    %c1_217 = arith.constant 1 : index
    %c0_218 = arith.constant 0 : index
    %c0_219 = arith.constant 0 : index
    %501 = vector.load %arg13[%c1_217, %c0_218, %c0_219] : memref<2x32x32xbf16, #tpu.memory_space<vmem>>, vector<1x32x32xbf16>
    %502 = vector.shape_cast %501 : vector<1x32x32xbf16> to vector<32x32xbf16>
    %c1_220 = arith.constant 1 : index
    %c0_221 = arith.constant 0 : index
    %c0_222 = arith.constant 0 : index
    %503 = vector.load %arg16[%c1_220, %c0_221, %c0_222] : memref<2x1x32xf32, #tpu.memory_space<vmem>>, vector<1x1x32xf32>
    %504 = vector.shape_cast %503 : vector<1x1x32xf32> to vector<1x32xf32>
    %c1_223 = arith.constant 1 : index
    %c0_224 = arith.constant 0 : index
    %c0_225 = arith.constant 0 : index
    %505 = vector.load %arg17[%c1_223, %c0_224, %c0_225] : memref<2x32x32xbf16, #tpu.memory_space<vmem>>, vector<1x32x32xbf16>
    %506 = vector.shape_cast %505 : vector<1x32x32xbf16> to vector<32x32xbf16>
    %c1_226 = arith.constant 1 : index
    %c0_227 = arith.constant 0 : index
    %c0_228 = arith.constant 0 : index
    %507 = vector.load %arg18[%c1_226, %c0_227, %c0_228] : memref<2x1x32xf32, #tpu.memory_space<vmem>>, vector<1x1x32xf32>
    %508 = vector.shape_cast %507 : vector<1x1x32xf32> to vector<1x32xf32>
    %509 = arith.truncf %492 : vector<16x32xf32> to vector<16x32xbf16>
    %cst_229 = arith.constant dense<0.000000e+00> : vector<16x32xf32>
    %510 = tpu.matmul %509, %494, %cst_229 {dimension_numbers = #tpu.dot_dimension_numbers<[1], [0], [0], [1], [0, 0, 1, 1], [], []>} : vector<16x32xbf16>, vector<32x32xbf16>, vector<16x32xf32> -> vector<16x32xf32>
    %511 = vector.broadcast %496 : vector<1x32xf32> to vector<16x32xf32>
    %512 = arith.addf %510, %511 : vector<16x32xf32>
    %513 = vector.shape_cast %512 : vector<16x32xf32> to vector<2x8x32xf32>
    %514 = arith.truncf %1 : vector<32x32xf32> to vector<32x32xbf16>
    %cst_230 = arith.constant dense<0.000000e+00> : vector<32x32xf32>
    %515 = tpu.matmul %514, %498, %cst_230 {dimension_numbers = #tpu.dot_dimension_numbers<[1], [0], [0], [1], [0, 0, 1, 1], [], []>} : vector<32x32xbf16>, vector<32x32xbf16>, vector<32x32xf32> -> vector<32x32xf32>
    %516 = vector.broadcast %500 : vector<1x32xf32> to vector<32x32xf32>
    %517 = arith.addf %515, %516 : vector<32x32xf32>
    %518 = vector.shape_cast %517 : vector<32x32xf32> to vector<2x16x32xf32>
    %519 = arith.truncf %1 : vector<32x32xf32> to vector<32x32xbf16>
    %cst_231 = arith.constant dense<0.000000e+00> : vector<32x32xf32>
    %520 = tpu.matmul %519, %502, %cst_231 {dimension_numbers = #tpu.dot_dimension_numbers<[1], [0], [0], [1], [0, 0, 1, 1], [], []>} : vector<32x32xbf16>, vector<32x32xbf16>, vector<32x32xf32> -> vector<32x32xf32>
    %521 = vector.broadcast %504 : vector<1x32xf32> to vector<32x32xf32>
    %522 = arith.addf %520, %521 : vector<32x32xf32>
    %523 = vector.shape_cast %522 : vector<32x32xf32> to vector<2x16x32xf32>
    %524 = vector.extract_strided_slice %513 {offsets = [0, 0, 0], sizes = [2, 8, 8], strides = [1, 1, 1]} : vector<2x8x32xf32> to vector<2x8x8xf32>
    %525 = arith.truncf %524 : vector<2x8x8xf32> to vector<2x8x8xbf16>
    %526 = vector.extract_strided_slice %518 {offsets = [0, 0, 0], sizes = [2, 16, 8], strides = [1, 1, 1]} : vector<2x16x32xf32> to vector<2x16x8xf32>
    %527 = arith.truncf %526 : vector<2x16x8xf32> to vector<2x16x8xbf16>
    %528 = vector.extract_strided_slice %523 {offsets = [0, 0, 0], sizes = [2, 16, 8], strides = [1, 1, 1]} : vector<2x16x32xf32> to vector<2x16x8xf32>
    %529 = arith.truncf %528 : vector<2x16x8xf32> to vector<2x16x8xbf16>
    "tpu.trace_start"() <{level = 10 : i32, message = "tqd,tkd->tqk"}> : () -> ()
    %cst_232 = arith.constant dense<0.000000e+00> : vector<2x8x16xf32>
    %530 = tpu.matmul %525, %527, %cst_232 {dimension_numbers = #tpu.dot_dimension_numbers<[2], [2], [1], [1], [0, 0, 0, 1, 1, 1], [0], [0]>} : vector<2x8x8xbf16>, vector<2x16x8xbf16>, vector<2x8x16xf32> -> vector<2x8x16xf32>
    "tpu.trace_stop"() : () -> ()
    %cst_233 = arith.constant 0.353553385 : f32
    %531 = vector.broadcast %cst_233 : f32 to vector<2x8x16xf32>
    %532 = arith.mulf %530, %531 : vector<2x8x16xf32>
    %cst_234 = arith.constant dense<0xFF800000> : vector<2x8xf32>
    %533 = vector.multi_reduction <maximumf>, %532, %cst_234 [2] : vector<2x8x16xf32> to vector<2x8xf32>
    %534 = vector.shape_cast %533 : vector<2x8xf32> to vector<2x8x1xf32>
    %535 = vector.broadcast %534 : vector<2x8x1xf32> to vector<2x8x16xf32>
    %536 = arith.subf %532, %535 : vector<2x8x16xf32>
    %537 = math.exp %536 : vector<2x8x16xf32>
    %cst_235 = arith.constant dense<0.000000e+00> : vector<2x8xf32>
    %538 = vector.multi_reduction <add>, %537, %cst_235 [2] : vector<2x8x16xf32> to vector<2x8xf32>
    %539 = vector.shape_cast %538 : vector<2x8xf32> to vector<2x8x1xf32>
    %540 = tpu.reciprocal %539 {approx = true} : vector<2x8x1xf32> -> vector<2x8x1xf32>
    %541 = vector.broadcast %540 : vector<2x8x1xf32> to vector<2x8x16xf32>
    %542 = arith.mulf %537, %541 : vector<2x8x16xf32>
    %543 = arith.truncf %542 : vector<2x8x16xf32> to vector<2x8x16xbf16>
    "tpu.trace_start"() <{level = 10 : i32, message = "tqk,tkd->tqd"}> : () -> ()
    %cst_236 = arith.constant dense<0.000000e+00> : vector<2x8x8xf32>
    %544 = tpu.matmul %543, %529, %cst_236 {dimension_numbers = #tpu.dot_dimension_numbers<[2], [1], [1], [2], [0, 0, 0, 1, 1, 2], [0], [0]>} : vector<2x8x16xbf16>, vector<2x16x8xbf16>, vector<2x8x8xf32> -> vector<2x8x8xf32>
    "tpu.trace_stop"() : () -> ()
    %545 = vector.extract_strided_slice %513 {offsets = [0, 0, 8], sizes = [2, 8, 8], strides = [1, 1, 1]} : vector<2x8x32xf32> to vector<2x8x8xf32>
    %546 = arith.truncf %545 : vector<2x8x8xf32> to vector<2x8x8xbf16>
    %547 = vector.extract_strided_slice %518 {offsets = [0, 0, 8], sizes = [2, 16, 8], strides = [1, 1, 1]} : vector<2x16x32xf32> to vector<2x16x8xf32>
    %548 = arith.truncf %547 : vector<2x16x8xf32> to vector<2x16x8xbf16>
    %549 = vector.extract_strided_slice %523 {offsets = [0, 0, 8], sizes = [2, 16, 8], strides = [1, 1, 1]} : vector<2x16x32xf32> to vector<2x16x8xf32>
    %550 = arith.truncf %549 : vector<2x16x8xf32> to vector<2x16x8xbf16>
    "tpu.trace_start"() <{level = 10 : i32, message = "tqd,tkd->tqk"}> : () -> ()
    %cst_237 = arith.constant dense<0.000000e+00> : vector<2x8x16xf32>
    %551 = tpu.matmul %546, %548, %cst_237 {dimension_numbers = #tpu.dot_dimension_numbers<[2], [2], [1], [1], [0, 0, 0, 1, 1, 1], [0], [0]>} : vector<2x8x8xbf16>, vector<2x16x8xbf16>, vector<2x8x16xf32> -> vector<2x8x16xf32>
    "tpu.trace_stop"() : () -> ()
    %cst_238 = arith.constant 0.353553385 : f32
    %552 = vector.broadcast %cst_238 : f32 to vector<2x8x16xf32>
    %553 = arith.mulf %551, %552 : vector<2x8x16xf32>
    %cst_239 = arith.constant dense<0xFF800000> : vector<2x8xf32>
    %554 = vector.multi_reduction <maximumf>, %553, %cst_239 [2] : vector<2x8x16xf32> to vector<2x8xf32>
    %555 = vector.shape_cast %554 : vector<2x8xf32> to vector<2x8x1xf32>
    %556 = vector.broadcast %555 : vector<2x8x1xf32> to vector<2x8x16xf32>
    %557 = arith.subf %553, %556 : vector<2x8x16xf32>
    %558 = math.exp %557 : vector<2x8x16xf32>
    %cst_240 = arith.constant dense<0.000000e+00> : vector<2x8xf32>
    %559 = vector.multi_reduction <add>, %558, %cst_240 [2] : vector<2x8x16xf32> to vector<2x8xf32>
    %560 = vector.shape_cast %559 : vector<2x8xf32> to vector<2x8x1xf32>
    %561 = tpu.reciprocal %560 {approx = true} : vector<2x8x1xf32> -> vector<2x8x1xf32>
    %562 = vector.broadcast %561 : vector<2x8x1xf32> to vector<2x8x16xf32>
    %563 = arith.mulf %558, %562 : vector<2x8x16xf32>
    %564 = arith.truncf %563 : vector<2x8x16xf32> to vector<2x8x16xbf16>
    "tpu.trace_start"() <{level = 10 : i32, message = "tqk,tkd->tqd"}> : () -> ()
    %cst_241 = arith.constant dense<0.000000e+00> : vector<2x8x8xf32>
    %565 = tpu.matmul %564, %550, %cst_241 {dimension_numbers = #tpu.dot_dimension_numbers<[2], [1], [1], [2], [0, 0, 0, 1, 1, 2], [0], [0]>} : vector<2x8x16xbf16>, vector<2x16x8xbf16>, vector<2x8x8xf32> -> vector<2x8x8xf32>
    "tpu.trace_stop"() : () -> ()
    %566 = vector.extract_strided_slice %513 {offsets = [0, 0, 16], sizes = [2, 8, 8], strides = [1, 1, 1]} : vector<2x8x32xf32> to vector<2x8x8xf32>
    %567 = arith.truncf %566 : vector<2x8x8xf32> to vector<2x8x8xbf16>
    %568 = vector.extract_strided_slice %518 {offsets = [0, 0, 16], sizes = [2, 16, 8], strides = [1, 1, 1]} : vector<2x16x32xf32> to vector<2x16x8xf32>
    %569 = arith.truncf %568 : vector<2x16x8xf32> to vector<2x16x8xbf16>
    %570 = vector.extract_strided_slice %523 {offsets = [0, 0, 16], sizes = [2, 16, 8], strides = [1, 1, 1]} : vector<2x16x32xf32> to vector<2x16x8xf32>
    %571 = arith.truncf %570 : vector<2x16x8xf32> to vector<2x16x8xbf16>
    "tpu.trace_start"() <{level = 10 : i32, message = "tqd,tkd->tqk"}> : () -> ()
    %cst_242 = arith.constant dense<0.000000e+00> : vector<2x8x16xf32>
    %572 = tpu.matmul %567, %569, %cst_242 {dimension_numbers = #tpu.dot_dimension_numbers<[2], [2], [1], [1], [0, 0, 0, 1, 1, 1], [0], [0]>} : vector<2x8x8xbf16>, vector<2x16x8xbf16>, vector<2x8x16xf32> -> vector<2x8x16xf32>
    "tpu.trace_stop"() : () -> ()
    %cst_243 = arith.constant 0.353553385 : f32
    %573 = vector.broadcast %cst_243 : f32 to vector<2x8x16xf32>
    %574 = arith.mulf %572, %573 : vector<2x8x16xf32>
    %cst_244 = arith.constant dense<0xFF800000> : vector<2x8xf32>
    %575 = vector.multi_reduction <maximumf>, %574, %cst_244 [2] : vector<2x8x16xf32> to vector<2x8xf32>
    %576 = vector.shape_cast %575 : vector<2x8xf32> to vector<2x8x1xf32>
    %577 = vector.broadcast %576 : vector<2x8x1xf32> to vector<2x8x16xf32>
    %578 = arith.subf %574, %577 : vector<2x8x16xf32>
    %579 = math.exp %578 : vector<2x8x16xf32>
    %cst_245 = arith.constant dense<0.000000e+00> : vector<2x8xf32>
    %580 = vector.multi_reduction <add>, %579, %cst_245 [2] : vector<2x8x16xf32> to vector<2x8xf32>
    %581 = vector.shape_cast %580 : vector<2x8xf32> to vector<2x8x1xf32>
    %582 = tpu.reciprocal %581 {approx = true} : vector<2x8x1xf32> -> vector<2x8x1xf32>
    %583 = vector.broadcast %582 : vector<2x8x1xf32> to vector<2x8x16xf32>
    %584 = arith.mulf %579, %583 : vector<2x8x16xf32>
    %585 = arith.truncf %584 : vector<2x8x16xf32> to vector<2x8x16xbf16>
    "tpu.trace_start"() <{level = 10 : i32, message = "tqk,tkd->tqd"}> : () -> ()
    %cst_246 = arith.constant dense<0.000000e+00> : vector<2x8x8xf32>
    %586 = tpu.matmul %585, %571, %cst_246 {dimension_numbers = #tpu.dot_dimension_numbers<[2], [1], [1], [2], [0, 0, 0, 1, 1, 2], [0], [0]>} : vector<2x8x16xbf16>, vector<2x16x8xbf16>, vector<2x8x8xf32> -> vector<2x8x8xf32>
    "tpu.trace_stop"() : () -> ()
    %587 = vector.extract_strided_slice %513 {offsets = [0, 0, 24], sizes = [2, 8, 8], strides = [1, 1, 1]} : vector<2x8x32xf32> to vector<2x8x8xf32>
    %588 = arith.truncf %587 : vector<2x8x8xf32> to vector<2x8x8xbf16>
    %589 = vector.extract_strided_slice %518 {offsets = [0, 0, 24], sizes = [2, 16, 8], strides = [1, 1, 1]} : vector<2x16x32xf32> to vector<2x16x8xf32>
    %590 = arith.truncf %589 : vector<2x16x8xf32> to vector<2x16x8xbf16>
    %591 = vector.extract_strided_slice %523 {offsets = [0, 0, 24], sizes = [2, 16, 8], strides = [1, 1, 1]} : vector<2x16x32xf32> to vector<2x16x8xf32>
    %592 = arith.truncf %591 : vector<2x16x8xf32> to vector<2x16x8xbf16>
    "tpu.trace_start"() <{level = 10 : i32, message = "tqd,tkd->tqk"}> : () -> ()
    %cst_247 = arith.constant dense<0.000000e+00> : vector<2x8x16xf32>
    %593 = tpu.matmul %588, %590, %cst_247 {dimension_numbers = #tpu.dot_dimension_numbers<[2], [2], [1], [1], [0, 0, 0, 1, 1, 1], [0], [0]>} : vector<2x8x8xbf16>, vector<2x16x8xbf16>, vector<2x8x16xf32> -> vector<2x8x16xf32>
    "tpu.trace_stop"() : () -> ()
    %cst_248 = arith.constant 0.353553385 : f32
    %594 = vector.broadcast %cst_248 : f32 to vector<2x8x16xf32>
    %595 = arith.mulf %593, %594 : vector<2x8x16xf32>
    %cst_249 = arith.constant dense<0xFF800000> : vector<2x8xf32>
    %596 = vector.multi_reduction <maximumf>, %595, %cst_249 [2] : vector<2x8x16xf32> to vector<2x8xf32>
    %597 = vector.shape_cast %596 : vector<2x8xf32> to vector<2x8x1xf32>
    %598 = vector.broadcast %597 : vector<2x8x1xf32> to vector<2x8x16xf32>
    %599 = arith.subf %595, %598 : vector<2x8x16xf32>
    %600 = math.exp %599 : vector<2x8x16xf32>
    %cst_250 = arith.constant dense<0.000000e+00> : vector<2x8xf32>
    %601 = vector.multi_reduction <add>, %600, %cst_250 [2] : vector<2x8x16xf32> to vector<2x8xf32>
    %602 = vector.shape_cast %601 : vector<2x8xf32> to vector<2x8x1xf32>
    %603 = tpu.reciprocal %602 {approx = true} : vector<2x8x1xf32> -> vector<2x8x1xf32>
    %604 = vector.broadcast %603 : vector<2x8x1xf32> to vector<2x8x16xf32>
    %605 = arith.mulf %600, %604 : vector<2x8x16xf32>
    %606 = arith.truncf %605 : vector<2x8x16xf32> to vector<2x8x16xbf16>
    "tpu.trace_start"() <{level = 10 : i32, message = "tqk,tkd->tqd"}> : () -> ()
    %cst_251 = arith.constant dense<0.000000e+00> : vector<2x8x8xf32>
    %607 = tpu.matmul %606, %592, %cst_251 {dimension_numbers = #tpu.dot_dimension_numbers<[2], [1], [1], [2], [0, 0, 0, 1, 1, 2], [0], [0]>} : vector<2x8x16xbf16>, vector<2x16x8xbf16>, vector<2x8x8xf32> -> vector<2x8x8xf32>
    "tpu.trace_stop"() : () -> ()
    %608 = tpu.concatenate %544, %565, %586, %607 in 2 : vector<2x8x8xf32>, vector<2x8x8xf32>, vector<2x8x8xf32>, vector<2x8x8xf32> -> vector<2x8x32xf32>
    %609 = vector.shape_cast %608 : vector<2x8x32xf32> to vector<16x32xf32>
    %610 = arith.truncf %609 : vector<16x32xf32> to vector<16x32xbf16>
    %cst_252 = arith.constant dense<0.000000e+00> : vector<16x32xf32>
    %611 = tpu.matmul %610, %506, %cst_252 {dimension_numbers = #tpu.dot_dimension_numbers<[1], [0], [0], [1], [0, 0, 1, 1], [], []>} : vector<16x32xbf16>, vector<32x32xbf16>, vector<16x32xf32> -> vector<16x32xf32>
    %612 = vector.broadcast %508 : vector<1x32xf32> to vector<16x32xf32>
    %613 = arith.addf %611, %612 : vector<16x32xf32>
    %614 = arith.addf %492, %613 : vector<16x32xf32>
    %c1_253 = arith.constant 1 : index
    %c0_254 = arith.constant 0 : index
    %c0_255 = arith.constant 0 : index
    %615 = vector.load %arg25[%c1_253, %c0_254, %c0_255] : memref<2x1x32xf32, #tpu.memory_space<vmem>>, vector<1x1x32xf32>
    %616 = vector.shape_cast %615 : vector<1x1x32xf32> to vector<1x32xf32>
    %c1_256 = arith.constant 1 : index
    %c0_257 = arith.constant 0 : index
    %c0_258 = arith.constant 0 : index
    %617 = vector.load %arg26[%c1_256, %c0_257, %c0_258] : memref<2x1x32xf32, #tpu.memory_space<vmem>>, vector<1x1x32xf32>
    %618 = vector.shape_cast %617 : vector<1x1x32xf32> to vector<1x32xf32>
    %cst_259 = arith.constant dense<0.000000e+00> : vector<16xf32>
    %619 = vector.multi_reduction <add>, %614, %cst_259 [1] : vector<16x32xf32> to vector<16xf32>
    %620 = vector.shape_cast %619 : vector<16xf32> to vector<16x1xf32>
    %cst_260 = arith.constant 3.200000e+01 : f32
    %621 = vector.broadcast %cst_260 : f32 to vector<16x1xf32>
    %622 = arith.divf %620, %621 : vector<16x1xf32>
    %623 = vector.broadcast %622 : vector<16x1xf32> to vector<16x32xf32>
    %624 = arith.subf %614, %623 : vector<16x32xf32>
    %625 = arith.mulf %624, %624 : vector<16x32xf32>
    %cst_261 = arith.constant dense<0.000000e+00> : vector<16xf32>
    %626 = vector.multi_reduction <add>, %625, %cst_261 [1] : vector<16x32xf32> to vector<16xf32>
    %627 = vector.shape_cast %626 : vector<16xf32> to vector<16x1xf32>
    %cst_262 = arith.constant 3.200000e+01 : f32
    %628 = vector.broadcast %cst_262 : f32 to vector<16x1xf32>
    %629 = arith.divf %627, %628 : vector<16x1xf32>
    %630 = vector.broadcast %622 : vector<16x1xf32> to vector<16x32xf32>
    %631 = arith.subf %614, %630 : vector<16x32xf32>
    %cst_263 = arith.constant 9.99999974E-6 : f32
    %632 = vector.broadcast %cst_263 : f32 to vector<16x1xf32>
    %633 = arith.addf %629, %632 : vector<16x1xf32>
    %634 = math.rsqrt %633 : vector<16x1xf32>
    %635 = vector.broadcast %634 : vector<16x1xf32> to vector<16x32xf32>
    %636 = arith.mulf %631, %635 : vector<16x32xf32>
    %637 = vector.broadcast %616 : vector<1x32xf32> to vector<16x32xf32>
    %638 = arith.mulf %636, %637 : vector<16x32xf32>
    %639 = vector.broadcast %618 : vector<1x32xf32> to vector<16x32xf32>
    %640 = arith.addf %638, %639 : vector<16x32xf32>
    %c1_264 = arith.constant 1 : index
    %c0_265 = arith.constant 0 : index
    %c0_266 = arith.constant 0 : index
    %641 = vector.load %arg19[%c1_264, %c0_265, %c0_266] : memref<2x32x64xbf16, #tpu.memory_space<vmem>>, vector<1x32x64xbf16>
    %642 = vector.shape_cast %641 : vector<1x32x64xbf16> to vector<32x64xbf16>
    %643 = arith.truncf %640 : vector<16x32xf32> to vector<16x32xbf16>
    %cst_267 = arith.constant dense<0.000000e+00> : vector<16x64xf32>
    %644 = tpu.matmul %643, %642, %cst_267 {dimension_numbers = #tpu.dot_dimension_numbers<[1], [0], [0], [1], [0, 0, 1, 1], [], []>} : vector<16x32xbf16>, vector<32x64xbf16>, vector<16x64xf32> -> vector<16x64xf32>
    %c1_268 = arith.constant 1 : index
    %c0_269 = arith.constant 0 : index
    %c0_270 = arith.constant 0 : index
    %645 = vector.load %arg20[%c1_268, %c0_269, %c0_270] : memref<2x1x64xf32, #tpu.memory_space<vmem>>, vector<1x1x64xf32>
    %646 = vector.shape_cast %645 : vector<1x1x64xf32> to vector<1x64xf32>
    %647 = vector.broadcast %646 : vector<1x64xf32> to vector<16x64xf32>
    %648 = arith.addf %644, %647 : vector<16x64xf32>
    %cst_271 = arith.constant 0.000000e+00 : f32
    %649 = vector.broadcast %cst_271 : f32 to vector<16x64xf32>
    %650 = arith.maximumf %648, %649 : vector<16x64xf32>
    %c1_272 = arith.constant 1 : index
    %c0_273 = arith.constant 0 : index
    %c0_274 = arith.constant 0 : index
    %651 = vector.load %arg21[%c1_272, %c0_273, %c0_274] : memref<2x64x32xbf16, #tpu.memory_space<vmem>>, vector<1x64x32xbf16>
    %652 = vector.shape_cast %651 : vector<1x64x32xbf16> to vector<64x32xbf16>
    %653 = arith.truncf %650 : vector<16x64xf32> to vector<16x64xbf16>
    %cst_275 = arith.constant dense<0.000000e+00> : vector<16x32xf32>
    %654 = tpu.matmul %653, %652, %cst_275 {dimension_numbers = #tpu.dot_dimension_numbers<[1], [0], [0], [1], [0, 0, 1, 1], [], []>} : vector<16x64xbf16>, vector<64x32xbf16>, vector<16x32xf32> -> vector<16x32xf32>
    %c1_276 = arith.constant 1 : index
    %c0_277 = arith.constant 0 : index
    %c0_278 = arith.constant 0 : index
    %655 = vector.load %arg22[%c1_276, %c0_277, %c0_278] : memref<2x1x32xf32, #tpu.memory_space<vmem>>, vector<1x1x32xf32>
    %656 = vector.shape_cast %655 : vector<1x1x32xf32> to vector<1x32xf32>
    %657 = vector.broadcast %656 : vector<1x32xf32> to vector<16x32xf32>
    %658 = arith.addf %654, %657 : vector<16x32xf32>
    %659 = arith.addf %640, %658 : vector<16x32xf32>
    %c1_279 = arith.constant 1 : index
    %c0_280 = arith.constant 0 : index
    %c0_281 = arith.constant 0 : index
    %660 = vector.load %arg27[%c1_279, %c0_280, %c0_281] : memref<2x1x32xf32, #tpu.memory_space<vmem>>, vector<1x1x32xf32>
    %661 = vector.shape_cast %660 : vector<1x1x32xf32> to vector<1x32xf32>
    %c1_282 = arith.constant 1 : index
    %c0_283 = arith.constant 0 : index
    %c0_284 = arith.constant 0 : index
    %662 = vector.load %arg28[%c1_282, %c0_283, %c0_284] : memref<2x1x32xf32, #tpu.memory_space<vmem>>, vector<1x1x32xf32>
    %663 = vector.shape_cast %662 : vector<1x1x32xf32> to vector<1x32xf32>
    %cst_285 = arith.constant dense<0.000000e+00> : vector<16xf32>
    %664 = vector.multi_reduction <add>, %659, %cst_285 [1] : vector<16x32xf32> to vector<16xf32>
    %665 = vector.shape_cast %664 : vector<16xf32> to vector<16x1xf32>
    %cst_286 = arith.constant 3.200000e+01 : f32
    %666 = vector.broadcast %cst_286 : f32 to vector<16x1xf32>
    %667 = arith.divf %665, %666 : vector<16x1xf32>
    %668 = vector.broadcast %667 : vector<16x1xf32> to vector<16x32xf32>
    %669 = arith.subf %659, %668 : vector<16x32xf32>
    %670 = arith.mulf %669, %669 : vector<16x32xf32>
    %cst_287 = arith.constant dense<0.000000e+00> : vector<16xf32>
    %671 = vector.multi_reduction <add>, %670, %cst_287 [1] : vector<16x32xf32> to vector<16xf32>
    %672 = vector.shape_cast %671 : vector<16xf32> to vector<16x1xf32>
    %cst_288 = arith.constant 3.200000e+01 : f32
    %673 = vector.broadcast %cst_288 : f32 to vector<16x1xf32>
    %674 = arith.divf %672, %673 : vector<16x1xf32>
    %675 = vector.broadcast %667 : vector<16x1xf32> to vector<16x32xf32>
    %676 = arith.subf %659, %675 : vector<16x32xf32>
    %cst_289 = arith.constant 9.99999974E-6 : f32
    %677 = vector.broadcast %cst_289 : f32 to vector<16x1xf32>
    %678 = arith.addf %674, %677 : vector<16x1xf32>
    %679 = math.rsqrt %678 : vector<16x1xf32>
    %680 = vector.broadcast %679 : vector<16x1xf32> to vector<16x32xf32>
    %681 = arith.mulf %676, %680 : vector<16x32xf32>
    %682 = vector.broadcast %661 : vector<1x32xf32> to vector<16x32xf32>
    %683 = arith.mulf %681, %682 : vector<16x32xf32>
    %684 = vector.broadcast %663 : vector<1x32xf32> to vector<16x32xf32>
    %685 = arith.addf %683, %684 : vector<16x32xf32>
    %686 = vector.shape_cast %685 : vector<16x32xf32> to vector<2x8x32xf32>
    %c0_290 = arith.constant 0 : index
    %c0_291 = arith.constant 0 : index
    %687 = vector.load %arg29[%c0_290, %c0_291] : memref<1x32xf32, #tpu.memory_space<vmem>>, vector<1x32xf32>
    %688 = vector.shape_cast %687 : vector<1x32xf32> to vector<1x1x32xf32>
    %689 = vector.broadcast %688 : vector<1x1x32xf32> to vector<2x8x32xf32>
    %690 = arith.mulf %686, %689 : vector<2x8x32xf32>
    %cst_292 = arith.constant dense<0.000000e+00> : vector<2x8xf32>
    %691 = vector.multi_reduction <add>, %690, %cst_292 [2] : vector<2x8x32xf32> to vector<2x8xf32>
    %c0_293 = arith.constant 0 : index
    %c0_294 = arith.constant 0 : index
    %692 = vector.load %arg30[%c0_293, %c0_294] : memref<1x1xf32, #tpu.memory_space<vmem>>, vector<1x1xf32>
    %693 = vector.broadcast %692 : vector<1x1xf32> to vector<2x8xf32>
    %694 = arith.addf %691, %693 : vector<2x8xf32>
    %c0_295 = arith.constant 0 : index
    %c0_296 = arith.constant 0 : index
    %c0_297 = arith.constant 0 : index
    %695 = vector.load %arg31[%c0_295, %c0_296, %c0_297] : memref<1x2x8xf32, #tpu.memory_space<vmem>>, vector<1x2x8xf32>
    %696 = vector.shape_cast %695 : vector<1x2x8xf32> to vector<2x8xf32>
    %697 = vector.shape_cast %694 : vector<2x8xf32> to vector<1x2x8xf32>
    tpu.vector_store %arg31[%c0_295, %c0_296, %c0_297], %697 {strides = array<i32>} : memref<1x2x8xf32, #tpu.memory_space<vmem>>, vector<1x2x8xf32>,
    return
  }
  func.func @transform_0(%arg0: i32) -> (i32, i32, i32) {
    %c0_i32 = arith.constant 0 : i32
    %c0_i32_0 = arith.constant 0 : i32
    %c0_i32_1 = arith.constant 0 : i32
    return %arg0, %c0_i32, %c0_i32_0 : i32, i32, i32
  }
  func.func @transform_1(%arg0: i32) -> (i32, i32) {
    %c0_i32 = arith.constant 0 : i32
    %c0_i32_0 = arith.constant 0 : i32
    %c0_i32_1 = arith.constant 0 : i32
    return %c0_i32, %c0_i32_0 : i32, i32
  }
  func.func @transform_2(%arg0: i32) -> (i32, i32, i32) {
    %c0_i32 = arith.constant 0 : i32
    %c0_i32_0 = arith.constant 0 : i32
    %c0_i32_1 = arith.constant 0 : i32
    %c0_i32_2 = arith.constant 0 : i32
    return %c0_i32, %c0_i32_0, %c0_i32_1 : i32, i32, i32
  }
  func.func @transform_3(%arg0: i32) -> (i32, i32, i32) {
    %c0_i32 = arith.constant 0 : i32
    %c0_i32_0 = arith.constant 0 : i32
    %c0_i32_1 = arith.constant 0 : i32
    %c0_i32_2 = arith.constant 0 : i32
    return %c0_i32, %c0_i32_0, %c0_i32_1 : i32, i32, i32
  }
  func.func @transform_4(%arg0: i32) -> (i32, i32, i32) {
    %c0_i32 = arith.constant 0 : i32
    %c0_i32_0 = arith.constant 0 : i32
    %c0_i32_1 = arith.constant 0 : i32
    %c0_i32_2 = arith.constant 0 : i32
    return %c0_i32, %c0_i32_0, %c0_i32_1 : i32, i32, i32
  }
  func.func @transform_5(%arg0: i32) -> (i32, i32, i32) {
    %c0_i32 = arith.constant 0 : i32
    %c0_i32_0 = arith.constant 0 : i32
    %c0_i32_1 = arith.constant 0 : i32
    %c0_i32_2 = arith.constant 0 : i32
    return %c0_i32, %c0_i32_0, %c0_i32_1 : i32, i32, i32
  }
  func.func @transform_6(%arg0: i32) -> (i32, i32, i32) {
    %c0_i32 = arith.constant 0 : i32
    %c0_i32_0 = arith.constant 0 : i32
    %c0_i32_1 = arith.constant 0 : i32
    %c0_i32_2 = arith.constant 0 : i32
    return %c0_i32, %c0_i32_0, %c0_i32_1 : i32, i32, i32
  }
  func.func @transform_7(%arg0: i32) -> (i32, i32, i32) {
    %c0_i32 = arith.constant 0 : i32
    %c0_i32_0 = arith.constant 0 : i32
    %c0_i32_1 = arith.constant 0 : i32
    %c0_i32_2 = arith.constant 0 : i32
    return %c0_i32, %c0_i32_0, %c0_i32_1 : i32, i32, i32
  }
  func.func @transform_8(%arg0: i32) -> (i32, i32, i32) {
    %c0_i32 = arith.constant 0 : i32
    %c0_i32_0 = arith.constant 0 : i32
    %c0_i32_1 = arith.constant 0 : i32
    %c0_i32_2 = arith.constant 0 : i32
    return %c0_i32, %c0_i32_0, %c0_i32_1 : i32, i32, i32
  }
  func.func @transform_9(%arg0: i32) -> (i32, i32, i32) {
    %c0_i32 = arith.constant 0 : i32
    %c0_i32_0 = arith.constant 0 : i32
    %c0_i32_1 = arith.constant 0 : i32
    %c0_i32_2 = arith.constant 0 : i32
    return %c0_i32, %c0_i32_0, %c0_i32_1 : i32, i32, i32
  }
  func.func @transform_10(%arg0: i32) -> (i32, i32, i32) {
    %c0_i32 = arith.constant 0 : i32
    %c0_i32_0 = arith.constant 0 : i32
    %c0_i32_1 = arith.constant 0 : i32
    %c0_i32_2 = arith.constant 0 : i32
    return %c0_i32, %c0_i32_0, %c0_i32_1 : i32, i32, i32
  }
  func.func @transform_11(%arg0: i32) -> (i32, i32, i32) {
    %c0_i32 = arith.constant 0 : i32
    %c0_i32_0 = arith.constant 0 : i32
    %c0_i32_1 = arith.constant 0 : i32
    %c0_i32_2 = arith.constant 0 : i32
    return %c0_i32, %c0_i32_0, %c0_i32_1 : i32, i32, i32
  }
  func.func @transform_12(%arg0: i32) -> (i32, i32, i32) {
    %c0_i32 = arith.constant 0 : i32
    %c0_i32_0 = arith.constant 0 : i32
    %c0_i32_1 = arith.constant 0 : i32
    %c0_i32_2 = arith.constant 0 : i32
    return %c0_i32, %c0_i32_0, %c0_i32_1 : i32, i32, i32
  }
  func.func @transform_13(%arg0: i32) -> (i32, i32, i32) {
    %c0_i32 = arith.constant 0 : i32
    %c0_i32_0 = arith.constant 0 : i32
    %c0_i32_1 = arith.constant 0 : i32
    %c0_i32_2 = arith.constant 0 : i32
    return %c0_i32, %c0_i32_0, %c0_i32_1 : i32, i32, i32
  }
  func.func @transform_14(%arg0: i32) -> (i32, i32, i32) {
    %c0_i32 = arith.constant 0 : i32
    %c0_i32_0 = arith.constant 0 : i32
    %c0_i32_1 = arith.constant 0 : i32
    %c0_i32_2 = arith.constant 0 : i32
    return %c0_i32, %c0_i32_0, %c0_i32_1 : i32, i32, i32
  }
  func.func @transform_15(%arg0: i32) -> (i32, i32, i32) {
    %c0_i32 = arith.constant 0 : i32
    %c0_i32_0 = arith.constant 0 : i32
    %c0_i32_1 = arith.constant 0 : i32
    %c0_i32_2 = arith.constant 0 : i32
    return %c0_i32, %c0_i32_0, %c0_i32_1 : i32, i32, i32
  }
  func.func @transform_16(%arg0: i32) -> (i32, i32, i32) {
    %c0_i32 = arith.constant 0 : i32
    %c0_i32_0 = arith.constant 0 : i32
    %c0_i32_1 = arith.constant 0 : i32
    %c0_i32_2 = arith.constant 0 : i32
    return %c0_i32, %c0_i32_0, %c0_i32_1 : i32, i32, i32
  }
  func.func @transform_17(%arg0: i32) -> (i32, i32, i32) {
    %c0_i32 = arith.constant 0 : i32
    %c0_i32_0 = arith.constant 0 : i32
    %c0_i32_1 = arith.constant 0 : i32
    %c0_i32_2 = arith.constant 0 : i32
    return %c0_i32, %c0_i32_0, %c0_i32_1 : i32, i32, i32
  }
  func.func @transform_18(%arg0: i32) -> (i32, i32, i32) {
    %c0_i32 = arith.constant 0 : i32
    %c0_i32_0 = arith.constant 0 : i32
    %c0_i32_1 = arith.constant 0 : i32
    %c0_i32_2 = arith.constant 0 : i32
    return %c0_i32, %c0_i32_0, %c0_i32_1 : i32, i32, i32
  }
  func.func @transform_19(%arg0: i32) -> (i32, i32, i32) {
    %c0_i32 = arith.constant 0 : i32
    %c0_i32_0 = arith.constant 0 : i32
    %c0_i32_1 = arith.constant 0 : i32
    %c0_i32_2 = arith.constant 0 : i32
    return %c0_i32, %c0_i32_0, %c0_i32_1 : i32, i32, i32
  }
  func.func @transform_20(%arg0: i32) -> (i32, i32, i32) {
    %c0_i32 = arith.constant 0 : i32
    %c0_i32_0 = arith.constant 0 : i32
    %c0_i32_1 = arith.constant 0 : i32
    %c0_i32_2 = arith.constant 0 : i32
    return %c0_i32, %c0_i32_0, %c0_i32_1 : i32, i32, i32
  }
  func.func @transform_21(%arg0: i32) -> (i32, i32, i32) {
    %c0_i32 = arith.constant 0 : i32
    %c0_i32_0 = arith.constant 0 : i32
    %c0_i32_1 = arith.constant 0 : i32
    %c0_i32_2 = arith.constant 0 : i32
    return %c0_i32, %c0_i32_0, %c0_i32_1 : i32, i32, i32
  }
  func.func @transform_22(%arg0: i32) -> (i32, i32, i32) {
    %c0_i32 = arith.constant 0 : i32
    %c0_i32_0 = arith.constant 0 : i32
    %c0_i32_1 = arith.constant 0 : i32
    %c0_i32_2 = arith.constant 0 : i32
    return %c0_i32, %c0_i32_0, %c0_i32_1 : i32, i32, i32
  }
  func.func @transform_23(%arg0: i32) -> (i32, i32, i32) {
    %c0_i32 = arith.constant 0 : i32
    %c0_i32_0 = arith.constant 0 : i32
    %c0_i32_1 = arith.constant 0 : i32
    %c0_i32_2 = arith.constant 0 : i32
    return %c0_i32, %c0_i32_0, %c0_i32_1 : i32, i32, i32
  }
  func.func @transform_24(%arg0: i32) -> (i32, i32, i32) {
    %c0_i32 = arith.constant 0 : i32
    %c0_i32_0 = arith.constant 0 : i32
    %c0_i32_1 = arith.constant 0 : i32
    %c0_i32_2 = arith.constant 0 : i32
    return %c0_i32, %c0_i32_0, %c0_i32_1 : i32, i32, i32
  }
  func.func @transform_25(%arg0: i32) -> (i32, i32, i32) {
    %c0_i32 = arith.constant 0 : i32
    %c0_i32_0 = arith.constant 0 : i32
    %c0_i32_1 = arith.constant 0 : i32
    %c0_i32_2 = arith.constant 0 : i32
    return %c0_i32, %c0_i32_0, %c0_i32_1 : i32, i32, i32
  }
  func.func @transform_26(%arg0: i32) -> (i32, i32, i32) {
    %c0_i32 = arith.constant 0 : i32
    %c0_i32_0 = arith.constant 0 : i32
    %c0_i32_1 = arith.constant 0 : i32
    %c0_i32_2 = arith.constant 0 : i32
    return %c0_i32, %c0_i32_0, %c0_i32_1 : i32, i32, i32
  }
  func.func @transform_27(%arg0: i32) -> (i32, i32, i32) {
    %c0_i32 = arith.constant 0 : i32
    %c0_i32_0 = arith.constant 0 : i32
    %c0_i32_1 = arith.constant 0 : i32
    %c0_i32_2 = arith.constant 0 : i32
    return %c0_i32, %c0_i32_0, %c0_i32_1 : i32, i32, i32
  }
  func.func @transform_28(%arg0: i32) -> (i32, i32) {
    %c0_i32 = arith.constant 0 : i32
    %c0_i32_0 = arith.constant 0 : i32
    %c0_i32_1 = arith.constant 0 : i32
    return %c0_i32, %c0_i32_0 : i32, i32
  }
  func.func @transform_29(%arg0: i32) -> (i32, i32) {
    %c0_i32 = arith.constant 0 : i32
    %c0_i32_0 = arith.constant 0 : i32
    %c0_i32_1 = arith.constant 0 : i32
    return %c0_i32, %c0_i32_0 : i32, i32
  }
  func.func @transform_30(%arg0: i32) -> (i32, i32, i32) {
    %c0_i32 = arith.constant 0 : i32
    %c0_i32_0 = arith.constant 0 : i32
    %c0_i32_1 = arith.constant 0 : i32
    return %arg0, %c0_i32, %c0_i32_0 : i32, i32, i32
  }
}

</mosaic_0001>

<bundles_post_ra>
// kernel: tpu_custom_call.1
= control target key start
LH: loop header
LB: loop body
LE: loop exit
PB: predicated region body
PF: predicated region fallthrough
CT: control target
= control target key end

     0   :  { %s8818_s6 = smov 1   ;;  %s8819_s10 = smov 2   ;;  %s10173_s0 = inlined_call_operand.smem [shape: u32[31], index: -1, kind: input, shape index: {}] }
   0x1   :  { %s8886_s5 = sld [smem:[%s10173_s0]]   ;;  %s8820_s14 = smov 3  }
   0x2   :  { %s8891_s9 = sld [smem:[%s10173_s0 + %s8818_s6]]   ;;  %s8821_s18 = smov 4  }
   0x3   :  { %s8896_s13 = sld [smem:[%s10173_s0 + %s8819_s10]]   ;;  %s8822_s22 = smov 5  }
   0x4   :  { %s8901_s17 = sld [smem:[%s10173_s0 + %s8820_s14]]   ;;  %s8823_s26 = smov 6  }
   0x5   :  { %s8906_s21 = sld [smem:[%s10173_s0 + %s8821_s18]]   ;;  %s8824_s30 = smov 7  }
   0x6   :  { %s8911_s25 = sld [smem:[%s10173_s0 + %s8822_s22]]   ;;  %s8825_s4 = smov 8  }
   0x7   :  { %10215 = sst [smem:[#allocation40_spill]] %s8886_s5  ;;  %s8826_s10 = smov 9  }
   0x8   :  { %s8916_s29 = sld [smem:[%s10173_s0 + %s8823_s26]]   ;;  %s8827_s15 = smov 10  }
   0x9   :  { %10216 = sst [smem:[#allocation41_spill]] %s8896_s13  ;;  %s8828_s20 = smov 11  }
   0xa   :  { %10217 = sst [smem:[#allocation42_spill]] %s8901_s17  ;;  %s8829_s26 = smov 12  }
   0xb   :  { %s8921_s3 = sld [smem:[%s10173_s0 + %s8824_s30]]   ;;  %s8830_s1 = smov 13  }
   0xc   :  { %10218 = sst [smem:[#allocation43_spill]] %s8911_s25  ;;  %s8831_s7 = smov 14  }
   0xd   :  { %s8926_s8 = sld [smem:[%s10173_s0 + %s8825_s4]]   ;;  %s8833_s22 = smov 16  }
   0xe   :  { %10219 = sst [smem:[#allocation44_spill]] %s8916_s29  ;;  %s8834_s28 = smov 17  }
   0xf   :  { %s8931_s14 = sld [smem:[%s10173_s0 + %s8826_s10]]   ;;  %s8847_s10 = smov 30  }
  0x10   :  { %s8936_s19 = sld [smem:[%s10173_s0 + %s8827_s15]]   ;;  %s8832_s15 = smov 15  }
  0x11   :  { %10220 = sst [smem:[#allocation45_spill]] %s8921_s3 }
  0x12   :  { %s8941_s24 = sld [smem:[%s10173_s0 + %s8828_s20]]  }
  0x13   :  { %10221 = sst [smem:[#allocation46_spill]] %s8926_s8 }
  0x14   :  { %s8946_s30 = sld [smem:[%s10173_s0 + %s8829_s26]]  }
  0x15   :  { %s8951_s6 = sld [smem:[%s10173_s0 + %s8830_s1]]  }
  0x16   :  { %s8956_s12 = sld [smem:[%s10173_s0 + %s8831_s7]]   ;;  %s8835_s7 = smov 18  }
  0x17   :  { %s8961_s20 = sld [smem:[%s10173_s0 + %s8832_s15]]   ;;  %s8836_s15 = smov 19  }
  0x18   :  { %s8966_s27 = sld [smem:[%s10173_s0 + %s8833_s22]]   ;;  %s8837_s22 = smov 20  }
  0x19   :  { %s8971_s4 = sld [smem:[%s10173_s0 + %s8834_s28]]   ;;  %s8838_s28 = smov 21  }
  0x1a   :  { %s8976_s5 = sld [smem:[%s10173_s0 + %s8835_s7]]   ;;  %s8839_s7 = smov 22  }
  0x1b   :  { %10222 = sst [smem:[#allocation47_spill]] %s8951_s6 }
  0x1c   :  { %s8981_s3 = sld [smem:[%s10173_s0 + %s8836_s15]]   ;;  %s8840_s15 = smov 23  }
  0x1d   :  { %s8986_s25 = sld [smem:[%s10173_s0 + %s8837_s22]]   ;;  %s8841_s22 = smov 24  }
  0x1e   :  { %s8991_s29 = sld [smem:[%s10173_s0 + %s8838_s28]]   ;;  %s8842_s28 = smov 25  }
  0x1f   :  { %10223 = sst [smem:[#allocation48_spill]] %s8971_s4 }
  0x20   :  { %10224 = sst [smem:[#allocation49_spill]] %s8976_s5 }
  0x21   :  { %s8996_s13 = sld [smem:[%s10173_s0 + %s8839_s7]]   ;;  %s8843_s7 = smov 26  }
  0x22   :  { %10225 = sst [smem:[#allocation50_spill]] %s8981_s3 }
  0x23   :  { %10226 = sst [smem:[#allocation51_spill]] %s8986_s25 }
  0x24   :  { %10227 = sst [smem:[#allocation52_spill]] %s8991_s29 }
  0x25   :  { %s9001_s3 = sld [smem:[%s10173_s0 + %s8840_s15]]   ;;  %s8844_s15 = smov 27  }
  0x26   :  { %s9006_s25 = sld [smem:[%s10173_s0 + %s8841_s22]]   ;;  %s8845_s22 = smov 28  }
  0x27   :  { %10228 = sst [smem:[#allocation53_spill]] %s8996_s13 }
  0x28   :  { %s9011_s29 = sld [smem:[%s10173_s0 + %s8842_s28]]   ;;  %s8846_s28 = smov 29  }
  0x29   :  { %s9016_s13 = sld [smem:[%s10173_s0 + %s8843_s7]]  }
  0x2b   :  { %10229 = sst [smem:[#allocation54_spill]] %s9001_s3 }
  0x2c   :  { %10230 = sst [smem:[#allocation55_spill]] %s9006_s25 }
  0x2d   :  { %s9021_s3 = sld [smem:[%s10173_s0 + %s8844_s15]]  }
  0x2e   :  { %10231 = sst [smem:[#allocation56_spill]] %s9011_s29 }
  0x2f   :  { %10232 = sst [smem:[#allocation57_spill]] %s9016_s13 }
  0x30   :  { %s9026_s25 = sld [smem:[%s10173_s0 + %s8845_s22]]  }
  0x31   :  { %s6821_s29 = sld [smem:[%s10173_s0 + %s8846_s28]]  }
  0x32   :  { %s9034_s13 = sld [smem:[%s10173_s0 + %s8847_s10]]  }
  0x33   :  { %10233 = sst [smem:[#allocation58_spill]] %s9021_s3 }
  0x37   :  { %v66_v0 = vstv %s6821_s29 }
  0x38   :  { %67 = vst [vmem:[#allocation2] sm:$0x1] %v66_v0 }
  0x39   :  { %68 = vsyncpa [#allocation4], 0 }
  0x3a   :  { %69 = vsyncpa [#allocation7], 0 }
  0x3b   :  { %70 = vsyncpa [#allocation10], 0 }
  0x3c   :  { %71 = vsyncpa [#allocation13], 0 }
  0x3d   :  { %72 = vsyncpa [#allocation16], 0 }
  0x3e   :  { %73 = vsyncpa [#allocation19], 0 }
  0x3f   :  { %74 = vsyncpa [#allocation22], 0 }
  0x40   :  { %75 = vsyncpa [#allocation25], 0 }
  0x41   :  { %76 = vsyncpa [#allocation28], 0 }
  0x42   :  { %77 = vsyncpa [#allocation5], 0 }
  0x43   :  { %79 = vsyncpa [#allocation5 + $0x1], 0  ;;  %s9036_s15 = smov 0   ;;  %s9038_s16 = smov 0  }
  0x44   :  { %s9040_s18 = smov 0   ;;  %s9042_s0 = smov 0  }
  0x45 LB: > { %s10234_s3 = sld [smem:[#allocation58_spill]]  ;;  %s9057_s29 = sadd.s32 4294967295, %s8816_s0   ;;  %s8804_s15 = sphi %s9036_s15, %s10301_s15   ;;  %s8816_s0 = sphi %s9042_s0, %s10298_s0   ;;  %s8812_s18 = sphi %s9040_s18, %s10300_s18   ;;  %s8808_s16 = sphi %s9038_s16, %s10302_s16  }
  0x46   : > { %10235 = sst [smem:[#allocation59_spill]] %s8804_s15  ;;  %s6824_s22 = sadd.s32 4294967294, %s8816_s0  }
  0x47   : > { %10236 = sst [smem:[#allocation60_spill]] %s8812_s18  ;;  %s9061_s23 = sadd.s32 1, %s8816_s0  }
  0x48   : > { %10237 = sst [smem:[#allocation61_spill]] %s9061_s23  ;;  %s727_s26 = sadd.s32 1, %s8812_s18 }
  0x49   : > { %s724_s28 = ssub.s32 %s8816_s0, %s9061_s23  ;;  %p737_p0 = scmp.ne.s32.totalorder %s8812_s18, %s8808_s16 }
  0x4a   : > { %p725_p1 = scmp.eq.s32.totalorder %s724_s28, 0  ;;  %p738_p2 = scmp.eq.s32.totalorder %s9057_s29, 1 }
  0x4b   : > { %p743_p3 = scmp.ne.s32.totalorder %s8808_s16, %s8804_s15  ;;  %p744_p4 = scmp.eq.s32.totalorder %s6824_s22, 1 }
  0x4c   : > { %s9072_s1 = scalar_select %p725_p1, %s8812_s18, %s727_s26  }
  0x4d   : > { %p9074_p5 = por %p738_p2, %p737_p0  ;;  %p9078_p6 = por %p744_p4, %p743_p3 }
  0x4e   : > { %10238 = sst [smem:[#allocation62_spill]] %s9072_s1  ;;  %p6825_p7 = scmp.ge.s32.totalorder %s8816_s0, 1 }
  0x4f   : > { %s10239_s2 = scalar_select %p9074_p5, 1, 0 }
  0x50   : > { %s10240_s10 = scalar_select %p9078_p6, 1, 0 }
  0x51   : > { %p751_p8 = scmp.lt.s32.totalorder %s8816_s0, 3  ;;  %p10189_p9 = scmp.eq.s32.totalorder %s9057_s29, 0 }
  0x52   : > { %10241 = sst [smem:[#allocation63_spill]] %s10240_s10  ;;  %s8848_s11 = smov [#allocation6]  }
  0x53   : > { %p9085_p10 = pnand %p6825_p7, %p751_p8  ;;  %s777_s22 = sshll.u32 %s8848_s11, 4  ;;  %s778_s22 = int_to_ptr.vmem [resolvable:$true] %s777_s22 }
  0x54   : > { %s8849_s28 = smov [#allocation9]   ;;  %s8850_s18 = smov [#allocation12]  }
  0x55   : > { %s10242_s7 = scalar_select %p9085_p10, 1, 0 }
  0x56   : > { %p7870_p11 = pneg %p9085_p10  ;;  %s812_s1 = sshll.u32 %s8849_s28, 4  ;;  %s813_s1 = int_to_ptr.vmem [resolvable:$true] %s812_s1 }
  0x57   : > { %s838_s23 = sshll.u32 %s8850_s18, 4  ;;  %s8315_s11 = scalar_lea.vmem %s778_s22, 512  ;;  %s839_s23 = int_to_ptr.vmem [resolvable:$true] %s838_s23 }
  0x58   : > { %p9093_p12 = pnand %p10189_p9, %p7870_p11  ;;  %p8316_p0 = scmp.ne.s32.totalorder %s778_s22, %s8315_s11 }
  0x59   : > { %p8323_p3 = scmp.lt.s32.totalorder %s778_s22, %s778_s22  ;;  %p8324_p4 = scmp.lt.s32.totalorder %s8315_s11, %s8315_s11 }
  0x5a   : > { %p9099_p13 = pneg %p9093_p12 }
  0x5b   : > { %p8325_p7 = por %p8324_p4, %p8323_p3 }
  0x5c   : > { %p8318_p1 = pnand %p8316_p0, %p9099_p13 }
  0x5e   : > { %p8319_p2 = pneg %p8318_p1 }
  0x60   : > { %p8326_p8 = pnand %p8325_p7, %p8319_p2 }
  0x62   : > { %8329 = shalt.err (!%p8326_p8)
}
  0x63   : > { %s10196_s28 = smov 64   ;;  %s10245_s17 = sld [smem:[#allocation42_spill]] }
  0x64   : > { %s10197_s18 = smov 4   ;;  %s8341_s15 = scalar_lea.vmem %s813_s1, 512 }
  0x65   : > { %p8342_p11 = scmp.ne.s32.totalorder %s813_s1, %s8341_s15  ;;  %p8349_p9 = scmp.lt.s32.totalorder %s813_s1, %s813_s1 }
  0x66   : > { %p8350_p6 = scmp.lt.s32.totalorder %s8341_s15, %s8341_s15 }
  0x67   : > { %p8344_p0 = pnand %p8342_p11, %p9099_p13 }
  0x68   : > { %p8351_p3 = por %p8350_p6, %p8349_p9 }
  0x69   : > { %7876 = dma.hbm_to_vmem [thread:$0]  (!%p9093_p12), %s10245_s17, 512, %s778_s22, [#allocation7], %s10196_s28, %s10196_s28, %s10197_s18  }
  0x6a   : > { %p8345_p1 = pneg %p8344_p0 }
  0x6c   : > { %p8352_p2 = pnand %p8351_p3, %p8345_p1 }
  0x6e   : > { %8355 = shalt.err (!%p8352_p2)
}
  0x6f   : > { %s10246_s8 = sld [smem:[#allocation46_spill]]  ;;  %s8367_s22 = scalar_lea.vmem %s839_s23, 512 }
  0x70   : > { %p8368_p4 = scmp.ne.s32.totalorder %s839_s23, %s8367_s22  ;;  %p8375_p11 = scmp.lt.s32.totalorder %s839_s23, %s839_s23 }
  0x71   : > { %p8376_p0 = scmp.lt.s32.totalorder %s8367_s22, %s8367_s22 }
  0x72   : > { %p8370_p7 = pnand %p8368_p4, %p9099_p13 }
  0x73   : > { %p8377_p5 = por %p8376_p0, %p8375_p11 }
  0x74   : > { %p8371_p8 = pneg %p8370_p7 }
  0x75   : > { %7882 = dma.hbm_to_vmem [thread:$0]  (!%p9093_p12), %s10246_s8, 512, %s813_s1, [#allocation10], %s10196_s28, %s10196_s28, %s10197_s18  }
  0x76   : > { %p8378_p6 = pnand %p8377_p5, %p8371_p8 }
  0x78   : > { %8381 = shalt.err (!%p8378_p6)
}
  0x79   : > { %7888 = dma.hbm_to_vmem [thread:$0]  (!%p9093_p12), %s8936_s19, 512, %s839_s23, [#allocation13], %s10196_s28, %s10196_s28, %s10197_s18  }
  0x7a   : > { %s8853_s15 = smov [#allocation15]  }
  0x7b   : > { %s864_s1 = sshll.u32 %s8853_s15, 4  ;;  %s865_s1 = int_to_ptr.vmem [resolvable:$true] %s864_s1 }
  0x7c   : > { %s8393_s11 = scalar_lea.vmem %s865_s1, 512  ;;  %p8401_p2 = scmp.lt.s32.totalorder %s865_s1, %s865_s1 }
  0x7d   : > { %p8394_p9 = scmp.ne.s32.totalorder %s865_s1, %s8393_s11  ;;  %p8402_p4 = scmp.lt.s32.totalorder %s8393_s11, %s8393_s11 }
  0x7f   : > { %p8396_p1 = pnand %p8394_p9, %p9099_p13  ;;  %p8403_p5 = por %p8402_p4, %p8401_p2 }
  0x81   : > { %p8397_p3 = pneg %p8396_p1 }
  0x83   : > { %p8404_p7 = pnand %p8403_p5, %p8397_p3 }
  0x85   : > { %8407 = shalt.err (!%p8404_p7)
}
  0x86   : > { %7894 = dma.hbm_to_vmem [thread:$0]  (!%p9093_p12), %s8946_s30, 512, %s865_s1, [#allocation16], %s10196_s28, %s10196_s28, %s10197_s18  }
  0x87   : > { %s8854_s23 = smov [#allocation18]   ;;  %s8855_s15 = smov [#allocation21]  }
  0x88   : > { %s890_s22 = sshll.u32 %s8854_s23, 4  ;;  %s916_s8 = sshll.u32 %s8855_s15, 4  ;;  %s891_s22 = int_to_ptr.vmem [resolvable:$true] %s890_s22  ;;  %s917_s8 = int_to_ptr.vmem [resolvable:$true] %s916_s8 }
  0x89   : > { %s8419_s17 = scalar_lea.vmem %s891_s22, 32  ;;  %p8427_p6 = scmp.lt.s32.totalorder %s891_s22, %s891_s22 }
  0x8a   : > { %p8420_p8 = scmp.ne.s32.totalorder %s891_s22, %s8419_s17  ;;  %p8428_p9 = scmp.lt.s32.totalorder %s8419_s17, %s8419_s17 }
  0x8c   : > { %p8422_p11 = pnand %p8420_p8, %p9099_p13  ;;  %p8429_p1 = por %p8428_p9, %p8427_p6 }
  0x8e   : > { %p8423_p0 = pneg %p8422_p11 }
  0x90   : > { %p8430_p3 = pnand %p8429_p1, %p8423_p0 }
  0x92   : > { %8433 = shalt.err (!%p8430_p3)
}
  0x93   : > { %s10191_s11 = smov 16   ;;  %s10193_s1 = smov 1  }
  0x94   : > { %7900 = dma.hbm_to_vmem [thread:$0]  (!%p9093_p12), %s8956_s12, 32, %s891_s22, [#allocation19], %s10191_s11, %s10191_s11, %s10193_s1  }
  0x95   : > { %s8445_s23 = scalar_lea.vmem %s917_s8, 512  ;;  %p8453_p7 = scmp.lt.s32.totalorder %s917_s8, %s917_s8 }
  0x96   : > { %p8446_p2 = scmp.ne.s32.totalorder %s917_s8, %s8445_s23  ;;  %p8454_p8 = scmp.lt.s32.totalorder %s8445_s23, %s8445_s23 }
  0x98   : > { %p8448_p4 = pnand %p8446_p2, %p9099_p13  ;;  %p8455_p11 = por %p8454_p8, %p8453_p7 }
  0x9a   : > { %p8449_p5 = pneg %p8448_p4 }
  0x9c   : > { %p8456_p0 = pnand %p8455_p11, %p8449_p5 }
  0x9e   : > { %8459 = shalt.err (!%p8456_p0)
}
  0x9f   : > { %7906 = dma.hbm_to_vmem [thread:$0]  (!%p9093_p12), %s8966_s27, 512, %s917_s8, [#allocation22], %s10196_s28, %s10196_s28, %s10197_s18  }
  0xa0   : > { %s8858_s17 = smov [#allocation24]   ;;  %s8859_s15 = smov [#allocation3]  }
  0xa1   : > { %s942_s22 = sshll.u32 %s8858_s17, 4  ;;  %s764_s11 = sshll.u32 %s8859_s15, 4  ;;  %s943_s22 = int_to_ptr.vmem [resolvable:$true] %s942_s22  ;;  %s765_s11 = int_to_ptr.vmem [resolvable:$true] %s764_s11 }
  0xa2   : > { %s8471_s1 = scalar_lea.vmem %s943_s22, 512  ;;  %p8479_p3 = scmp.lt.s32.totalorder %s943_s22, %s943_s22 }
  0xa3   : > { %p8472_p6 = scmp.ne.s32.totalorder %s943_s22, %s8471_s1  ;;  %p8480_p2 = scmp.lt.s32.totalorder %s8471_s1, %s8471_s1 }
  0xa5   : > { %p8474_p9 = pnand %p8472_p6, %p9099_p13  ;;  %p8481_p4 = por %p8480_p2, %p8479_p3 }
  0xa7   : > { %p8475_p1 = pneg %p8474_p9 }
  0xa9   : > { %p8482_p5 = pnand %p8481_p4, %p8475_p1 }
  0xab   : > { %8485 = shalt.err (!%p8482_p5)
}
  0xac   : > { %s10247_s5 = sld [smem:[#allocation49_spill]]  ;;  %s8497_s8 = scalar_lea.vmem %s765_s11, 128 }
  0xad   : > { %p8498_p7 = scmp.ne.s32.totalorder %s765_s11, %s8497_s8  ;;  %p8505_p0 = scmp.lt.s32.totalorder %s765_s11, %s765_s11 }
  0xae   : > { %p8506_p6 = scmp.lt.s32.totalorder %s8497_s8, %s8497_s8 }
  0xaf   : > { %p8500_p8 = pnand %p8498_p7, %p9099_p13 }
  0xb0   : > { %p8507_p9 = por %p8506_p6, %p8505_p0 }
  0xb1   : > { %p8501_p11 = pneg %p8500_p8 }
  0xb2   : > { %7912 = dma.hbm_to_vmem [thread:$0]  (!%p9093_p12), %s10247_s5, 512, %s943_s22, [#allocation25], %s10196_s28, %s10196_s28, %s10197_s18  }
  0xb3   : > { %p8508_p10 = pnand %p8507_p9, %p8501_p11 }
  0xb5   : > { %8511 = shalt.err (!%p8508_p10)
}
  0xb6   : > { %7873 = dma.hbm_to_vmem [thread:$0]  (!%p9093_p12), %s8891_s9, 128, %s765_s11, [#allocation4]  }
  0xb7   : > { %s8860_s1 = smov [#allocation8]   ;;  %s8861_s17 = smov [#allocation11]  }
  0xb8   : > { %s790_s23 = sshll.u32 %s8860_s1, 4  ;;  %s825_s15 = sshll.u32 %s8861_s17, 4  ;;  %s791_s23 = int_to_ptr.vmem [resolvable:$true] %s790_s23  ;;  %s826_s15 = int_to_ptr.vmem [resolvable:$true] %s825_s15 }
  0xb9   : > { %s8523_s22 = scalar_lea.vmem %s791_s23, 512  ;;  %p8531_p4 = scmp.lt.s32.totalorder %s791_s23, %s791_s23 }
  0xba   : > { %p8524_p1 = scmp.ne.s32.totalorder %s791_s23, %s8523_s22  ;;  %p8532_p5 = scmp.lt.s32.totalorder %s8523_s22, %s8523_s22 }
  0xbc   : > { %p8526_p3 = pnand %p8524_p1, %p9099_p13  ;;  %p8533_p7 = por %p8532_p5, %p8531_p4 }
  0xbe   : > { %p8527_p2 = pneg %p8526_p3 }
  0xc0   : > { %p8534_p10 = pnand %p8533_p7, %p8527_p2 }
  0xc2   : > { %8537 = shalt.err (!%p8534_p10)
}
  0xc3   : > { %7879 = dma.hbm_to_vmem [thread:$0]  (!%p9093_p12), %s8906_s21, 512, %s791_s23, [#allocation7], %s10196_s28, %s10196_s28, %s10197_s18  }
  0xc4   : > { %s8549_s11 = scalar_lea.vmem %s826_s15, 32  ;;  %p8557_p6 = scmp.lt.s32.totalorder %s826_s15, %s826_s15 }
  0xc5   : > { %p8550_p8 = scmp.ne.s32.totalorder %s826_s15, %s8549_s11  ;;  %p8558_p9 = scmp.lt.s32.totalorder %s8549_s11, %s8549_s11 }
  0xc7   : > { %p8552_p11 = pnand %p8550_p8, %p9099_p13  ;;  %p8559_p1 = por %p8558_p9, %p8557_p6 }
  0xc9   : > { %p8553_p0 = pneg %p8552_p11 }
  0xcb   : > { %p8560_p3 = pnand %p8559_p1, %p8553_p0 }
  0xcd   : > { %8563 = shalt.err (!%p8560_p3)
}
  0xce   : > { %s10248_s8 = smov 1   ;;  %s10249_s1 = smov 16  }
  0xcf   : > { %7885 = dma.hbm_to_vmem [thread:$0]  (!%p9093_p12), %s8931_s14, 32, %s826_s15, [#allocation10], %s10249_s1, %s10249_s1, %s10248_s8  }
  0xd0   : > { %s8862_s17 = smov [#allocation14]   ;;  %s8863_s22 = smov [#allocation17]  }
  0xd1   : > { %s851_s23 = sshll.u32 %s8862_s17, 4  ;;  %s877_s28 = sshll.u32 %s8863_s22, 4  ;;  %s852_s23 = int_to_ptr.vmem [resolvable:$true] %s851_s23  ;;  %s878_s28 = int_to_ptr.vmem [resolvable:$true] %s877_s28 }
  0xd2   : > { %s8575_s18 = scalar_lea.vmem %s852_s23, 512  ;;  %p8583_p7 = scmp.lt.s32.totalorder %s852_s23, %s852_s23 }
  0xd3   : > { %p8576_p2 = scmp.ne.s32.totalorder %s852_s23, %s8575_s18  ;;  %p8584_p10 = scmp.lt.s32.totalorder %s8575_s18, %s8575_s18 }
  0xd5   : > { %p8578_p4 = pnand %p8576_p2, %p9099_p13  ;;  %p8585_p8 = por %p8584_p10, %p8583_p7 }
  0xd7   : > { %p8579_p5 = pneg %p8578_p4 }
  0xd9   : > { %p8586_p11 = pnand %p8585_p8, %p8579_p5 }
  0xdb   : > { %8589 = shalt.err (!%p8586_p11)
}
  0xdc   : > { %s10250_s11 = smov 4   ;;  %s10251_s15 = smov 64  }
  0xdd   : > { %7891 = dma.hbm_to_vmem [thread:$0]  (!%p9093_p12), %s8941_s24, 512, %s852_s23, [#allocation13], %s10251_s15, %s10251_s15, %s10250_s11  }
  0xde   : > { %s8601_s17 = scalar_lea.vmem %s878_s28, 32  ;;  %p8609_p1 = scmp.lt.s32.totalorder %s878_s28, %s878_s28 }
  0xdf   : > { %p8602_p0 = scmp.ne.s32.totalorder %s878_s28, %s8601_s17  ;;  %p8610_p3 = scmp.lt.s32.totalorder %s8601_s17, %s8601_s17 }
  0xe1   : > { %p8604_p6 = pnand %p8602_p0, %p9099_p13  ;;  %p8611_p2 = por %p8610_p3, %p8609_p1 }
  0xe3   : > { %p8605_p9 = pneg %p8604_p6 }
  0xe5   : > { %p8612_p4 = pnand %p8611_p2, %p8605_p9 }
  0xe7   : > { %8615 = shalt.err (!%p8612_p4)
}
  0xe8   : > { %s10252_s6 = sld [smem:[#allocation47_spill]]  ;;  %s8864_s18 = smov [#allocation20]  }
  0xe9   : > { %s903_s23 = sshll.u32 %s8864_s18, 4  ;;  %s8865_s22 = smov [#allocation23]   ;;  %s904_s23 = int_to_ptr.vmem [resolvable:$true] %s903_s23 }
  0xea   : > { %s929_s11 = sshll.u32 %s8865_s22, 4  ;;  %s8627_s15 = scalar_lea.vmem %s904_s23, 32  ;;  %s930_s11 = int_to_ptr.vmem [resolvable:$true] %s929_s11 }
  0xeb   : > { %p8628_p5 = scmp.ne.s32.totalorder %s904_s23, %s8627_s15  ;;  %p8635_p8 = scmp.lt.s32.totalorder %s904_s23, %s904_s23 }
  0xec   : > { %p8636_p11 = scmp.lt.s32.totalorder %s8627_s15, %s8627_s15 }
  0xed   : > { %p8630_p7 = pnand %p8628_p5, %p9099_p13 }
  0xee   : > { %7897 = dma.hbm_to_vmem [thread:$0]  (!%p9093_p12), %s10252_s6, 32, %s878_s28, [#allocation16], %s10249_s1, %s10249_s1, %s10248_s8  }
  0xef   : > { %p8631_p10 = pneg %p8630_p7  ;;  %p8637_p0 = por %p8636_p11, %p8635_p8 }
  0xf1   : > { %p8638_p6 = pnand %p8637_p0, %p8631_p10 }
  0xf3   : > { %8641 = shalt.err (!%p8638_p6)
}
  0xf4   : > { %7903 = dma.hbm_to_vmem [thread:$0]  (!%p9093_p12), %s8961_s20, 32, %s904_s23, [#allocation19], %s10249_s1, %s10249_s1, %s10248_s8  }
  0xf5   : > { %s8653_s28 = scalar_lea.vmem %s930_s11, 32  ;;  %p8661_p2 = scmp.lt.s32.totalorder %s930_s11, %s930_s11 }
  0xf6   : > { %p8654_p9 = scmp.ne.s32.totalorder %s930_s11, %s8653_s28  ;;  %p8662_p4 = scmp.lt.s32.totalorder %s8653_s28, %s8653_s28 }
  0xf8   : > { %p8656_p1 = pnand %p8654_p9, %p9099_p13  ;;  %p8663_p5 = por %p8662_p4, %p8661_p2 }
  0xfa   : > { %p8657_p3 = pneg %p8656_p1 }
  0xfc   : > { %p8664_p7 = pnand %p8663_p5, %p8657_p3 }
  0xfe   : > { %8667 = shalt.err (!%p8664_p7)
}
  0xff   : > { %s10253_s4 = sld [smem:[#allocation48_spill]]  ;;  %s8866_s17 = smov [#allocation26]  }
 0x100   : > { %s955_s18 = sshll.u32 %s8866_s17, 4  ;;  %s8867_s23 = smov [#allocation27]   ;;  %s956_s18 = int_to_ptr.vmem [resolvable:$true] %s955_s18 }
 0x101   : > { %s980_s22 = sshll.u32 %s8867_s23, 4  ;;  %s8679_s15 = scalar_lea.vmem %s956_s18, 32  ;;  %s981_s22 = int_to_ptr.vmem [resolvable:$true] %s980_s22 }
 0x102   : > { %p8680_p10 = scmp.ne.s32.totalorder %s956_s18, %s8679_s15  ;;  %p8687_p0 = scmp.lt.s32.totalorder %s956_s18, %s956_s18 }
 0x103   : > { %p8688_p6 = scmp.lt.s32.totalorder %s8679_s15, %s8679_s15 }
 0x104   : > { %p8682_p8 = pnand %p8680_p10, %p9099_p13 }
 0x105   : > { %7909 = dma.hbm_to_vmem [thread:$0]  (!%p9093_p12), %s10253_s4, 32, %s930_s11, [#allocation22], %s10249_s1, %s10249_s1, %s10248_s8  }
 0x106   : > { %p8683_p11 = pneg %p8682_p8  ;;  %p8689_p9 = por %p8688_p6, %p8687_p0 }
 0x108   : > { %p8690_p1 = pnand %p8689_p9, %p8683_p11 }
 0x10a   : > { %8693 = shalt.err (!%p8690_p1)
}
 0x10b   : > { %s10254_s11 = sld [smem:[#allocation50_spill]]  ;;  %s8705_s28 = scalar_lea.vmem %s981_s22, 32 }
 0x10c   : > { %p8706_p3 = scmp.ne.s32.totalorder %s981_s22, %s8705_s28  ;;  %p8713_p5 = scmp.lt.s32.totalorder %s981_s22, %s981_s22 }
 0x10d   : > { %p8714_p7 = scmp.lt.s32.totalorder %s8705_s28, %s8705_s28 }
 0x10e   : > { %p8708_p2 = pnand %p8706_p3, %p9099_p13 }
 0x10f   : > { %p8715_p10 = por %p8714_p7, %p8713_p5 }
 0x110   : > { %p8709_p4 = pneg %p8708_p2 }
 0x111   : > { %7915 = dma.hbm_to_vmem [thread:$0]  (!%p9093_p12), %s10254_s11, 32, %s956_s18, [#allocation25], %s10249_s1, %s10249_s1, %s10248_s8  }
 0x112   : > { %p8716_p8 = pnand %p8715_p10, %p8709_p4 }
 0x114   : > { %8719 = shalt.err (!%p8716_p8)
}
 0x115   : > { %s10255_s17 = sld [smem:[#allocation55_spill]]  ;;  %p10256_p11 = scmp.ne.s32.totalorder %s10242_s7, 0 }
 0x116   : > { %p10257_p0 = scmp.eq.s32.totalorder (!%p10256_p11), %s9057_s29, 0 }
 0x117   : > { %1021 = sbr.rel (%p10256_p11) target bundleno = 14292 (0x37d4), region = 140 }
 0x11b   : > { %7918 = dma.hbm_to_vmem [thread:$0]  (!%p9093_p12), %s10255_s17, 32, %s981_s22, [#allocation28], %s10249_s1, %s10249_s1, %s10248_s8  }
 0x11c   : > { %8763 = dma.done.wait (%p10257_p0), [#allocation4], 128   ;;  %p10258_p13 = pmov %p10257_p0 }
 0x11d   : > { %p10259_p6 = pmov %p10257_p0 }
 0x11e   : > { %8765 = vsyncadd (%p10258_p13), [#allocation4], 4294967168 }
 0x11f   : > { %8767 = dma.done.wait (%p10259_p6), [#allocation7], 1024   ;;  %p10260_p9 = pmov %p10257_p0 }
 0x120   : > { %p10261_p1 = pmov %p10257_p0 }
 0x121   : > { %8769 = vsyncadd (%p10260_p9), [#allocation7], 4294966272 }
 0x122   : > { %8771 = dma.done.wait (%p10261_p1), [#allocation10], 544   ;;  %p10262_p12 = pmov %p10257_p0 }
 0x123   : > { %p10263_p3 = pmov %p10257_p0 }
 0x124   : > { %8773 = vsyncadd (%p10262_p12), [#allocation10], 4294966752 }
 0x125   : > { %8775 = dma.done.wait (%p10263_p3), [#allocation13], 1024   ;;  %p10264_p2 = pmov %p10257_p0 }
 0x126   : > { %p10265_p4 = pmov %p10257_p0 }
 0x127   : > { %8777 = vsyncadd (%p10264_p2), [#allocation13], 4294966272 }
 0x128   : > { %8779 = dma.done.wait (%p10265_p4), [#allocation16], 544   ;;  %p10266_p5 = pmov %p10257_p0 }
 0x129   : > { %p10267_p7 = pmov %p10257_p0 }
 0x12a   : > { %8781 = vsyncadd (%p10266_p5), [#allocation16], 4294966752 }
 0x12b   : > { %8783 = dma.done.wait (%p10267_p7), [#allocation19], 64   ;;  %p10268_p10 = pmov %p10257_p0 }
 0x12c   : > { %p10269_p8 = pmov %p10257_p0 }
 0x12d   : > { %8785 = vsyncadd (%p10268_p10), [#allocation19], 4294967232 }
 0x12e   : > { %8787 = dma.done.wait (%p10269_p8), [#allocation22], 544   ;;  %p10270_p11 = pmov %p10257_p0 }
 0x130   : > { %8789 = vsyncadd (%p10270_p11), [#allocation22], 4294966752 }
 0x131   : > { %8791 = dma.done.wait (%p10257_p0), [#allocation25], 544   ;;  %p10271_p13 = pmov %p10257_p0 }
 0x132   : > { %p10272_p6 = pmov %p10257_p0 }
 0x133   : > { %8793 = vsyncadd (%p10271_p13), [#allocation25], 4294966752 }
 0x134   : > { %8795 = dma.done.wait (%p10272_p6), [#allocation28], 32   ;;  %p10273_p9 = pmov %p10257_p0 }
 0x135   : > { %s10274_s10 = sld [smem:[#allocation41_spill]]  ;;  %v8868_v1 = vmov 0.0   ;;  %vm8869_vm0 = vmmov 0   ;;  %v9274_v4 = vld [vmem:[#allocation3] sm:$0xff]  ;;  %vm1212_vm1 = vcmask 261120   ;;  %v8110_v5 = vld [vmem:[#allocation6 + $0x8] sm:$0xff]  }
 0x136   : > { %8797 = vsyncadd (%p10273_p9), [#allocation28], 4294967264  ;;  %7252 = vmatprep.subr.bf16.mxu1 %v8868_v1  ;;  %7256 = vmatprep.mubr.msk.bf16.mxu1 %vm8869_vm0, %v8868_v1  ;;  %v1193_v6 = vpack.c.bf16 %v9274_v4, %v9274_v4  ;;  %v8111_v7 = vld [vmem:[#allocation6] sm:$0xff]   ;;  %s10275_s7 = sld [smem:[#allocation44_spill]]  ;;  %v8112_v8 = vld [vmem:[#allocation8 + $0x8] sm:$0xff]   ;;  %vm1381_vm2 = vcmask 64512  }
 0x137   : > { %7268 = vmatprep.subr.bf16.mxu0 %v8868_v1  ;;  %7272 = vmatprep.mubr.msk.bf16.mxu0 %vm8869_vm0, %v8868_v1  ;;  %s10276_s26 = sld [smem:[#allocation43_spill]]  ;;  %v8113_v9 = vld [vmem:[#allocation8] sm:$0xff]   ;;  %s10208_s1 = smov 120   ;;  %vm1503_vm3 = vcmask 1043456   ;;  %vm2291_vm4 = vcmask 130048   ;;  %vm2294_vm5 = vcmask 195584  }
 0x138   : > { %7269 = vmatpush3.bf16.msra.mxu0 %v8112_v8  ;;  %s10277_s8 = sld [smem:[#allocation45_spill]]  ;;  %s10206_s18 = smov 112   ;;  %vm3751_vm6 = vcmask 523264   ;;  %vm6561_vm7 = vcmask 1041409   ;;  %vm6564_vm8 = vcmask 58368  }
 0x139   : > { %7270 = vmatprep.subr.bf16.mxu0 %v8868_v1  ;;  %s10204_s23 = smov 104   ;;  %s10202_s22 = smov 8  }
 0x13a   : > { %s10200_s15 = smov 16   ;;  %s10198_s11 = smov 24  }
 0x13b   : > { %v8108_v2 = vld [vmem:[%s10274_s10 + $0x8] sm:$0xff]   ;;  %v8109_v3 = vld [vmem:[%s10274_s10] sm:$0xff]   ;;  %s10278_s28 = sld [smem:[#allocation40_spill]]  ;;  %s6861_s17 = sshll.u32 %s9057_s29, 1 }
 0x13c   : > { %7253 = vmatpush3.bf16.msra.mxu1 %v8108_v2  ;;  %7271 = vmatpush3.bf16.msra.mxu0 %v8113_v9  ;;  %v6868_v14 = vld [vmem:[%s10275_s7] ss:$0 sm:$0xff]  ;;  %p1161_p1 = scmp.lt.s32.totalorder %s6861_s17, 3  ;;  %s10291_s5 = smov 112  }
 0x13d   : > { %7254 = vmatprep.subr.bf16.mxu1 %v8868_v1  ;;  %7282 = vmatprep.subr.bf16.mxu0 %v8868_v1  ;;  %v6864_v19 = vld [vmem:[%s10276_s26] ss:$0 sm:$0xff]  ;;  %s10292_s6 = smov 104   ;;  %p10294_p3 = scmp.ne.s32.totalorder %s10239_s2, 0 }
 0x13e   : > { %v6872_v30 = vld [vmem:[%s10277_s8] ss:$0 sm:$0xff]  ;;  %s10304_s17 = smov (!%p1161_p1, %s6861_s17), 3 }
 0x13f   : > { %7273 = vmatmul.mubr.msk.bf16.vlgmr.msra.gmra.mxu0 %vm1212_vm1, %v1193_v6 }
 0x140   : > { %7255 = vmatpush3.bf16.msra.mxu1 %v8109_v3  ;;  %7284 = vmatprep.mubr.msk.bf16.mxu0 %vm8869_vm0, %v8868_v1 }
 0x141   : > { %7260 = vmatprep.subr.bf16.mxu1 %v8868_v1 }
 0x143   : > { %7257 = vmatmul.mubr.msk.bf16.vlgmr.msra.gmra.mxu1 %vm1212_vm1, %v1193_v6 }
 0x144   : > { %7261 = vmatpush3.bf16.msra.mxu1 %v8110_v5  ;;  %7264 = vmatprep.mubr.msk.bf16.mxu1 %vm8869_vm0, %v8868_v1 }
 0x145   : > { %7262 = vmatprep.subr.bf16.mxu1 %v8868_v1 }
 0x148   : > { %7263 = vmatpush3.bf16.msra.mxu1 %v8111_v7 }
 0x149   : > { %7276 = vmatprep.subr.bf16.mxu1 %v8868_v1 }
 0x14b   : > { %7265 = vmatmul.mubr.msk.bf16.vlgmr.msra.gmra.mxu1 %vm1212_vm1, %v1193_v6 }
 0x14c   : > { %7278 = vmatprep.mubr.msk.bf16.mxu1 %vm8869_vm0, %v8868_v1 }
 0x1ff   : > { %v1368_v31 = vpop.f32.mrf.mxu0 }
 0x200   : > { %v1369_v33 = vadd.f32 %v6872_v30, %v1368_v31 }
 0x201   : > { %v7274_v32 = vpop.f32.mrf.mxu0 }
 0x202   : > { %v9320_v37 = vpack.c.bf16 %v1369_v33, %v1369_v33 }
 0x203   : > { %v1250_v10 = vpop.f32.mrf.mxu1  ;;  %v1371_v34 = vpop.f32.mrf.mxu0 }
 0x204   : > { %v1251_v24 = vadd.f32 %v6864_v19, %v1250_v10  ;;  %v1372_v35 = vadd.f32 %v6872_v30, %v1371_v34  ;;  %v1505_v39 = vsel %vm1503_vm3, %v9320_v37, 0 }
 0x205   : > { %v7258_v11 = vpop.f32.mrf.mxu1  ;;  %v7275_v36 = vpop.f32.mrf.mxu0 }
 0x206   : > { %v9306_v27 = vpack.c.bf16 %v1251_v24, %v1251_v24  ;;  %v9322_v38 = vpack.c.bf16 %v1372_v35, %v1372_v35 }
 0x207   : > { %v1253_v12 = vpop.f32.mrf.mxu1 }
 0x208   : > { %v1254_v28 = vadd.f32 %v6864_v19, %v1253_v12  ;;  %v1551_v40 = vsel %vm1503_vm3, %v9322_v38, 0 }
 0x209   : > { %v7259_v13 = vpop.f32.mrf.mxu1 }
 0x20a   : > { %v9313_v29 = vpack.c.bf16 %v1254_v28, %v1254_v28 }
 0x20b   : > { %v1309_v15 = vpop.f32.mrf.mxu1 }
 0x20c   : > { %v1310_v16 = vadd.f32 %v6868_v14, %v1309_v15 }
 0x20d   : > { %v7266_v17 = vpop.f32.mrf.mxu1 }
 0x20e   : > { %v9294_v18 = vpack.c.bf16 %v1310_v16, %v1310_v16 }
 0x20f   : > { %v1312_v20 = vpop.f32.mrf.mxu1 }
 0x210   : > { %v1313_v21 = vadd.f32 %v6868_v14, %v1312_v20  ;;  %v1386_v22 = vsel %vm1381_vm2, %v9294_v18, 0 }
 0x211   : > { %v7267_v23 = vpop.f32.mrf.mxu1  ;;  %7277 = vmatpush3.bf16.xpose.msra.mxu1 %v1386_v22 }
 0x212   : > { %v9299_v25 = vpack.c.bf16 %v1313_v21, %v1313_v21  ;;  %7288 = vmatprep.subr.bf16.mxu1 %v8868_v1 }
 0x214   : > { %1649 = vrot.lane.b32.xlu1 %v9299_v25, %s10208_s1  ;;  %v1432_v26 = vsel %vm1381_vm2, %v9299_v25, 0 }
 0x215   : > { %7283 = vmatpush3.bf16.xpose.msra.mxu0 %v1432_v26 }
 0x216   : > { %7294 = vmatprep.subr.bf16.mxu0 %v8868_v1 }
 0x218   : > { %7279 = vmatmul.mubr.msk.bf16.vlgmr.msra.gmra.mxu1 %vm1381_vm2, %v9306_v27 }
 0x219   : > { %7290 = vmatprep.mubr.msk.bf16.mxu1 %vm8869_vm0, %v8868_v1  ;;  %7289 = vmatpush3.bf16.msra.mxu1 %v1505_v39 }
 0x21a   : > { %7300 = vmatprep.subr.bf16.mxu1 %v8868_v1 }
 0x21c   : > { %7285 = vmatmul.mubr.msk.bf16.vlgmr.msra.gmra.mxu0 %vm1381_vm2, %v9313_v29 }
 0x21d   : > { %7296 = vmatprep.mubr.msk.bf16.mxu0 %vm8869_vm0, %v8868_v1  ;;  %7295 = vmatpush3.bf16.msra.mxu0 %v1551_v40 }
 0x21e   : > { %7306 = vmatprep.subr.bf16.mxu0 %v8868_v1 }
 0x286   : > { %v1650_v63 = vpop.permute.xlu1 %1649 }
 0x287   : > { %v1655_v12 = vsel %vm1381_vm2, %v1650_v63, 0 }
 0x2d8   : > { %v1422_v41 = vpop.f32.mrf.mxu1 }
 0x2d9   : > { %v1474_v42 = vmul.f32 0.35355338, %v1422_v41 }
 0x2da   : > { %v7280_v43 = vpop.f32.mrf.mxu1 }
 0x2db   : > { %v1476_v44 = vsel %vm1381_vm2, %v1474_v42, -inf }
 0x2dc   : > { %v1468_v45 = vpop.f32.mrf.mxu0  ;;  %1477 = vmax.xlane.f32.xlu0 %v1476_v44  ;;  %v1425_v46 = vpop.f32.mrf.mxu1 }
 0x2dd   : > { %v1475_v47 = vmul.f32 0.35355338, %v1468_v45 }
 0x2de   : > { %v7281_v48 = vpop.f32.mrf.mxu1  ;;  %v7286_v49 = vpop.f32.mrf.mxu0 }
 0x2df   : > { %v1479_v50 = vsel %vm1381_vm2, %v1475_v47, -inf }
 0x2e0   : > { %v1471_v51 = vpop.f32.mrf.mxu0  ;;  %1480 = vmax.xlane.f32.xlu0 %v1479_v50 }
 0x2e2   : > { %v7287_v52 = vpop.f32.mrf.mxu0 }
 0x2f6   : > { %1597 = vrot.lane.b32.xlu0 %v9294_v18, %s10208_s1 }
 0x365   : > { %v1478_v53 = vpop.xlane.xlu0 %1477 }
 0x366   : > { %v1482_v54 = vsub.f32 %v1474_v42, %v1478_v53 }
 0x368   : > { %v1484_v55 = vmul.f32 1.442695, %v1482_v54 }
 0x369   : > { %v1481_v56 = vpop.xlane.xlu0 %1480 }
 0x36a   : > { %8152 = vpow2.f32 %v1484_v55  ;;  %v1483_v57 = vsub.f32 %v1475_v47, %v1481_v56 }
 0x36c   : > { %v1486_v58 = vmul.f32 1.442695, %v1483_v57 }
 0x36d   : > { %v1598_v6 = vpop.permute.xlu0 %1597 }
 0x36e   : > { %8154 = vpow2.f32 %v1486_v58  ;;  %v1603_v9 = vsel %vm1381_vm2, %v1598_v6, 0 }
 0x377   : > { %v8153_v59 = vpop.eup %8152 }
 0x378   : > { %v1488_v60 = vsel %vm1381_vm2, %v8153_v59, 0.0 }
 0x379   : > { %1489 = vadd.xlane.f32.xlu1 %v1488_v60 }
 0x37b   : > { %v8155_v61 = vpop.eup %8154 }
 0x37c   : > { %v1491_v62 = vsel %vm1381_vm2, %v8155_v61, 0.0 }
 0x37d   : > { %1492 = vadd.xlane.f32.xlu1 %v1491_v62 }
 0x38e   : > { %1594 = vrot.lane.b32.xlu1 %v9306_v27, %s10208_s1 }
 0x392   : > { %1646 = vrot.lane.b32.xlu1 %v9313_v29, %s10208_s1 }
 0x402   : > { %v1490_v0 = vpop.xlane.xlu1 %1489 }
 0x403   : > { %8156 = vrcp.f32 %v1490_v0 }
 0x406   : > { %v1493_v2 = vpop.xlane.xlu1 %1492 }
 0x407   : > { %8158 = vrcp.f32 %v1493_v2 }
 0x40a   : > { %v1595_v13 = vpop.permute.xlu1 %1594 }
 0x40e   : > { %v1647_v14 = vpop.permute.xlu1 %1646 }
 0x410   : > { %v8157_v3 = vpop.eup %8156 }
 0x411   : > { %v1496_v5 = vmul.f32 %v8157_v3, %v8153_v59 }
 0x413   : > { %v1498_v7 = vpack.c.bf16 %v1496_v5, %v1496_v5 }
 0x414   : > { %v8159_v8 = vpop.eup %8158 }
 0x415   : > { %7291 = vmatmul.mubr.msk.bf16.vlgmr.msra.gmra.mxu1 %vm1381_vm2, %v1498_v7  ;;  %v1497_v10 = vmul.f32 %v8159_v8, %v8155_v61 }
 0x416   : > { %7301 = vmatpush3.bf16.xpose.msra.mxu1 %v1603_v9  ;;  %7302 = vmatprep.mubr.msk.bf16.mxu1 %vm8869_vm0, %v8868_v1 }
 0x417   : > { %v1499_v11 = vpack.c.bf16 %v1497_v10, %v1497_v10  ;;  %7312 = vmatprep.subr.bf16.mxu1 %v8868_v1 }
 0x419   : > { %7297 = vmatmul.mubr.msk.bf16.vlgmr.msra.gmra.mxu0 %vm1381_vm2, %v1499_v11 }
 0x41a   : > { %7307 = vmatpush3.bf16.xpose.msra.mxu0 %v1655_v12  ;;  %7308 = vmatprep.mubr.msk.bf16.mxu0 %vm8869_vm0, %v8868_v1 }
 0x41b   : > { %7318 = vmatprep.subr.bf16.mxu0 %v8868_v1 }
 0x41d   : > { %7303 = vmatmul.mubr.msk.bf16.vlgmr.msra.gmra.mxu1 %vm1381_vm2, %v1595_v13 }
 0x41e   : > { %7314 = vmatprep.mubr.msk.bf16.mxu1 %vm8869_vm0, %v8868_v1 }
 0x421   : > { %7309 = vmatmul.mubr.msk.bf16.vlgmr.msra.gmra.mxu0 %vm1381_vm2, %v1647_v14 }
 0x422   : > { %7320 = vmatprep.mubr.msk.bf16.mxu0 %vm8869_vm0, %v8868_v1 }
 0x4d5   : > { %v9356_v15 = vpop.f32.mrf.mxu1 }
 0x4d7   : > { %v7292_v16 = vpop.f32.mrf.mxu1 }
 0x4d9   : > { %v1544_v17 = vpop.f32.mrf.mxu1  ;;  %v9358_v19 = vpop.f32.mrf.mxu0 }
 0x4db   : > { %v7293_v20 = vpop.f32.mrf.mxu1  ;;  %v7298_v21 = vpop.f32.mrf.mxu0 }
 0x4dd   : > { %v1590_v22 = vpop.f32.mrf.mxu0  ;;  %v1639_v23 = vpop.f32.mrf.mxu1 }
 0x4de   : > { %v1697_v24 = vmul.f32 0.35355338, %v1639_v23 }
 0x4df   : > { %v7299_v26 = vpop.f32.mrf.mxu0  ;;  %v7304_v28 = vpop.f32.mrf.mxu1 }
 0x4e0   : > { %v1699_v30 = vsel %vm1381_vm2, %v1697_v24, -inf }
 0x4e1   : > { %v1691_v31 = vpop.f32.mrf.mxu0  ;;  %1700 = vmax.xlane.f32.xlu0 %v1699_v30  ;;  %v1642_v32 = vpop.f32.mrf.mxu1 }
 0x4e2   : > { %v1698_v33 = vmul.f32 0.35355338, %v1691_v31 }
 0x4e3   : > { %v7305_v34 = vpop.f32.mrf.mxu1  ;;  %v7310_v35 = vpop.f32.mrf.mxu0 }
 0x4e4   : > { %v1702_v36 = vsel %vm1381_vm2, %v1698_v33, -inf }
 0x4e5   : > { %1703 = vmax.xlane.f32.xlu1 %v1702_v36  ;;  %v1694_v39 = vpop.f32.mrf.mxu0 }
 0x4e7   : > { %v7311_v40 = vpop.f32.mrf.mxu0 }
 0x4f6   : > { %1773 = vrot.lane.b32.xlu1 %v9322_v38, %s10208_s1 }
 0x4fa   : > { %1823 = vrot.lane.b32.xlu1 %v9294_v18, %s10206_s18 }
 0x4fe   : > { %1873 = vrot.lane.b32.xlu1 %v9299_v25, %s10206_s18 }
 0x502   : > { %1871 = vrot.lane.b32.xlu1 %v9313_v29, %s10206_s18 }
 0x56a   : > { %v1701_v41 = vpop.xlane.xlu0 %1700 }
 0x56b   : > { %v1705_v42 = vsub.f32 %v1697_v24, %v1701_v41 }
 0x56d   : > { %v1707_v43 = vmul.f32 1.442695, %v1705_v42 }
 0x56e   : > { %v1704_v44 = vpop.xlane.xlu1 %1703 }
 0x56f   : > { %8160 = vpow2.f32 %v1707_v43  ;;  %v1706_v45 = vsub.f32 %v1698_v33, %v1704_v44 }
 0x571   : > { %v1709_v46 = vmul.f32 1.442695, %v1706_v45 }
 0x572   : > { %v1774_v47 = vpop.permute.xlu1 %1773 }
 0x573   : > { %8162 = vpow2.f32 %v1709_v46  ;;  %v1779_v48 = vsel %vm1503_vm3, %v1774_v47, 0 }
 0x574   : > { %7319 = vmatpush3.bf16.msra.mxu0 %v1779_v48 }
 0x575   : > { %7330 = vmatprep.subr.bf16.mxu0 %v8868_v1 }
 0x576   : > { %v1824_v58 = vpop.permute.xlu1 %1823 }
 0x577   : > { %v1829_v62 = vsel %vm1381_vm2, %v1824_v58, 0 }
 0x57a   : > { %v1874_v0 = vpop.permute.xlu1 %1873 }
 0x57b   : > { %v1879_v3 = vsel %vm1381_vm2, %v1874_v0, 0 }
 0x57c   : > { %v8161_v49 = vpop.eup %8160 }
 0x57d   : > { %v1711_v50 = vsel %vm1381_vm2, %v8161_v49, 0.0 }
 0x57e   : > { %1712 = vadd.xlane.f32.xlu0 %v1711_v50  ;;  %v1872_v6 = vpop.permute.xlu1 %1871 }
 0x580   : > { %v8163_v51 = vpop.eup %8162 }
 0x581   : > { %v1714_v52 = vsel %vm1381_vm2, %v8163_v51, 0.0 }
 0x582   : > { %1715 = vadd.xlane.f32.xlu0 %v1714_v52 }
 0x598   : > { %1724 = vrot.lane.b32.xlu0 %v9320_v37, %s10208_s1 }
 0x59c   : > { %1821 = vrot.lane.b32.xlu0 %v9306_v27, %s10206_s18 }
 0x607   : > { %v1713_v53 = vpop.xlane.xlu0 %1712 }
 0x608   : > { %8164 = vrcp.f32 %v1713_v53 }
 0x60b   : > { %v1716_v54 = vpop.xlane.xlu0 %1715 }
 0x60c   : > { %8166 = vrcp.f32 %v1716_v54 }
 0x60f   : > { %v1725_v55 = vpop.permute.xlu0 %1724 }
 0x610   : > { %v1730_v56 = vsel %vm1503_vm3, %v1725_v55, 0 }
 0x611   : > { %7313 = vmatpush3.bf16.msra.mxu1 %v1730_v56 }
 0x612   : > { %7324 = vmatprep.subr.bf16.mxu1 %v8868_v1 }
 0x613   : > { %v1822_v5 = vpop.permute.xlu0 %1821 }
 0x615   : > { %v8165_v57 = vpop.eup %8164 }
 0x616   : > { %v1719_v59 = vmul.f32 %v8165_v57, %v8161_v49 }
 0x618   : > { %v1721_v60 = vpack.c.bf16 %v1719_v59, %v1719_v59 }
 0x619   : > { %v8167_v61 = vpop.eup %8166 }
 0x61a   : > { %7315 = vmatmul.mubr.msk.bf16.vlgmr.msra.gmra.mxu1 %vm1381_vm2, %v1721_v60  ;;  %v1720_v63 = vmul.f32 %v8167_v61, %v8163_v51 }
 0x61b   : > { %7325 = vmatpush3.bf16.xpose.msra.mxu1 %v1829_v62  ;;  %7326 = vmatprep.mubr.msk.bf16.mxu1 %vm8869_vm0, %v8868_v1 }
 0x61c   : > { %v1722_v2 = vpack.c.bf16 %v1720_v63, %v1720_v63  ;;  %7336 = vmatprep.subr.bf16.mxu1 %v8868_v1 }
 0x61e   : > { %7321 = vmatmul.mubr.msk.bf16.vlgmr.msra.gmra.mxu0 %vm1381_vm2, %v1722_v2 }
 0x61f   : > { %7331 = vmatpush3.bf16.xpose.msra.mxu0 %v1879_v3  ;;  %7332 = vmatprep.mubr.msk.bf16.mxu0 %vm8869_vm0, %v8868_v1 }
 0x620   : > { %7342 = vmatprep.subr.bf16.mxu0 %v8868_v1 }
 0x622   : > { %7327 = vmatmul.mubr.msk.bf16.vlgmr.msra.gmra.mxu1 %vm1381_vm2, %v1822_v5 }
 0x623   : > { %7338 = vmatprep.mubr.msk.bf16.mxu1 %vm8869_vm0, %v8868_v1 }
 0x626   : > { %7333 = vmatmul.mubr.msk.bf16.vlgmr.msra.gmra.mxu0 %vm1381_vm2, %v1872_v6 }
 0x627   : > { %7344 = vmatprep.mubr.msk.bf16.mxu0 %vm8869_vm0, %v8868_v1 }
 0x6da   : > { %v9396_v7 = vpop.f32.mrf.mxu1 }
 0x6dc   : > { %v7316_v8 = vpop.f32.mrf.mxu1 }
 0x6de   : > { %v1769_v9 = vpop.f32.mrf.mxu1  ;;  %v9398_v10 = vpop.f32.mrf.mxu0 }
 0x6df   : > { %v8047_v11 = vpack.i.bf16 %v9398_v10, %v9396_v7 }
 0x6e0   : > { %v7317_v12 = vpop.f32.mrf.mxu1  ;;  %v7322_v13 = vpop.f32.mrf.mxu0 }
 0x6e2   : > { %v1818_v14 = vpop.f32.mrf.mxu0  ;;  %v1865_v16 = vpop.f32.mrf.mxu1 }
 0x6e3   : > { %v1921_v17 = vmul.f32 0.35355338, %v1865_v16 }
 0x6e4   : > { %v7323_v20 = vpop.f32.mrf.mxu0  ;;  %v7328_v21 = vpop.f32.mrf.mxu1 }
 0x6e5   : > { %v1923_v22 = vsel %vm1381_vm2, %v1921_v17, -inf }
 0x6e6   : > { %v1915_v23 = vpop.f32.mrf.mxu0  ;;  %1924 = vmax.xlane.f32.xlu0 %v1923_v22  ;;  %v1868_v24 = vpop.f32.mrf.mxu1 }
 0x6e7   : > { %v1922_v26 = vmul.f32 0.35355338, %v1915_v23 }
 0x6e8   : > { %v7329_v28 = vpop.f32.mrf.mxu1  ;;  %v7334_v30 = vpop.f32.mrf.mxu0 }
 0x6e9   : > { %v1926_v31 = vsel %vm1381_vm2, %v1922_v26, -inf }
 0x6ea   : > { %1927 = vmax.xlane.f32.xlu1 %v1926_v31  ;;  %v1918_v32 = vpop.f32.mrf.mxu0 }
 0x6ec   : > { %v7335_v33 = vpop.f32.mrf.mxu0 }
 0x6fb   : > { %1995 = vrot.lane.b32.xlu1 %v9322_v38, %s10206_s18 }
 0x6ff   : > { %2045 = vrot.lane.b32.xlu1 %v9294_v18, %s10204_s23 }
 0x703   : > { %2095 = vrot.lane.b32.xlu1 %v9299_v25, %s10204_s23 }
 0x707   : > { %2093 = vrot.lane.b32.xlu1 %v9313_v29, %s10204_s23 }
 0x76f   : > { %v1925_v34 = vpop.xlane.xlu0 %1924 }
 0x770   : > { %v1929_v35 = vsub.f32 %v1921_v17, %v1925_v34 }
 0x772   : > { %v1931_v36 = vmul.f32 1.442695, %v1929_v35 }
 0x773   : > { %v1928_v39 = vpop.xlane.xlu1 %1927 }
 0x774   : > { %8168 = vpow2.f32 %v1931_v36  ;;  %v1930_v40 = vsub.f32 %v1922_v26, %v1928_v39 }
 0x776   : > { %v1933_v41 = vmul.f32 1.442695, %v1930_v40 }
 0x777   : > { %v1996_v42 = vpop.permute.xlu1 %1995 }
 0x778   : > { %8170 = vpow2.f32 %v1933_v41  ;;  %v2001_v43 = vsel %vm1503_vm3, %v1996_v42, 0 }
 0x779   : > { %7343 = vmatpush3.bf16.msra.mxu0 %v2001_v43 }
 0x77a   : > { %7354 = vmatprep.subr.bf16.mxu0 %v8868_v1 }
 0x77b   : > { %v2046_v50 = vpop.permute.xlu1 %2045 }
 0x77c   : > { %v2051_v54 = vsel %vm1381_vm2, %v2046_v50, 0 }
 0x77f   : > { %v2096_v55 = vpop.permute.xlu1 %2095 }
 0x780   : > { %v2101_v57 = vsel %vm1381_vm2, %v2096_v55, 0 }
 0x781   : > { %v8169_v18 = vpop.eup %8168 }
 0x782   : > { %v1935_v25 = vsel %vm1381_vm2, %v8169_v18, 0.0 }
 0x783   : > { %1936 = vadd.xlane.f32.xlu0 %v1935_v25  ;;  %v2094_v59 = vpop.permute.xlu1 %2093 }
 0x785   : > { %v8171_v44 = vpop.eup %8170 }
 0x786   : > { %v1938_v29 = vsel %vm1381_vm2, %v8171_v44, 0.0 }
 0x787   : > { %1939 = vadd.xlane.f32.xlu0 %v1938_v29  ;;  %v8114_v29 = vld [vmem:[#allocation9 + $0x8] sm:$0xff]  }
 0x79d   : > { %1947 = vrot.lane.b32.xlu0 %v9320_v37, %s10206_s18 }
 0x7a1   : > { %2043 = vrot.lane.b32.xlu0 %v9306_v27, %s10204_s23 }
 0x80c   : > { %v1937_v45 = vpop.xlane.xlu0 %1936 }
 0x80d   : > { %8172 = vrcp.f32 %v1937_v45  ;;  %v8115_v45 = vld [vmem:[#allocation9] sm:$0xff]  }
 0x810   : > { %v1940_v46 = vpop.xlane.xlu0 %1939 }
 0x811   : > { %8174 = vrcp.f32 %v1940_v46 }
 0x814   : > { %v1948_v47 = vpop.permute.xlu0 %1947 }
 0x815   : > { %v1953_v48 = vsel %vm1503_vm3, %v1948_v47, 0 }
 0x816   : > { %7337 = vmatpush3.bf16.msra.mxu1 %v1953_v48 }
 0x817   : > { %7348 = vmatprep.subr.bf16.mxu1 %v8868_v1 }
 0x818   : > { %v2044_v58 = vpop.permute.xlu0 %2043 }
 0x81a   : > { %v8173_v49 = vpop.eup %8172 }
 0x81b   : > { %v1943_v51 = vmul.f32 %v8173_v49, %v8169_v18 }
 0x81d   : > { %v1945_v52 = vpack.c.bf16 %v1943_v51, %v1943_v51 }
 0x81e   : > { %v8175_v53 = vpop.eup %8174 }
 0x81f   : > { %7339 = vmatmul.mubr.msk.bf16.vlgmr.msra.gmra.mxu1 %vm1381_vm2, %v1945_v52  ;;  %v1944_v27 = vmul.f32 %v8175_v53, %v8171_v44 }
 0x820   : > { %7349 = vmatpush3.bf16.xpose.msra.mxu1 %v2051_v54  ;;  %7350 = vmatprep.mubr.msk.bf16.mxu1 %vm8869_vm0, %v8868_v1 }
 0x821   : > { %v1946_v56 = vpack.c.bf16 %v1944_v27, %v1944_v27  ;;  %7360 = vmatprep.subr.bf16.mxu1 %v8868_v1 }
 0x823   : > { %7345 = vmatmul.mubr.msk.bf16.vlgmr.msra.gmra.mxu0 %vm1381_vm2, %v1946_v56 }
 0x824   : > { %7355 = vmatpush3.bf16.xpose.msra.mxu0 %v2101_v57  ;;  %7356 = vmatprep.mubr.msk.bf16.mxu0 %vm8869_vm0, %v8868_v1 }
 0x825   : > { %7366 = vmatprep.subr.bf16.mxu0 %v8868_v1 }
 0x827   : > { %7351 = vmatmul.mubr.msk.bf16.vlgmr.msra.gmra.mxu1 %vm1381_vm2, %v2044_v58 }
 0x828   : > { %7362 = vmatprep.mubr.msk.bf16.mxu1 %vm8869_vm0, %v8868_v1 }
 0x82b   : > { %7357 = vmatmul.mubr.msk.bf16.vlgmr.msra.gmra.mxu0 %vm1381_vm2, %v2094_v59 }
 0x82c   : > { %7368 = vmatprep.mubr.msk.bf16.mxu0 %vm8869_vm0, %v8868_v1 }
 0x8df   : > { %v1989_v60 = vpop.f32.mrf.mxu1 }
 0x8e1   : > { %v7340_v61 = vpop.f32.mrf.mxu1 }
 0x8e3   : > { %v1992_v62 = vpop.f32.mrf.mxu1  ;;  %v2037_v63 = vpop.f32.mrf.mxu0 }
 0x8e4   : > { %v8052_v24 = vpack.i.bf16 %v2037_v63, %v1989_v60 }
 0x8e5   : > { %v7341_v0 = vpop.f32.mrf.mxu1  ;;  %v7346_v2 = vpop.f32.mrf.mxu0 }
 0x8e7   : > { %v2040_v3 = vpop.f32.mrf.mxu0  ;;  %v2087_v5 = vpop.f32.mrf.mxu1 }
 0x8e8   : > { %v2143_v6 = vmul.f32 0.35355338, %v2087_v5 }
 0x8e9   : > { %v7347_v8 = vpop.f32.mrf.mxu0  ;;  %v7352_v9 = vpop.f32.mrf.mxu1 }
 0x8ea   : > { %v2145_v12 = vsel %vm1381_vm2, %v2143_v6, -inf  ;;  %v6892_v9 = vld [vmem:[#allocation11] ss:$0 sm:$0xff] }
 0x8eb   : > { %v2137_v13 = vpop.f32.mrf.mxu0  ;;  %2146 = vmax.xlane.f32.xlu0 %v2145_v12  ;;  %v2090_v14 = vpop.f32.mrf.mxu1 }
 0x8ec   : > { %v2144_v16 = vmul.f32 0.35355338, %v2137_v13 }
 0x8ed   : > { %v7353_v17 = vpop.f32.mrf.mxu1  ;;  %v7358_v20 = vpop.f32.mrf.mxu0 }
 0x8ee   : > { %v2148_v21 = vsel %vm1381_vm2, %v2144_v16, -inf }
 0x8ef   : > { %2149 = vmax.xlane.f32.xlu1 %v2148_v21  ;;  %v2140_v22 = vpop.f32.mrf.mxu0 }
 0x8f1   : > { %v7359_v23 = vpop.f32.mrf.mxu0 }
 0x900   : > { %2217 = vrot.lane.b32.xlu1 %v9322_v38, %s10204_s23 }
 0x904   : > { %8048 = vrot.lane.b32.xlu1 %v8047_v11, %s10202_s22 }
 0x908   : > { %8053 = vrot.lane.b32.xlu1 %v8052_v24, %s10200_s15 }
 0x974   : > { %v2147_v26 = vpop.xlane.xlu0 %2146 }
 0x975   : > { %v2151_v28 = vsub.f32 %v2143_v6, %v2147_v26 }
 0x977   : > { %v2153_v30 = vmul.f32 1.442695, %v2151_v28 }
 0x978   : > { %v2150_v31 = vpop.xlane.xlu1 %2149 }
 0x979   : > { %8176 = vpow2.f32 %v2153_v30  ;;  %v2152_v32 = vsub.f32 %v2144_v16, %v2150_v31 }
 0x97b   : > { %v2155_v33 = vmul.f32 1.442695, %v2152_v32 }
 0x97c   : > { %v2218_v34 = vpop.permute.xlu1 %2217 }
 0x97d   : > { %8178 = vpow2.f32 %v2155_v33  ;;  %v2223_v38 = vsel %vm1503_vm3, %v2218_v34, 0 }
 0x97e   : > { %7367 = vmatpush3.bf16.msra.mxu0 %v2223_v38 }
 0x97f   : > { %7380 = vmatprep.subr.bf16.mxu0 %v8868_v1 }
 0x980   : > { %v8049_v27 = vpop.permute.xlu1 %8048 }
 0x981   : > { %v8051_v56 = vunpack.i.h.bf16 %v8049_v27  ;;  %v8050_v57 = vunpack.i.l.bf16 %v8049_v27 }
 0x983   : > { %v2290_v61 = vsel %vm1381_vm2, %v9358_v19, %v8051_v56  ;;  %v2289_v62 = vsel %vm1381_vm2, %v9356_v15, %v8050_v57  ;;  %v8121_v56 = vld [vmem:[#allocation15] sm:$0xff]  }
 0x984   : > { %v8054_v55 = vpop.permute.xlu1 %8053 }
 0x985   : > { %v8056_v58 = vunpack.i.h.bf16 %v8054_v55  ;;  %v8055_v59 = vunpack.i.l.bf16 %v8054_v55 }
 0x986   : > { %v8177_v7 = vpop.eup %8176 }
 0x987   : > { %v2157_v10 = vsel %vm1381_vm2, %v8177_v7, 0.0  ;;  %v2293_v2 = vsel %vm2291_vm4, %v2290_v61, %v8056_v58  ;;  %v2292_v3 = vsel %vm2291_vm4, %v2289_v62, %v8055_v59  ;;  %v6902_v58 = vld [vmem:[#allocation18] ss:$0 sm:$0xff] }
 0x988   : > { %2158 = vadd.xlane.f32.xlu0 %v2157_v10 }
 0x98a   : > { %v8179_v11 = vpop.eup %8178 }
 0x98b   : > { %v2160_v35 = vsel %vm1381_vm2, %v8179_v11, 0.0 }
 0x98c   : > { %2161 = vadd.xlane.f32.xlu0 %v2160_v35 }
 0x9a2   : > { %2169 = vrot.lane.b32.xlu0 %v9320_v37, %s10204_s23 }
 0xa11   : > { %v2159_v36 = vpop.xlane.xlu0 %2158 }
 0xa12   : > { %8180 = vrcp.f32 %v2159_v36 }
 0xa15   : > { %v2162_v39 = vpop.xlane.xlu0 %2161 }
 0xa16   : > { %8182 = vrcp.f32 %v2162_v39 }
 0xa19   : > { %v2170_v40 = vpop.permute.xlu0 %2169 }
 0xa1a   : > { %v2175_v41 = vsel %vm1503_vm3, %v2170_v40, 0 }
 0xa1b   : > { %7361 = vmatpush3.bf16.msra.mxu1 %v2175_v41  ;;  %v8118_v41 = vld [vmem:[#allocation12 + $0x8] sm:$0xff]  }
 0xa1c   : > { %7372 = vmatprep.subr.bf16.mxu1 %v8868_v1 }
 0xa1f   : > { %v8181_v42 = vpop.eup %8180 }
 0xa20   : > { %v2165_v43 = vmul.f32 %v8181_v42, %v8177_v7  ;;  %v8117_v7 = vld [vmem:[#allocation14] sm:$0xff]  }
 0xa21   : > { %v8119_v42 = vld [vmem:[#allocation12] sm:$0xff]  }
 0xa22   : > { %v2167_v18 = vpack.c.bf16 %v2165_v43, %v2165_v43  ;;  %v8120_v43 = vld [vmem:[#allocation15 + $0x8] sm:$0xff]  }
 0xa23   : > { %v8183_v25 = vpop.eup %8182 }
 0xa24   : > { %7363 = vmatmul.mubr.msk.bf16.vlgmr.msra.gmra.mxu1 %vm1381_vm2, %v2167_v18  ;;  %v2166_v44 = vmul.f32 %v8183_v25, %v8179_v11 }
 0xa25   : > { %7376 = vmatprep.mubr.msk.bf16.mxu1 %vm8869_vm0, %v8868_v1  ;;  %7373 = vmatpush3.bf16.msra.mxu1 %v8114_v29 }
 0xa26   : > { %v2168_v37 = vpack.c.bf16 %v2166_v44, %v2166_v44  ;;  %7374 = vmatprep.subr.bf16.mxu1 %v8868_v1 }
 0xa28   : > { %7369 = vmatmul.mubr.msk.bf16.vlgmr.msra.gmra.mxu0 %vm1381_vm2, %v2168_v37 }
 0xa29   : > { %7384 = vmatprep.mubr.msk.bf16.mxu0 %vm8869_vm0, %v8868_v1  ;;  %7375 = vmatpush3.bf16.msra.mxu1 %v8115_v45 }
 0xa2a   : > { %7381 = vmatpush3.bf16.msra.mxu0 %v8118_v41 }
 0xa2b   : > { %7382 = vmatprep.subr.bf16.mxu0 %v8868_v1 }
 0xa2e   : > { %7383 = vmatpush3.bf16.msra.mxu0 %v8119_v42 }
 0xa2f   : > { %7396 = vmatprep.subr.bf16.mxu0 %v8120_v43 }
 0xae4   : > { %v2211_v46 = vpop.f32.mrf.mxu1 }
 0xae6   : > { %v7364_v47 = vpop.f32.mrf.mxu1 }
 0xae8   : > { %v2214_v48 = vpop.f32.mrf.mxu1  ;;  %v2259_v49 = vpop.f32.mrf.mxu0 }
 0xae9   : > { %v8057_v50 = vpack.i.bf16 %v2259_v49, %v2211_v46 }
 0xaea   : > { %v7365_v51 = vpop.f32.mrf.mxu1  ;;  %v7370_v52 = vpop.f32.mrf.mxu0 }
 0xaeb   : > { %8058 = vrot.lane.b32.xlu0 %v8057_v50, %s10198_s11  ;;  %s7055_s11 = sshll.u32 %s10304_s17, 4  ;;  %s10282_s17 = smov 16  }
 0xaec   : > { %v2262_v53 = vpop.f32.mrf.mxu0  ;;  %s1165_s15 = scalar_lea.vmem %s10278_s28, %s7055_s11  ;;  %s10279_s11 = sld [smem:[#allocation53_spill]] }
 0xaed   : > { %v1168_v10 = vld [vmem:[%s1165_s15] sm:$0xff]  ;;  %v1169_v11 = vld [vmem:[%s1165_s15 + $0x8] sm:$0xff]  ;;  %v1170_v36 = vld [vmem:[%s1165_s15 + $0x10] sm:$0xff] }
 0xaee   : > { %v7371_v54 = vpop.f32.mrf.mxu0  ;;  %v9480_v35 = vpack.c.bf16 %v1169_v11, %v1168_v10  ;;  %v1171_v39 = vld [vmem:[%s1165_s15 + $0x18] sm:$0xff]  ;;  %s10280_s15 = sld [smem:[#allocation54_spill]] }
 0xaef   : > { %v9482_v40 = vpack.c.bf16 %v1171_v39, %v1170_v36 }
 0xaf2   : > { %v6896_v48 = vld [vmem:[%s10279_s11] ss:$0 sm:$0xff] }
 0xaf4   : > { %s10281_s28 = smov %s10280_s15  ;;  %v6897_v52 = vld [vmem:[%s10280_s15] ss:$0 sm:$0xff]  ;;  %s10283_s15 = smov 24  }
 0xb5d   : > { %v8059_v60 = vpop.permute.xlu0 %8058 }
 0xb5e   : > { %v8061_v63 = vunpack.i.h.bf16 %v8059_v60  ;;  %v8060_v0 = vunpack.i.l.bf16 %v8059_v60 }
 0xb60   : > { %v2296_v5 = vsel %vm2294_vm5, %v2293_v2, %v8061_v63  ;;  %v2295_v6 = vsel %vm2294_vm5, %v2292_v3, %v8060_v0 }
 0xb61   : > { %v2297_v8 = vpack.c.bf16 %v2296_v5, %v2295_v6 }
 0xb63   : > { %7377 = vmatmul.mubr.msk.bf16.vlgmr.msra.gmra.mxu1 %vm1212_vm1, %v2297_v8 }
 0xb64   : > { %7392 = vmatprep.mubr.msk.bf16.mxu1 %vm1212_vm1, %v9480_v35 }
 0xc23   : > { %v2353_v12 = vpop.f32.mrf.mxu1 }
 0xc24   : > { %v2354_v13 = vadd.f32 %v6892_v9, %v2353_v12 }
 0xc25   : > { %v7378_v19 = vpop.f32.mrf.mxu1 }
 0xc26   : > { %v2360_v14 = vadd.f32 %v2354_v13, %v9274_v4 }
 0xc27   : > { %v2356_v15 = vpop.f32.mrf.mxu1 }
 0xc28   : > { %v2357_v16 = vadd.f32 %v6892_v9, %v2356_v15  ;;  %v2364_v17 = vsel %vm1212_vm1, %v2360_v14, 0.0  ;;  %v6898_v9 = vld [vmem:[#allocation17] ss:$0 sm:$0xff] }
 0xc29   : > { %2365 = vadd.xlane.f32.xlu1 %v2364_v17  ;;  %v7379_v20 = vpop.f32.mrf.mxu1 }
 0xc2a   : > { %v2361_v21 = vadd.f32 %v2357_v16, %v9274_v4  ;;  %v8116_v4 = vld [vmem:[#allocation14 + $0x8] sm:$0xff]  }
 0xc2b   : > { %7388 = vmatprep.subr.bf16.mxu1 %v8116_v4 }
 0xc2c   : > { %v2367_v22 = vsel %vm1212_vm1, %v2361_v21, 0.0  ;;  %7389 = vmatpush3.bf16.msra.mxu1 %v8116_v4 }
 0xc2d   : > { %2368 = vadd.xlane.f32.xlu0 %v2367_v22  ;;  %7390 = vmatprep.subr.bf16.mxu1 %v8117_v7  ;;  %v6907_v22 = vld [vmem:[#allocation20] ss:$0 sm:$0xff] }
 0xc30   : > { %7391 = vmatpush3.bf16.msra.mxu1 %v8117_v7 }
 0xc31   : > { %7404 = vmatprep.subr.bf16.mxu1 %v8868_v1 }
 0xc33   : > { %7393 = vmatmul.mubr.msk.bf16.vlgmr.msra.gmra.mxu1 %vm1212_vm1, %v9482_v40 }
 0xc34   : > { %7406 = vmatprep.mubr.msk.bf16.mxu1 %vm8869_vm0, %v8868_v1 }
 0xcb2   : > { %v2366_v23 = vpop.xlane.xlu1 %2365 }
 0xcb3   : > { %v2371_v24 = vmul.f32 0.03125, %v2366_v23 }
 0xcb5   : > { %v2373_v26 = vsub.f32 %v2360_v14, %v2371_v24 }
 0xcb6   : > { %v2369_v28 = vpop.xlane.xlu0 %2368 }
 0xcb7   : > { %v2372_v30 = vmul.f32 0.03125, %v2369_v28  ;;  %v2375_v31 = vmul.f32 %v2373_v26, %v2373_v26 }
 0xcb9   : > { %v2374_v32 = vsub.f32 %v2361_v21, %v2372_v30  ;;  %v2377_v33 = vsel %vm1212_vm1, %v2375_v31, 0.0 }
 0xcba   : > { %2378 = vadd.xlane.f32.xlu0 %v2377_v33 }
 0xcbb   : > { %v2376_v34 = vmul.f32 %v2374_v32, %v2374_v32 }
 0xcbd   : > { %v2380_v38 = vsel %vm1212_vm1, %v2376_v34, 0.0 }
 0xcbe   : > { %2381 = vadd.xlane.f32.xlu0 %v2380_v38 }
 0xcf3   : > { %v7394_v57 = vpop.f32.mrf.mxu1 }
 0xcf4   : > { %v2559_v60 = vadd.f32 %v7394_v57, %v6902_v58 }
 0xcf5   : > { %v2550_v59 = vpop.f32.mrf.mxu1 }
 0xcf6   : > { %v2551_v62 = vadd.f32 %v6902_v58, %v2550_v59 }
 0xcf7   : > { %v7395_v61 = vpop.f32.mrf.mxu1 }
 0xcf8   : > { %v2562_v63 = vadd.f32 %v7395_v61, %v6902_v58 }
 0xcf9   : > { %v2553_v0 = vpop.f32.mrf.mxu1 }
 0xcfa   : > { %v9508_v2 = vpack.c.bf16 %v2562_v63, %v2559_v60  ;;  %v2554_v3 = vadd.f32 %v6902_v58, %v2553_v0 }
 0xcfc   : > { %v9510_v5 = vpack.c.bf16 %v2554_v3, %v2551_v62  ;;  %v2688_v6 = vsel %vm1381_vm2, %v9508_v2, 0 }
 0xcfe   : > { %v2642_v8 = vsel %vm1381_vm2, %v9510_v5, 0 }
 0xcff   : > { %7405 = vmatpush3.bf16.xpose.msra.mxu1 %v2642_v8 }
 0xd00   : > { %7416 = vmatprep.subr.bf16.mxu1 %v8868_v1 }
 0xd43   : > { %v2379_v18 = vpop.xlane.xlu0 %2378 }
 0xd44   : > { %v2383_v25 = vmul.f32 0.03125, %v2379_v18 }
 0xd46   : > { %v2385_v44 = vadd.f32 1e-05, %v2383_v25 }
 0xd47   : > { %v2382_v37 = vpop.xlane.xlu0 %2381 }
 0xd48   : > { %8184 = vrsqrt.f32 %v2385_v44  ;;  %v2384_v29 = vmul.f32 0.03125, %v2382_v37 }
 0xd4a   : > { %v2386_v45 = vadd.f32 1e-05, %v2384_v29 }
 0xd4c   : > { %8186 = vrsqrt.f32 %v2386_v45 }
 0xd55   : > { %v8185_v46 = vpop.eup %8184 }
 0xd56   : > { %v2389_v47 = vmul.f32 %v8185_v46, %v2373_v26 }
 0xd58   : > { %v2397_v51 = vmul.f32 %v6896_v48, %v2389_v47 }
 0xd59   : > { %v8187_v49 = vpop.eup %8186 }
 0xd5a   : > { %v2390_v50 = vmul.f32 %v8187_v49, %v2374_v32  ;;  %v9494_v54 = vadd.f32 %v6897_v52, %v2397_v51 }
 0xd5c   : > { %v2398_v53 = vmul.f32 %v6896_v48, %v2390_v50 }
 0xd5e   : > { %v9496_v27 = vadd.f32 %v6897_v52, %v2398_v53 }
 0xd60   : > { %v2427_v55 = vpack.c.bf16 %v9496_v27, %v9494_v54 }
 0xd62   : > { %7385 = vmatmul.mubr.msk.bf16.vlgmr.msra.gmra.mxu0 %vm1212_vm1, %v2427_v55 }
 0xd63   : > { %7397 = vmatpush3.bf16.msra.mxu0 %v8120_v43  ;;  %7400 = vmatprep.mubr.msk.bf16.mxu0 %vm1212_vm1, %v9480_v35 }
 0xd64   : > { %7398 = vmatprep.subr.bf16.mxu0 %v8121_v56 }
 0xd67   : > { %7399 = vmatpush3.bf16.msra.mxu0 %v8121_v56 }
 0xd68   : > { %7410 = vmatprep.subr.bf16.mxu0 %v8868_v1 }
 0xd6a   : > { %7401 = vmatmul.mubr.msk.bf16.vlgmr.msra.gmra.mxu0 %vm1212_vm1, %v9482_v40 }
 0xd6b   : > { %7412 = vmatprep.mubr.msk.bf16.mxu0 %vm8869_vm0, %v8868_v1  ;;  %7411 = vmatpush3.bf16.xpose.msra.mxu0 %v2688_v6 }
 0xd6c   : > { %7422 = vmatprep.subr.bf16.mxu0 %v8868_v1 }
 0xe22   : > { %v2483_v12 = vpop.f32.mrf.mxu0 }
 0xe23   : > { %v2484_v13 = vadd.f32 %v6898_v9, %v2483_v12 }
 0xe24   : > { %v7386_v19 = vpop.f32.mrf.mxu0 }
 0xe25   : > { %v9518_v14 = vpack.c.bf16 %v2484_v13, %v2484_v13 }
 0xe26   : > { %v2486_v15 = vpop.f32.mrf.mxu0 }
 0xe27   : > { %v2487_v16 = vadd.f32 %v6898_v9, %v2486_v15  ;;  %7407 = vmatmul.mubr.msk.bf16.vlgmr.msra.gmra.mxu1 %vm1381_vm2, %v9518_v14 }
 0xe28   : > { %v7387_v17 = vpop.f32.mrf.mxu0  ;;  %7418 = vmatprep.mubr.msk.bf16.mxu1 %vm8869_vm0, %v8868_v1 }
 0xe29   : > { %v9524_v20 = vpack.c.bf16 %v2487_v16, %v2487_v16 }
 0xe2a   : > { %v7402_v21 = vpop.f32.mrf.mxu0 }
 0xe2b   : > { %7413 = vmatmul.mubr.msk.bf16.vlgmr.msra.gmra.mxu0 %vm1381_vm2, %v9524_v20  ;;  %v2626_v24 = vadd.f32 %v7402_v21, %v6907_v22 }
 0xe2c   : > { %v2617_v23 = vpop.f32.mrf.mxu0  ;;  %7424 = vmatprep.mubr.msk.bf16.mxu0 %vm8869_vm0, %v8868_v1 }
 0xe2d   : > { %v2618_v28 = vadd.f32 %v6907_v22, %v2617_v23 }
 0xe2e   : > { %v7403_v26 = vpop.f32.mrf.mxu0 }
 0xe2f   : > { %v2629_v30 = vadd.f32 %v7403_v26, %v6907_v22 }
 0xe30   : > { %v2620_v31 = vpop.f32.mrf.mxu0 }
 0xe31   : > { %v9530_v32 = vpack.c.bf16 %v2629_v30, %v2626_v24  ;;  %v2621_v33 = vadd.f32 %v6907_v22, %v2620_v31 }
 0xe33   : > { %v9532_v34 = vpack.c.bf16 %v2621_v33, %v2618_v28  ;;  %7423 = vmatpush3.bf16.msra.mxu0 %v9530_v32 }
 0xe34   : > { %7434 = vmatprep.subr.bf16.mxu0 %v8868_v1 }
 0xe35   : > { %7417 = vmatpush3.bf16.msra.mxu1 %v9532_v34 }
 0xe36   : > { %7428 = vmatprep.subr.bf16.mxu1 %v8868_v1 }
 0xee7   : > { %v2678_v38 = vpop.f32.mrf.mxu1 }
 0xee8   : > { %v2730_v4 = vmul.f32 0.35355338, %v2678_v38 }
 0xee9   : > { %v7408_v7 = vpop.f32.mrf.mxu1 }
 0xeea   : > { %v2732_v10 = vsel %vm2291_vm4, %v2730_v4, -inf }
 0xeeb   : > { %v2724_v11 = vpop.f32.mrf.mxu0  ;;  %2733 = vmax.xlane.f32.xlu1 %v2732_v10  ;;  %v2681_v36 = vpop.f32.mrf.mxu1 }
 0xeec   : > { %v2731_v39 = vmul.f32 0.35355338, %v2724_v11 }
 0xeed   : > { %v7409_v41 = vpop.f32.mrf.mxu1  ;;  %v7414_v42 = vpop.f32.mrf.mxu0 }
 0xeee   : > { %v2735_v43 = vsel %vm2291_vm4, %v2731_v39, -inf }
 0xeef   : > { %2736 = vmax.xlane.f32.xlu0 %v2735_v43  ;;  %v2727_v18 = vpop.f32.mrf.mxu0 }
 0xef1   : > { %v7415_v25 = vpop.f32.mrf.mxu0 }
 0xefc   : > { %2846 = vrot.lane.b32.xlu1 %v9510_v5, %s10208_s1 }
 0xf74   : > { %v2734_v44 = vpop.xlane.xlu1 %2733 }
 0xf75   : > { %v2738_v37 = vsub.f32 %v2730_v4, %v2734_v44 }
 0xf77   : > { %v2740_v29 = vmul.f32 1.442695, %v2738_v37 }
 0xf78   : > { %v2737_v45 = vpop.xlane.xlu0 %2736  ;;  %v2847_v52 = vpop.permute.xlu1 %2846 }
 0xf79   : > { %8188 = vpow2.f32 %v2740_v29  ;;  %v2739_v46 = vsub.f32 %v2731_v39, %v2737_v45  ;;  %v2852_v60 = vsel %vm1381_vm2, %v2847_v52, 0 }
 0xf7b   : > { %v2742_v47 = vmul.f32 1.442695, %v2739_v46 }
 0xf7d   : > { %8190 = vpow2.f32 %v2742_v47 }
 0xf86   : > { %v8189_v48 = vpop.eup %8188 }
 0xf87   : > { %v2744_v49 = vsel %vm2291_vm4, %v8189_v48, 0.0 }
 0xf88   : > { %2745 = vadd.xlane.f32.xlu1 %v2744_v49 }
 0xf8a   : > { %v8191_v50 = vpop.eup %8190 }
 0xf8b   : > { %v2747_v51 = vsel %vm2291_vm4, %v8191_v50, 0.0 }
 0xf8c   : > { %2748 = vadd.xlane.f32.xlu0 %v2747_v51 }
 0xf99   : > { %2843 = vrot.lane.b32.xlu1 %v9518_v14, %s10208_s1 }
 0xf9d   : > { %2895 = vrot.lane.b32.xlu1 %v9524_v20, %s10208_s1 }
 0xfa2   : > { %2898 = vrot.lane.b32.xlu0 %v9508_v2, %s10208_s1 }
0x1011   : > { %v2746_v53 = vpop.xlane.xlu1 %2745 }
0x1012   : > { %8192 = vrcp.f32 %v2746_v53 }
0x1015   : > { %v2749_v55 = vpop.xlane.xlu0 %2748  ;;  %v2844_v3 = vpop.permute.xlu1 %2843 }
0x1016   : > { %8194 = vrcp.f32 %v2749_v55 }
0x1019   : > { %v2899_v62 = vpop.permute.xlu0 %2898  ;;  %v2896_v6 = vpop.permute.xlu1 %2895 }
0x101a   : > { %v2904_v0 = vsel %vm1381_vm2, %v2899_v62, 0 }
0x101f   : > { %v8193_v56 = vpop.eup %8192 }
0x1020   : > { %v2752_v57 = vmul.f32 %v8193_v56, %v8189_v48 }
0x1022   : > { %v2754_v58 = vpack.c.bf16 %v2752_v57, %v2752_v57 }
0x1023   : > { %v8195_v59 = vpop.eup %8194 }
0x1024   : > { %7419 = vmatmul.mubr.msk.bf16.vlgmr.msra.gmra.mxu1 %vm2291_vm4, %v2754_v58  ;;  %v2753_v61 = vmul.f32 %v8195_v59, %v8191_v50 }
0x1025   : > { %7429 = vmatpush3.bf16.xpose.msra.mxu1 %v2852_v60  ;;  %7430 = vmatprep.mubr.msk.bf16.mxu1 %vm8869_vm0, %v8868_v1 }
0x1026   : > { %v2755_v63 = vpack.c.bf16 %v2753_v61, %v2753_v61  ;;  %7440 = vmatprep.subr.bf16.mxu1 %v8868_v1 }
0x1028   : > { %7425 = vmatmul.mubr.msk.bf16.vlgmr.msra.gmra.mxu0 %vm2291_vm4, %v2755_v63 }
0x1029   : > { %7435 = vmatpush3.bf16.xpose.msra.mxu0 %v2904_v0  ;;  %7436 = vmatprep.mubr.msk.bf16.mxu0 %vm8869_vm0, %v8868_v1 }
0x102a   : > { %7446 = vmatprep.subr.bf16.mxu0 %v8868_v1 }
0x102c   : > { %7431 = vmatmul.mubr.msk.bf16.vlgmr.msra.gmra.mxu1 %vm1381_vm2, %v2844_v3 }
0x102d   : > { %7442 = vmatprep.mubr.msk.bf16.mxu1 %vm8869_vm0, %v8868_v1 }
0x1030   : > { %7437 = vmatmul.mubr.msk.bf16.vlgmr.msra.gmra.mxu0 %vm1381_vm2, %v2896_v6 }
0x1031   : > { %7448 = vmatprep.mubr.msk.bf16.mxu0 %vm8869_vm0, %v8868_v1 }
0x10e4   : > { %v9566_v8 = vpop.f32.mrf.mxu1 }
0x10e6   : > { %v7420_v9 = vpop.f32.mrf.mxu1 }
0x10e8   : > { %v2796_v12 = vpop.f32.mrf.mxu1  ;;  %v9568_v13 = vpop.f32.mrf.mxu0 }
0x10ea   : > { %v7421_v19 = vpop.f32.mrf.mxu1  ;;  %v7426_v15 = vpop.f32.mrf.mxu0 }
0x10ec   : > { %v2839_v16 = vpop.f32.mrf.mxu0  ;;  %v2888_v17 = vpop.f32.mrf.mxu1 }
0x10ed   : > { %v2946_v21 = vmul.f32 0.35355338, %v2888_v17 }
0x10ee   : > { %v7427_v22 = vpop.f32.mrf.mxu0  ;;  %v7432_v23 = vpop.f32.mrf.mxu1 }
0x10ef   : > { %v2948_v24 = vsel %vm2291_vm4, %v2946_v21, -inf }
0x10f0   : > { %v2940_v26 = vpop.f32.mrf.mxu0  ;;  %2949 = vmax.xlane.f32.xlu1 %v2948_v24  ;;  %v2891_v28 = vpop.f32.mrf.mxu1 }
0x10f1   : > { %v2947_v30 = vmul.f32 0.35355338, %v2940_v26 }
0x10f2   : > { %v7433_v31 = vpop.f32.mrf.mxu1  ;;  %v7438_v33 = vpop.f32.mrf.mxu0 }
0x10f3   : > { %v2951_v38 = vsel %vm2291_vm4, %v2947_v30, -inf }
0x10f4   : > { %2952 = vmax.xlane.f32.xlu0 %v2951_v38  ;;  %v2943_v4 = vpop.f32.mrf.mxu0 }
0x10f6   : > { %v7439_v7 = vpop.f32.mrf.mxu0 }
0x1101   : > { %2973 = vrot.lane.b32.xlu1 %v9532_v34, %s10208_s1 }
0x1105   : > { %3068 = vrot.lane.b32.xlu1 %v9510_v5, %s10206_s18 }
0x1109   : > { %3118 = vrot.lane.b32.xlu1 %v9508_v2, %s10206_s18 }
0x110d   : > { %3066 = vrot.lane.b32.xlu1 %v9518_v14, %s10206_s18 }
0x1179   : > { %v2950_v10 = vpop.xlane.xlu1 %2949 }
0x117a   : > { %v2954_v11 = vsub.f32 %v2946_v21, %v2950_v10 }
0x117c   : > { %v2956_v36 = vmul.f32 1.442695, %v2954_v11 }
0x117d   : > { %v2953_v39 = vpop.xlane.xlu0 %2952  ;;  %v2974_v41 = vpop.permute.xlu1 %2973 }
0x117e   : > { %8196 = vpow2.f32 %v2956_v36  ;;  %v2955_v42 = vsub.f32 %v2947_v30, %v2953_v39  ;;  %7441 = vmatpush3.bf16.msra.mxu1 %v2974_v41 }
0x117f   : > { %7452 = vmatprep.subr.bf16.mxu1 %v8868_v1 }
0x1180   : > { %v2958_v43 = vmul.f32 1.442695, %v2955_v42 }
0x1181   : > { %v3069_v48 = vpop.permute.xlu1 %3068 }
0x1182   : > { %8198 = vpow2.f32 %v2958_v43  ;;  %v3074_v52 = vsel %vm1381_vm2, %v3069_v48, 0 }
0x1185   : > { %v3119_v55 = vpop.permute.xlu1 %3118 }
0x1186   : > { %v3124_v57 = vsel %vm1381_vm2, %v3119_v55, 0 }
0x1189   : > { %v3067_v58 = vpop.permute.xlu1 %3066 }
0x118b   : > { %v8197_v18 = vpop.eup %8196 }
0x118c   : > { %v2960_v25 = vsel %vm2291_vm4, %v8197_v18, 0.0 }
0x118d   : > { %2961 = vadd.xlane.f32.xlu0 %v2960_v25 }
0x118f   : > { %v8199_v44 = vpop.eup %8198 }
0x1190   : > { %v2963_v37 = vsel %vm2291_vm4, %v8199_v44, 0.0 }
0x1191   : > { %2964 = vadd.xlane.f32.xlu0 %v2963_v37 }
0x11a7   : > { %3020 = vrot.lane.b32.xlu0 %v9530_v32, %s10208_s1 }
0x11ab   : > { %3116 = vrot.lane.b32.xlu0 %v9524_v20, %s10206_s18 }
0x1216   : > { %v2962_v29 = vpop.xlane.xlu0 %2961 }
0x1217   : > { %8200 = vrcp.f32 %v2962_v29 }
0x121a   : > { %v2965_v45 = vpop.xlane.xlu0 %2964 }
0x121b   : > { %8202 = vrcp.f32 %v2965_v45 }
0x121e   : > { %v3021_v46 = vpop.permute.xlu0 %3020 }
0x121f   : > { %7447 = vmatpush3.bf16.msra.mxu0 %v3021_v46 }
0x1220   : > { %7458 = vmatprep.subr.bf16.mxu0 %v8868_v1 }
0x1222   : > { %v3117_v59 = vpop.permute.xlu0 %3116 }
0x1224   : > { %v8201_v47 = vpop.eup %8200 }
0x1225   : > { %v2968_v49 = vmul.f32 %v8201_v47, %v8197_v18 }
0x1227   : > { %v2970_v50 = vpack.c.bf16 %v2968_v49, %v2968_v49 }
0x1228   : > { %v8203_v51 = vpop.eup %8202 }
0x1229   : > { %7443 = vmatmul.mubr.msk.bf16.vlgmr.msra.gmra.mxu1 %vm2291_vm4, %v2970_v50  ;;  %v2969_v53 = vmul.f32 %v8203_v51, %v8199_v44 }
0x122a   : > { %7453 = vmatpush3.bf16.xpose.msra.mxu1 %v3074_v52  ;;  %7454 = vmatprep.mubr.msk.bf16.mxu1 %vm8869_vm0, %v8868_v1 }
0x122b   : > { %v2971_v56 = vpack.c.bf16 %v2969_v53, %v2969_v53  ;;  %7464 = vmatprep.subr.bf16.mxu1 %v8868_v1 }
0x122d   : > { %7449 = vmatmul.mubr.msk.bf16.vlgmr.msra.gmra.mxu0 %vm2291_vm4, %v2971_v56 }
0x122e   : > { %7459 = vmatpush3.bf16.xpose.msra.mxu0 %v3124_v57  ;;  %7460 = vmatprep.mubr.msk.bf16.mxu0 %vm8869_vm0, %v8868_v1 }
0x122f   : > { %7470 = vmatprep.subr.bf16.mxu0 %v8868_v1 }
0x1231   : > { %7455 = vmatmul.mubr.msk.bf16.vlgmr.msra.gmra.mxu1 %vm1381_vm2, %v3067_v58 }
0x1232   : > { %7466 = vmatprep.mubr.msk.bf16.mxu1 %vm8869_vm0, %v8868_v1 }
0x1235   : > { %7461 = vmatmul.mubr.msk.bf16.vlgmr.msra.gmra.mxu0 %vm1381_vm2, %v3117_v59 }
0x1236   : > { %7472 = vmatprep.mubr.msk.bf16.mxu0 %vm8869_vm0, %v8868_v1 }
0x12e9   : > { %v9604_v60 = vpop.f32.mrf.mxu1 }
0x12eb   : > { %v7444_v61 = vpop.f32.mrf.mxu1 }
0x12ed   : > { %v3016_v62 = vpop.f32.mrf.mxu1  ;;  %v9606_v63 = vpop.f32.mrf.mxu0 }
0x12ee   : > { %v8062_v0 = vpack.i.bf16 %v9606_v63, %v9604_v60 }
0x12ef   : > { %v7445_v3 = vpop.f32.mrf.mxu1  ;;  %v7450_v6 = vpop.f32.mrf.mxu0 }
0x12f1   : > { %v3063_v9 = vpop.f32.mrf.mxu0  ;;  %v3110_v12 = vpop.f32.mrf.mxu1 }
0x12f2   : > { %v3166_v19 = vmul.f32 0.35355338, %v3110_v12 }
0x12f3   : > { %v7451_v15 = vpop.f32.mrf.mxu0  ;;  %v7456_v16 = vpop.f32.mrf.mxu1 }
0x12f4   : > { %v3168_v17 = vsel %vm2291_vm4, %v3166_v19, -inf }
0x12f5   : > { %v3160_v21 = vpop.f32.mrf.mxu0  ;;  %3169 = vmax.xlane.f32.xlu1 %v3168_v17  ;;  %v3113_v22 = vpop.f32.mrf.mxu1 }
0x12f6   : > { %v3167_v23 = vmul.f32 0.35355338, %v3160_v21 }
0x12f7   : > { %v7457_v24 = vpop.f32.mrf.mxu1  ;;  %v7462_v26 = vpop.f32.mrf.mxu0 }
0x12f8   : > { %v3171_v28 = vsel %vm2291_vm4, %v3167_v23, -inf }
0x12f9   : > { %3172 = vmax.xlane.f32.xlu0 %v3171_v28  ;;  %v3163_v30 = vpop.f32.mrf.mxu0 }
0x12fb   : > { %v7463_v31 = vpop.f32.mrf.mxu0 }
0x1306   : > { %3192 = vrot.lane.b32.xlu1 %v9532_v34, %s10206_s18 }
0x130a   : > { %3286 = vrot.lane.b32.xlu1 %v9510_v5, %s10204_s23 }
0x130e   : > { %3336 = vrot.lane.b32.xlu1 %v9508_v2, %s10204_s23 }
0x1312   : > { %3284 = vrot.lane.b32.xlu1 %v9518_v14, %s10204_s23 }
0x137e   : > { %v3170_v33 = vpop.xlane.xlu1 %3169 }
0x137f   : > { %v3174_v38 = vsub.f32 %v3166_v19, %v3170_v33 }
0x1381   : > { %v3176_v4 = vmul.f32 1.442695, %v3174_v38 }
0x1382   : > { %v3173_v7 = vpop.xlane.xlu0 %3172  ;;  %v3193_v10 = vpop.permute.xlu1 %3192 }
0x1383   : > { %8204 = vpow2.f32 %v3176_v4  ;;  %v3175_v11 = vsub.f32 %v3167_v23, %v3173_v7  ;;  %7465 = vmatpush3.bf16.msra.mxu1 %v3193_v10 }
0x1384   : > { %7476 = vmatprep.subr.bf16.mxu1 %v8868_v1 }
0x1385   : > { %v3178_v36 = vmul.f32 1.442695, %v3175_v11 }
0x1386   : > { %v3287_v25 = vpop.permute.xlu1 %3286 }
0x1387   : > { %8206 = vpow2.f32 %v3178_v36  ;;  %v3292_v45 = vsel %vm1381_vm2, %v3287_v25, 0 }
0x138a   : > { %v3337_v47 = vpop.permute.xlu1 %3336 }
0x138b   : > { %v3342_v48 = vsel %vm1381_vm2, %v3337_v47, 0 }
0x138e   : > { %v3285_v49 = vpop.permute.xlu1 %3284 }
0x1390   : > { %v8205_v39 = vpop.eup %8204 }
0x1391   : > { %v3180_v5 = vsel %vm2291_vm4, %v8205_v39, 0.0 }
0x1392   : > { %3181 = vadd.xlane.f32.xlu0 %v3180_v5 }
0x1394   : > { %v8207_v2 = vpop.eup %8206 }
0x1395   : > { %v3183_v41 = vsel %vm2291_vm4, %v8207_v2, 0.0 }
0x1396   : > { %3184 = vadd.xlane.f32.xlu0 %v3183_v41 }
0x13ac   : > { %3238 = vrot.lane.b32.xlu0 %v9530_v32, %s10206_s18  ;;  %s10286_s18 = sld [smem:[#allocation52_spill]] }
0x13b0   : > { %3334 = vrot.lane.b32.xlu0 %v9524_v20, %s10204_s23 }
0x13b2   : > { %s10287_s1 = smov %s10286_s18 }
0x141b   : > { %v3182_v14 = vpop.xlane.xlu0 %3181 }
0x141c   : > { %8208 = vrcp.f32 %v3182_v14  ;;  %v8123_v14 = vld [vmem:[#allocation21] sm:$0xff]  }
0x141f   : > { %v3185_v42 = vpop.xlane.xlu0 %3184 }
0x1420   : > { %8210 = vrcp.f32 %v3185_v42 }
0x1423   : > { %v3239_v43 = vpop.permute.xlu0 %3238 }
0x1424   : > { %7471 = vmatpush3.bf16.msra.mxu0 %v3239_v43 }
0x1425   : > { %7482 = vmatprep.subr.bf16.mxu0 %v8868_v1 }
0x1427   : > { %v3335_v50 = vpop.permute.xlu0 %3334 }
0x1429   : > { %v8209_v18 = vpop.eup %8208 }
0x142a   : > { %v3188_v44 = vmul.f32 %v8209_v18, %v8205_v39 }
0x142c   : > { %v3190_v37 = vpack.c.bf16 %v3188_v44, %v3188_v44 }
0x142d   : > { %v8211_v29 = vpop.eup %8210 }
0x142e   : > { %7467 = vmatmul.mubr.msk.bf16.vlgmr.msra.gmra.mxu1 %vm2291_vm4, %v3190_v37  ;;  %v3189_v46 = vmul.f32 %v8211_v29, %v8207_v2 }
0x142f   : > { %7477 = vmatpush3.bf16.xpose.msra.mxu1 %v3292_v45  ;;  %7478 = vmatprep.mubr.msk.bf16.mxu1 %vm8869_vm0, %v8868_v1 }
0x1430   : > { %v3191_v20 = vpack.c.bf16 %v3189_v46, %v3189_v46  ;;  %7488 = vmatprep.subr.bf16.mxu1 %v8868_v1 }
0x1432   : > { %7473 = vmatmul.mubr.msk.bf16.vlgmr.msra.gmra.mxu0 %vm2291_vm4, %v3191_v20 }
0x1433   : > { %7483 = vmatpush3.bf16.xpose.msra.mxu0 %v3342_v48  ;;  %7484 = vmatprep.mubr.msk.bf16.mxu0 %vm8869_vm0, %v8868_v1 }
0x1434   : > { %7494 = vmatprep.subr.bf16.mxu0 %v8868_v1 }
0x1436   : > { %7479 = vmatmul.mubr.msk.bf16.vlgmr.msra.gmra.mxu1 %vm1381_vm2, %v3285_v49 }
0x1437   : > { %7490 = vmatprep.mubr.msk.bf16.mxu1 %vm8869_vm0, %v8868_v1 }
0x143a   : > { %7485 = vmatmul.mubr.msk.bf16.vlgmr.msra.gmra.mxu0 %vm1381_vm2, %v3335_v50 }
0x143b   : > { %7496 = vmatprep.mubr.msk.bf16.mxu0 %vm8869_vm0, %v8868_v1 }
0x14ee   : > { %v3232_v51 = vpop.f32.mrf.mxu1 }
0x14f0   : > { %v7468_v52 = vpop.f32.mrf.mxu1 }
0x14f2   : > { %v3235_v53 = vpop.f32.mrf.mxu1  ;;  %v3278_v55 = vpop.f32.mrf.mxu0 }
0x14f3   : > { %v8067_v23 = vpack.i.bf16 %v3278_v55, %v3232_v51 }
0x14f4   : > { %v7469_v56 = vpop.f32.mrf.mxu1  ;;  %v7474_v57 = vpop.f32.mrf.mxu0 }
0x14f6   : > { %v3281_v58 = vpop.f32.mrf.mxu0  ;;  %v3328_v59 = vpop.f32.mrf.mxu1 }
0x14f7   : > { %v3384_v61 = vmul.f32 0.35355338, %v3328_v59 }
0x14f8   : > { %v7475_v62 = vpop.f32.mrf.mxu0  ;;  %v7480_v3 = vpop.f32.mrf.mxu1 }
0x14f9   : > { %v3386_v6 = vsel %vm2291_vm4, %v3384_v61, -inf }
0x14fa   : > { %v3378_v9 = vpop.f32.mrf.mxu0  ;;  %3387 = vmax.xlane.f32.xlu1 %v3386_v6  ;;  %v3331_v12 = vpop.f32.mrf.mxu1 }
0x14fb   : > { %v3385_v19 = vmul.f32 0.35355338, %v3378_v9 }
0x14fc   : > { %v7481_v15 = vpop.f32.mrf.mxu1  ;;  %v7486_v16 = vpop.f32.mrf.mxu0 }
0x14fd   : > { %v3389_v17 = vsel %vm2291_vm4, %v3385_v19, -inf }
0x14fe   : > { %3390 = vmax.xlane.f32.xlu0 %v3389_v17  ;;  %v3381_v21 = vpop.f32.mrf.mxu0 }
0x1500   : > { %v7487_v22 = vpop.f32.mrf.mxu0 }
0x150b   : > { %3410 = vrot.lane.b32.xlu1 %v9532_v34, %s10204_s23 }
0x150f   : > { %8063 = vrot.lane.b32.xlu1 %v8062_v0, %s10202_s22  ;;  %s10284_s22 = sld [smem:[#allocation51_spill]] }
0x1513   : > { %8068 = vrot.lane.b32.xlu1 %v8067_v23, %s10282_s17 }
0x1583   : > { %v3388_v24 = vpop.xlane.xlu1 %3387 }
0x1584   : > { %v3392_v26 = vsub.f32 %v3384_v61, %v3388_v24 }
0x1586   : > { %v3394_v28 = vmul.f32 1.442695, %v3392_v26 }
0x1587   : > { %v3391_v30 = vpop.xlane.xlu0 %3390  ;;  %v3411_v31 = vpop.permute.xlu1 %3410 }
0x1588   : > { %8212 = vpow2.f32 %v3394_v28  ;;  %v3393_v33 = vsub.f32 %v3385_v19, %v3391_v30  ;;  %7489 = vmatpush3.bf16.msra.mxu1 %v3411_v31 }
0x1589   : > { %7500 = vmatprep.subr.bf16.mxu1 %v8868_v1 }
0x158a   : > { %v3396_v38 = vmul.f32 1.442695, %v3393_v33 }
0x158b   : > { %v8064_v47 = vpop.permute.xlu1 %8063 }
0x158c   : > { %8214 = vpow2.f32 %v3396_v38  ;;  %v8066_v48 = vunpack.i.h.bf16 %v8064_v47  ;;  %v8065_v49 = vunpack.i.l.bf16 %v8064_v47 }
0x158e   : > { %v3527_v53 = vsel %vm1381_vm2, %v9568_v13, %v8066_v48  ;;  %v3526_v55 = vsel %vm1381_vm2, %v9566_v8, %v8065_v49  ;;  %v6928_v13 = vld [vmem:[#allocation23] ss:$0 sm:$0xff] }
0x158f   : > { %v8069_v20 = vpop.permute.xlu1 %8068 }
0x1590   : > { %v8071_v50 = vunpack.i.h.bf16 %v8069_v20  ;;  %v8070_v51 = vunpack.i.l.bf16 %v8069_v20 }
0x1592   : > { %v3528_v58 = vsel %vm2291_vm4, %v3526_v55, %v8070_v51  ;;  %v3529_v59 = vsel %vm2291_vm4, %v3527_v53, %v8071_v50 }
0x1595   : > { %v8213_v34 = vpop.eup %8212 }
0x1596   : > { %v3398_v4 = vsel %vm2291_vm4, %v8213_v34, 0.0 }
0x1597   : > { %3399 = vadd.xlane.f32.xlu0 %v3398_v4  ;;  %v8124_v4 = vld [vmem:[#allocation24 + $0x8] sm:$0xff]  }
0x1599   : > { %v8215_v60 = vpop.eup %8214 }
0x159a   : > { %v3401_v63 = vsel %vm2291_vm4, %v8215_v60, 0.0 }
0x159b   : > { %3402 = vadd.xlane.f32.xlu0 %v3401_v63 }
0x15b1   : > { %3456 = vrot.lane.b32.xlu0 %v9530_v32, %s10204_s23  ;;  %v8122_v32 = vld [vmem:[#allocation21 + $0x8] sm:$0xff]   ;;  %s10285_s23 = sld [smem:[#allocation56_spill]] }
0x1620   : > { %v3400_v0 = vpop.xlane.xlu0 %3399 }
0x1621   : > { %8216 = vrcp.f32 %v3400_v0 }
0x1624   : > { %v3403_v7 = vpop.xlane.xlu0 %3402 }
0x1625   : > { %8218 = vrcp.f32 %v3403_v7 }
0x1628   : > { %v3457_v10 = vpop.permute.xlu0 %3456 }
0x1629   : > { %7495 = vmatpush3.bf16.msra.mxu0 %v3457_v10 }
0x162a   : > { %7508 = vmatprep.subr.bf16.mxu0 %v8868_v1 }
0x162e   : > { %v8217_v11 = vpop.eup %8216 }
0x162f   : > { %v3406_v36 = vmul.f32 %v8217_v11, %v8213_v34 }
0x1631   : > { %v3408_v39 = vpack.c.bf16 %v3406_v36, %v3406_v36 }
0x1632   : > { %v8219_v5 = vpop.eup %8218 }
0x1633   : > { %7491 = vmatmul.mubr.msk.bf16.vlgmr.msra.gmra.mxu1 %vm2291_vm4, %v3408_v39  ;;  %v3407_v2 = vmul.f32 %v8219_v5, %v8215_v60  ;;  %v8126_v60 = vld [vmem:[%s10284_s22 + $0x18] sm:$0xff]  }
0x1634   : > { %7504 = vmatprep.mubr.msk.bf16.mxu1 %vm8869_vm0, %v8868_v1  ;;  %7501 = vmatpush3.bf16.msra.mxu1 %v8122_v32 }
0x1635   : > { %v3409_v41 = vpack.c.bf16 %v3407_v2, %v3407_v2  ;;  %7502 = vmatprep.subr.bf16.mxu1 %v8868_v1  ;;  %v6932_v2 = vld [vmem:[#allocation27] ss:$0 sm:$0xff] }
0x1637   : > { %7497 = vmatmul.mubr.msk.bf16.vlgmr.msra.gmra.mxu0 %vm2291_vm4, %v3409_v41 }
0x1638   : > { %7512 = vmatprep.mubr.msk.bf16.mxu0 %vm8869_vm0, %v8868_v1  ;;  %7503 = vmatpush3.bf16.msra.mxu1 %v8123_v14 }
0x1639   : > { %7516 = vmatprep.subr.bf16.mxu1 %v8868_v1  ;;  %7509 = vmatpush3.bf16.msra.mxu0 %v8124_v4 }
0x163a   : > { %7510 = vmatprep.subr.bf16.mxu0 %v8868_v1 }
0x16f3   : > { %v3450_v42 = vpop.f32.mrf.mxu1 }
0x16f5   : > { %v7492_v43 = vpop.f32.mrf.mxu1 }
0x16f7   : > { %v3453_v18 = vpop.f32.mrf.mxu1  ;;  %v3496_v25 = vpop.f32.mrf.mxu0 }
0x16f8   : > { %v8072_v44 = vpack.i.bf16 %v3496_v25, %v3450_v42  ;;  %v6933_v42 = vld [vmem:[%s10285_s23] ss:$0 sm:$0xff] }
0x16f9   : > { %v7493_v37 = vpop.f32.mrf.mxu1  ;;  %v7498_v29 = vpop.f32.mrf.mxu0 }
0x16fa   : > { %8073 = vrot.lane.b32.xlu1 %v8072_v44, %s10283_s15  ;;  %v8127_v37 = vld [vmem:[%s10284_s22 + $0x10] sm:$0xff]   ;;  %v8128_v29 = vld [vmem:[%s10284_s22 + $0x8] sm:$0xff]  }
0x16fb   : > { %v3499_v45 = vpop.f32.mrf.mxu0 }
0x16fc   : > { %v8129_v45 = vld [vmem:[%s10284_s22] sm:$0xff]  }
0x16fd   : > { %v7499_v46 = vpop.f32.mrf.mxu0 }
0x16fe   : > { %v6934_v46 = vld [vmem:[#allocation26] ss:$0 sm:$0xff] }
0x176c   : > { %v8074_v52 = vpop.permute.xlu1 %8073 }
0x176d   : > { %v8076_v56 = vunpack.i.h.bf16 %v8074_v52  ;;  %v8075_v57 = vunpack.i.l.bf16 %v8074_v52 }
0x176f   : > { %v3531_v61 = vsel %vm2294_vm5, %v3529_v59, %v8076_v56  ;;  %v3530_v62 = vsel %vm2294_vm5, %v3528_v58, %v8075_v57  ;;  %v6938_v56 = vld [vmem:[%s10286_s18] ss:$0 sm:$0xff]  ;;  %s10288_s18 = sld [smem:[#allocation57_spill]] }
0x1770   : > { %v3532_v3 = vpack.c.bf16 %v3531_v61, %v3530_v62 }
0x1772   : > { %7505 = vmatmul.mubr.msk.bf16.vlgmr.msra.gmra.mxu1 %vm1212_vm1, %v3532_v3 }
0x1773   : > { %7524 = vmatprep.mubr.msk.bf16.mxu1 %vm8869_vm0, %v8868_v1  ;;  %7517 = vmatpush3.bf16.msra.mxu1 %v8126_v60 }
0x1774   : > { %7518 = vmatprep.subr.bf16.mxu1 %v8868_v1 }
0x1775   : > { %s10289_s4 = smov %s10288_s18 }
0x1777   : > { %7519 = vmatpush3.bf16.msra.mxu1 %v8127_v37 }
0x1778   : > { %7520 = vmatprep.subr.bf16.mxu1 %v8868_v1 }
0x177b   : > { %7521 = vmatpush3.bf16.msra.mxu1 %v8128_v29 }
0x177c   : > { %7522 = vmatprep.subr.bf16.mxu1 %v8868_v1 }
0x177f   : > { %7523 = vmatpush3.bf16.msra.mxu1 %v8129_v45 }
0x1780   : > { %7544 = vmatprep.subr.bf16.mxu1 %v8868_v1 }
0x1832   : > { %v3588_v6 = vpop.f32.mrf.mxu1 }
0x1833   : > { %v3589_v9 = vadd.f32 %v6928_v13, %v3588_v6 }
0x1834   : > { %v7506_v8 = vpop.f32.mrf.mxu1 }
0x1835   : > { %v3595_v12 = vadd.f32 %v3589_v9, %v9494_v54 }
0x1836   : > { %v3591_v19 = vpop.f32.mrf.mxu1 }
0x1837   : > { %v3592_v15 = vadd.f32 %v6928_v13, %v3591_v19  ;;  %v3599_v16 = vsel %vm1212_vm1, %v3595_v12, 0.0 }
0x1838   : > { %3600 = vadd.xlane.f32.xlu0 %v3599_v16  ;;  %v7507_v17 = vpop.f32.mrf.mxu1 }
0x1839   : > { %v3596_v21 = vadd.f32 %v3592_v15, %v9496_v27  ;;  %v8125_v27 = vld [vmem:[#allocation24] sm:$0xff]  }
0x183a   : > { %7511 = vmatpush3.bf16.msra.mxu0 %v8125_v27 }
0x183b   : > { %v3602_v22 = vsel %vm1212_vm1, %v3596_v21, 0.0  ;;  %7528 = vmatprep.subr.bf16.mxu0 %v8868_v1 }
0x183c   : > { %3603 = vadd.xlane.f32.xlu1 %v3602_v22 }
0x18c1   : > { %v3601_v23 = vpop.xlane.xlu0 %3600 }
0x18c2   : > { %v3605_v24 = vmul.f32 0.03125, %v3601_v23 }
0x18c4   : > { %v3607_v26 = vsub.f32 %v3595_v12, %v3605_v24 }
0x18c5   : > { %v3604_v28 = vpop.xlane.xlu1 %3603 }
0x18c6   : > { %v3606_v30 = vmul.f32 0.03125, %v3604_v28  ;;  %v3609_v31 = vmul.f32 %v3607_v26, %v3607_v26  ;;  %v8130_v28 = vld [vmem:[%s10274_s10 + $0x18] sm:$0xff]  }
0x18c8   : > { %v3608_v33 = vsub.f32 %v3596_v21, %v3606_v30  ;;  %v3611_v54 = vsel %vm1212_vm1, %v3609_v31, 0.0  ;;  %v8131_v30 = vld [vmem:[#allocation8 + $0x18] sm:$0xff]   ;;  %v8132_v31 = vld [vmem:[%s10274_s10 + $0x10] sm:$0xff]  }
0x18c9   : > { %3612 = vadd.xlane.f32.xlu0 %v3611_v54 }
0x18ca   : > { %v3610_v38 = vmul.f32 %v3608_v33, %v3608_v33 }
0x18cc   : > { %v3614_v34 = vsel %vm1212_vm1, %v3610_v38, 0.0 }
0x18cd   : > { %3615 = vadd.xlane.f32.xlu0 %v3614_v34 }
0x1952   : > { %v3613_v63 = vpop.xlane.xlu0 %3612 }
0x1953   : > { %v3617_v0 = vmul.f32 0.03125, %v3613_v63 }
0x1955   : > { %v3619_v7 = vadd.f32 1e-05, %v3617_v0 }
0x1956   : > { %v3616_v10 = vpop.xlane.xlu0 %3615 }
0x1957   : > { %8220 = vrsqrt.f32 %v3619_v7  ;;  %v3618_v11 = vmul.f32 0.03125, %v3616_v10  ;;  %v6944_v7 = vld [vmem:[%s10288_s18] ss:$0 sm:$0xff]  ;;  %s10290_s18 = smov 120  }
0x1959   : > { %v3620_v36 = vadd.f32 1e-05, %v3618_v11 }
0x195b   : > { %8222 = vrsqrt.f32 %v3620_v36 }
0x1964   : > { %v8221_v39 = vpop.eup %8220 }
0x1965   : > { %v3623_v5 = vmul.f32 %v8221_v39, %v3607_v26  ;;  %v6945_v39 = vld [vmem:[%s10234_s3] ss:$0 sm:$0xff] }
0x1967   : > { %v3631_v14 = vmul.f32 %v6932_v2, %v3623_v5 }
0x1968   : > { %v8223_v41 = vpop.eup %8222 }
0x1969   : > { %v3624_v32 = vmul.f32 %v8223_v41, %v3608_v33  ;;  %v3639_v18 = vadd.f32 %v6933_v42, %v3631_v14  ;;  %v8133_v33 = vld [vmem:[#allocation8 + $0x10] sm:$0xff]  }
0x196b   : > { %v3632_v43 = vmul.f32 %v6932_v2, %v3624_v32  ;;  %v8134_v32 = vld [vmem:[#allocation6 + $0x18] sm:$0xff]  }
0x196d   : > { %v3640_v25 = vadd.f32 %v6933_v42, %v3632_v43  ;;  %v8135_v42 = vld [vmem:[#allocation6 + $0x10] sm:$0xff]  }
0x196f   : > { %v3645_v44 = vpack.c.bf16 %v3640_v25, %v3639_v18 }
0x1971   : > { %7513 = vmatmul.mubr.msk.bf16.vlgmr.msra.gmra.mxu0 %vm1212_vm1, %v3645_v44 }
0x1972   : > { %7532 = vmatprep.mubr.msk.bf16.mxu0 %vm8869_vm0, %v8868_v1  ;;  %7529 = vmatpush3.bf16.msra.mxu0 %v8130_v28 }
0x1973   : > { %7530 = vmatprep.subr.bf16.mxu0 %v8868_v1 }
0x1976   : > { %7531 = vmatpush3.bf16.msra.mxu0 %v8132_v31 }
0x1977   : > { %7536 = vmatprep.subr.bf16.mxu0 %v8868_v1 }
0x1a31   : > { %v3702_v47 = vpop.f32.mrf.mxu0 }
0x1a32   : > { %v3703_v48 = vadd.f32 %v6934_v46, %v3702_v47  ;;  %v6957_v47 = vld [vmem:[%s10275_s7 + $0x1] ss:$0 sm:$0xff]  ;;  %s10293_s7 = smov 8  }
0x1a33   : > { %v7514_v20 = vpop.f32.mrf.mxu0 }
0x1a34   : > { %v3709_v52 = vmax.f32 %v3703_v48, 0.0 }
0x1a35   : > { %v3705_v49 = vpop.f32.mrf.mxu0 }
0x1a36   : > { %v3706_v50 = vadd.f32 %v6934_v46, %v3705_v49  ;;  %v6961_v49 = vld [vmem:[%s10277_s8 + $0x1] ss:$0 sm:$0xff] }
0x1a37   : > { %v7515_v51 = vpop.f32.mrf.mxu0 }
0x1a38   : > { %v3710_v53 = vmax.f32 %v3706_v50, 0.0 }
0x1a3a   : > { %v3719_v55 = vpack.c.bf16 %v3710_v53, %v3709_v52  ;;  %v6953_v52 = vld [vmem:[%s10276_s26 + $0x1] ss:$0 sm:$0xff] }
0x1a3c   : > { %7525 = vmatmul.mubr.msk.bf16.vlgmr.msra.gmra.mxu1 %vm3751_vm6, %v3719_v55 }
0x1a3d   : > { %7548 = vmatprep.mubr.msk.bf16.mxu1 %vm8869_vm0, %v8868_v1  ;;  %7545 = vmatpush3.bf16.msra.mxu1 %v8131_v30 }
0x1a3e   : > { %7546 = vmatprep.subr.bf16.mxu1 %v8868_v1 }
0x1a41   : > { %7547 = vmatpush3.bf16.msra.mxu1 %v8133_v33 }
0x1a42   : > { %7558 = vmatprep.subr.bf16.mxu1 %v8868_v1 }
0x1afc   : > { %v3789_v57 = vpop.f32.mrf.mxu1 }
0x1afd   : > { %v3790_v58 = vadd.f32 %v6938_v56, %v3789_v57 }
0x1afe   : > { %v7526_v59 = vpop.f32.mrf.mxu1 }
0x1aff   : > { %v3796_v61 = vadd.f32 %v3790_v58, %v3639_v18 }
0x1b00   : > { %v3792_v62 = vpop.f32.mrf.mxu1 }
0x1b01   : > { %v3793_v3 = vadd.f32 %v6938_v56, %v3792_v62  ;;  %v3800_v13 = vsel %vm1212_vm1, %v3796_v61, 0.0 }
0x1b02   : > { %3801 = vadd.xlane.f32.xlu0 %v3800_v13  ;;  %v7527_v6 = vpop.f32.mrf.mxu1 }
0x1b03   : > { %v3797_v9 = vadd.f32 %v3793_v3, %v3640_v25 }
0x1b05   : > { %v3803_v8 = vsel %vm1212_vm1, %v3797_v9, 0.0 }
0x1b06   : > { %3804 = vadd.xlane.f32.xlu1 %v3803_v8 }
0x1b8b   : > { %v3802_v12 = vpop.xlane.xlu0 %3801 }
0x1b8c   : > { %v3806_v19 = vmul.f32 0.03125, %v3802_v12 }
0x1b8e   : > { %v3808_v15 = vsub.f32 %v3796_v61, %v3806_v19 }
0x1b8f   : > { %v3805_v16 = vpop.xlane.xlu1 %3804 }
0x1b90   : > { %v3807_v17 = vmul.f32 0.03125, %v3805_v16  ;;  %v3810_v21 = vmul.f32 %v3808_v15, %v3808_v15 }
0x1b92   : > { %v3809_v22 = vsub.f32 %v3797_v9, %v3807_v17  ;;  %v3812_v23 = vsel %vm1212_vm1, %v3810_v21, 0.0 }
0x1b93   : > { %3813 = vadd.xlane.f32.xlu0 %v3812_v23 }
0x1b94   : > { %v3811_v24 = vmul.f32 %v3809_v22, %v3809_v22 }
0x1b96   : > { %v3815_v26 = vsel %vm1212_vm1, %v3811_v24, 0.0 }
0x1b97   : > { %3816 = vadd.xlane.f32.xlu1 %v3815_v26 }
0x1c1c   : > { %v3814_v54 = vpop.xlane.xlu0 %3813 }
0x1c1d   : > { %v3818_v38 = vmul.f32 0.03125, %v3814_v54 }
0x1c1f   : > { %v3820_v34 = vadd.f32 1e-05, %v3818_v38 }
0x1c20   : > { %v3817_v4 = vpop.xlane.xlu1 %3816 }
0x1c21   : > { %8224 = vrsqrt.f32 %v3820_v34  ;;  %v3819_v27 = vmul.f32 0.03125, %v3817_v4 }
0x1c23   : > { %v3821_v60 = vadd.f32 1e-05, %v3819_v27 }
0x1c25   : > { %8226 = vrsqrt.f32 %v3821_v60 }
0x1c2e   : > { %v8225_v63 = vpop.eup %8224 }
0x1c2f   : > { %v3824_v0 = vmul.f32 %v8225_v63, %v3808_v15 }
0x1c31   : > { %v3832_v36 = vmul.f32 %v6944_v7, %v3824_v0 }
0x1c32   : > { %v8227_v10 = vpop.eup %8226 }
0x1c33   : > { %v3825_v11 = vmul.f32 %v8227_v10, %v3809_v22  ;;  %v9715_v2 = vadd.f32 %v6945_v39, %v3832_v36 }
0x1c35   : > { %v3833_v5 = vmul.f32 %v6944_v7, %v3825_v11 }
0x1c37   : > { %v9717_v41 = vadd.f32 %v6945_v39, %v3833_v5 }
0x1c39   : > { %v3870_v14 = vpack.c.bf16 %v9717_v41, %v9715_v2 }
0x1c3b   : > { %7533 = vmatmul.mubr.msk.bf16.vlgmr.msra.gmra.mxu0 %vm1212_vm1, %v3870_v14  ;;  %7549 = vmatmul.mubr.msk.bf16.vlgmr.msra.gmra.mxu1 %vm1212_vm1, %v3870_v14 }
0x1c3c   : > { %7537 = vmatpush3.bf16.msra.mxu0 %v8134_v32  ;;  %7540 = vmatprep.mubr.msk.bf16.mxu0 %vm8869_vm0, %v8868_v1 }
0x1c3d   : > { %7538 = vmatprep.subr.bf16.mxu0 %v8868_v1  ;;  %7560 = vmatprep.mubr.msk.bf16.mxu1 %vm8869_vm0, %v8868_v1 }
0x1c40   : > { %7539 = vmatpush3.bf16.msra.mxu0 %v8135_v42 }
0x1c41   : > { %7552 = vmatprep.subr.bf16.mxu0 %v8868_v1 }
0x1c43   : > { %7541 = vmatmul.mubr.msk.bf16.vlgmr.msra.gmra.mxu0 %vm1212_vm1, %v3870_v14 }
0x1c44   : > { %7554 = vmatprep.mubr.msk.bf16.mxu0 %vm8869_vm0, %v8868_v1 }
0x1cfb   : > { %v3926_v43 = vpop.f32.mrf.mxu0  ;;  %v4044_v18 = vpop.f32.mrf.mxu1 }
0x1cfc   : > { %v4045_v55 = vadd.f32 %v6961_v49, %v4044_v18  ;;  %v3927_v59 = vadd.f32 %v6953_v52, %v3926_v43 }
0x1cfd   : > { %v7534_v25 = vpop.f32.mrf.mxu0  ;;  %v7550_v44 = vpop.f32.mrf.mxu1 }
0x1cfe   : > { %v9742_v62 = vpack.c.bf16 %v4045_v55, %v4045_v55  ;;  %v9746_v6 = vpack.c.bf16 %v3927_v59, %v3927_v59 }
0x1cff   : > { %v3929_v37 = vpop.f32.mrf.mxu0  ;;  %v4047_v29 = vpop.f32.mrf.mxu1 }
0x1d00   : > { %v4048_v3 = vadd.f32 %v6961_v49, %v4047_v29  ;;  %v3930_v9 = vadd.f32 %v6953_v52, %v3929_v37  ;;  %v4179_v12 = vsel %vm1503_vm3, %v9742_v62, 0 }
0x1d01   : > { %v7535_v45 = vpop.f32.mrf.mxu0  ;;  %v7551_v46 = vpop.f32.mrf.mxu1 }
0x1d02   : > { %v9749_v8 = vpack.c.bf16 %v4048_v3, %v4048_v3  ;;  %v9757_v19 = vpack.c.bf16 %v3930_v9, %v3930_v9 }
0x1d03   : > { %v3985_v20 = vpop.f32.mrf.mxu0 }
0x1d04   : > { %v3986_v48 = vadd.f32 %v6957_v47, %v3985_v20  ;;  %v4225_v15 = vsel %vm1503_vm3, %v9749_v8, 0 }
0x1d05   : > { %v7542_v50 = vpop.f32.mrf.mxu0 }
0x1d06   : > { %v9734_v51 = vpack.c.bf16 %v3986_v48, %v3986_v48 }
0x1d07   : > { %v3988_v53 = vpop.f32.mrf.mxu0 }
0x1d08   : > { %v3989_v56 = vadd.f32 %v6957_v47, %v3988_v53  ;;  %v4061_v57 = vsel %vm1381_vm2, %v9734_v51, 0 }
0x1d09   : > { %v7543_v58 = vpop.f32.mrf.mxu0  ;;  %7553 = vmatpush3.bf16.xpose.msra.mxu0 %v4061_v57 }
0x1d0a   : > { %v9739_v61 = vpack.c.bf16 %v3989_v56, %v3989_v56  ;;  %7564 = vmatprep.subr.bf16.mxu0 %v8868_v1 }
0x1d0c   : > { %v4107_v13 = vsel %vm1381_vm2, %v9739_v61, 0 }
0x1d0d   : > { %7559 = vmatpush3.bf16.xpose.msra.mxu1 %v4107_v13 }
0x1d0e   : > { %7570 = vmatprep.subr.bf16.mxu1 %v8868_v1 }
0x1d10   : > { %7555 = vmatmul.mubr.msk.bf16.vlgmr.msra.gmra.mxu0 %vm1381_vm2, %v9746_v6 }
0x1d11   : > { %7565 = vmatpush3.bf16.msra.mxu0 %v4179_v12  ;;  %7566 = vmatprep.mubr.msk.bf16.mxu0 %vm8869_vm0, %v8868_v1 }
0x1d12   : > { %7576 = vmatprep.subr.bf16.mxu0 %v8868_v1 }
0x1d14   : > { %7561 = vmatmul.mubr.msk.bf16.vlgmr.msra.gmra.mxu1 %vm1381_vm2, %v9757_v19 }
0x1d15   : > { %7571 = vmatpush3.bf16.msra.mxu1 %v4225_v15  ;;  %7572 = vmatprep.mubr.msk.bf16.mxu1 %vm8869_vm0, %v8868_v1 }
0x1d16   : > { %7582 = vmatprep.subr.bf16.mxu1 %v8868_v1 }
0x1dd0   : > { %v4097_v16 = vpop.f32.mrf.mxu0 }
0x1dd1   : > { %v4149_v17 = vmul.f32 0.35355338, %v4097_v16 }
0x1dd2   : > { %v7556_v21 = vpop.f32.mrf.mxu0 }
0x1dd3   : > { %v4151_v22 = vsel %vm1381_vm2, %v4149_v17, -inf }
0x1dd4   : > { %4152 = vmax.xlane.f32.xlu0 %v4151_v22  ;;  %v4100_v23 = vpop.f32.mrf.mxu0  ;;  %v4143_v24 = vpop.f32.mrf.mxu1 }
0x1dd5   : > { %v4150_v26 = vmul.f32 0.35355338, %v4143_v24 }
0x1dd6   : > { %v7557_v28 = vpop.f32.mrf.mxu0  ;;  %v7562_v30 = vpop.f32.mrf.mxu1 }
0x1dd7   : > { %v4154_v31 = vsel %vm1381_vm2, %v4150_v26, -inf }
0x1dd8   : > { %4155 = vmax.xlane.f32.xlu1 %v4154_v31  ;;  %v4146_v33 = vpop.f32.mrf.mxu1 }
0x1dda   : > { %v7563_v54 = vpop.f32.mrf.mxu1 }
0x1de9   : > { %4323 = vrot.lane.b32.xlu1 %v9739_v61, %s10290_s18 }
0x1e5d   : > { %v4153_v38 = vpop.xlane.xlu0 %4152 }
0x1e5e   : > { %v4157_v34 = vsub.f32 %v4149_v17, %v4153_v38 }
0x1e60   : > { %v4159_v4 = vmul.f32 1.442695, %v4157_v34 }
0x1e61   : > { %v4156_v27 = vpop.xlane.xlu1 %4155 }
0x1e62   : > { %8228 = vpow2.f32 %v4159_v4  ;;  %v4158_v60 = vsub.f32 %v4150_v26, %v4156_v27 }
0x1e64   : > { %v4161_v63 = vmul.f32 1.442695, %v4158_v60 }
0x1e65   : > { %v4324_v36 = vpop.permute.xlu1 %4323 }
0x1e66   : > { %8230 = vpow2.f32 %v4161_v63  ;;  %v4329_v29 = vsel %vm1381_vm2, %v4324_v36, 0 }
0x1e6f   : > { %v8229_v0 = vpop.eup %8228 }
0x1e70   : > { %v4163_v7 = vsel %vm1381_vm2, %v8229_v0, 0.0 }
0x1e71   : > { %4164 = vadd.xlane.f32.xlu0 %v4163_v7 }
0x1e73   : > { %v8231_v10 = vpop.eup %8230 }
0x1e74   : > { %v4166_v11 = vsel %vm1381_vm2, %v8231_v10, 0.0 }
0x1e75   : > { %4167 = vadd.xlane.f32.xlu1 %v4166_v11 }
0x1e86   : > { %4268 = vrot.lane.b32.xlu1 %v9746_v6, %s10290_s18 }
0x1e87   : > { %4271 = vrot.lane.b32.xlu0 %v9734_v51, %s10290_s18 }
0x1e8a   : > { %4320 = vrot.lane.b32.xlu1 %v9757_v19, %s10290_s18 }
0x1efa   : > { %v4165_v39 = vpop.xlane.xlu0 %4164 }
0x1efb   : > { %8232 = vrcp.f32 %v4165_v39 }
0x1efe   : > { %v4168_v5 = vpop.xlane.xlu1 %4167  ;;  %v4272_v42 = vpop.permute.xlu0 %4271 }
0x1eff   : > { %8234 = vrcp.f32 %v4168_v5  ;;  %v4277_v25 = vsel %vm1381_vm2, %v4272_v42, 0 }
0x1f02   : > { %v4269_v45 = vpop.permute.xlu1 %4268 }
0x1f06   : > { %v4321_v46 = vpop.permute.xlu1 %4320 }
0x1f08   : > { %v8233_v32 = vpop.eup %8232 }
0x1f09   : > { %v4171_v14 = vmul.f32 %v8233_v32, %v8229_v0 }
0x1f0b   : > { %v4173_v43 = vpack.c.bf16 %v4171_v14, %v4171_v14 }
0x1f0c   : > { %v8235_v18 = vpop.eup %8234 }
0x1f0d   : > { %7567 = vmatmul.mubr.msk.bf16.vlgmr.msra.gmra.mxu0 %vm1381_vm2, %v4173_v43  ;;  %v4172_v44 = vmul.f32 %v8235_v18, %v8231_v10 }
0x1f0e   : > { %7577 = vmatpush3.bf16.xpose.msra.mxu0 %v4277_v25  ;;  %7578 = vmatprep.mubr.msk.bf16.mxu0 %vm8869_vm0, %v8868_v1 }
0x1f0f   : > { %v4174_v37 = vpack.c.bf16 %v4172_v44, %v4172_v44  ;;  %7588 = vmatprep.subr.bf16.mxu0 %v8868_v1 }
0x1f11   : > { %7573 = vmatmul.mubr.msk.bf16.vlgmr.msra.gmra.mxu1 %vm1381_vm2, %v4174_v37 }
0x1f12   : > { %7583 = vmatpush3.bf16.xpose.msra.mxu1 %v4329_v29  ;;  %7584 = vmatprep.mubr.msk.bf16.mxu1 %vm8869_vm0, %v8868_v1 }
0x1f13   : > { %7594 = vmatprep.subr.bf16.mxu1 %v8868_v1 }
0x1f15   : > { %7579 = vmatmul.mubr.msk.bf16.vlgmr.msra.gmra.mxu0 %vm1381_vm2, %v4269_v45 }
0x1f16   : > { %7590 = vmatprep.mubr.msk.bf16.mxu0 %vm8869_vm0, %v8868_v1 }
0x1f19   : > { %7585 = vmatmul.mubr.msk.bf16.vlgmr.msra.gmra.mxu1 %vm1381_vm2, %v4321_v46 }
0x1f1a   : > { %7596 = vmatprep.mubr.msk.bf16.mxu1 %vm8869_vm0, %v8868_v1 }
0x1fcd   : > { %v9795_v47 = vpop.f32.mrf.mxu0 }
0x1fcf   : > { %v7568_v20 = vpop.f32.mrf.mxu0 }
0x1fd1   : > { %v4218_v48 = vpop.f32.mrf.mxu0  ;;  %v9797_v49 = vpop.f32.mrf.mxu1 }
0x1fd3   : > { %v7569_v50 = vpop.f32.mrf.mxu0  ;;  %v7574_v52 = vpop.f32.mrf.mxu1 }
0x1fd5   : > { %v4264_v53 = vpop.f32.mrf.mxu1  ;;  %v4313_v55 = vpop.f32.mrf.mxu0 }
0x1fd6   : > { %v4371_v56 = vmul.f32 0.35355338, %v4313_v55 }
0x1fd7   : > { %v7575_v57 = vpop.f32.mrf.mxu1  ;;  %v7580_v58 = vpop.f32.mrf.mxu0 }
0x1fd8   : > { %v4373_v59 = vsel %vm1381_vm2, %v4371_v56, -inf }
0x1fd9   : > { %4374 = vmax.xlane.f32.xlu0 %v4373_v59  ;;  %v4316_v3 = vpop.f32.mrf.mxu0  ;;  %v4365_v13 = vpop.f32.mrf.mxu1 }
0x1fda   : > { %v4372_v9 = vmul.f32 0.35355338, %v4365_v13 }
0x1fdb   : > { %v7581_v12 = vpop.f32.mrf.mxu0  ;;  %v7586_v15 = vpop.f32.mrf.mxu1 }
0x1fdc   : > { %v4376_v16 = vsel %vm1381_vm2, %v4372_v9, -inf }
0x1fdd   : > { %4377 = vmax.xlane.f32.xlu1 %v4376_v16  ;;  %v4368_v17 = vpop.f32.mrf.mxu1 }
0x1fdf   : > { %v7587_v21 = vpop.f32.mrf.mxu1 }
0x1fee   : > { %4447 = vrot.lane.b32.xlu1 %v9749_v8, %s10290_s18 }
0x1ff2   : > { %4497 = vrot.lane.b32.xlu1 %v9734_v51, %s10291_s5 }
0x1ff6   : > { %4547 = vrot.lane.b32.xlu1 %v9739_v61, %s10291_s5 }
0x1ffa   : > { %4545 = vrot.lane.b32.xlu1 %v9757_v19, %s10291_s5 }
0x2062   : > { %v4375_v22 = vpop.xlane.xlu0 %4374 }
0x2063   : > { %v4379_v23 = vsub.f32 %v4371_v56, %v4375_v22 }
0x2065   : > { %v4381_v24 = vmul.f32 1.442695, %v4379_v23 }
0x2066   : > { %v4378_v26 = vpop.xlane.xlu1 %4377 }
0x2067   : > { %8236 = vpow2.f32 %v4381_v24  ;;  %v4380_v28 = vsub.f32 %v4372_v9, %v4378_v26 }
0x2069   : > { %v4383_v30 = vmul.f32 1.442695, %v4380_v28 }
0x206a   : > { %v4448_v31 = vpop.permute.xlu1 %4447 }
0x206b   : > { %8238 = vpow2.f32 %v4383_v30  ;;  %v4453_v33 = vsel %vm1503_vm3, %v4448_v31, 0 }
0x206c   : > { %7595 = vmatpush3.bf16.msra.mxu1 %v4453_v33 }
0x206d   : > { %7606 = vmatprep.subr.bf16.mxu1 %v8868_v1 }
0x206e   : > { %v4498_v10 = vpop.permute.xlu1 %4497 }
0x206f   : > { %v4503_v5 = vsel %vm1381_vm2, %v4498_v10, 0 }
0x2072   : > { %v4548_v14 = vpop.permute.xlu1 %4547 }
0x2073   : > { %v4553_v43 = vsel %vm1381_vm2, %v4548_v14, 0 }
0x2074   : > { %v8237_v54 = vpop.eup %8236 }
0x2075   : > { %v4385_v38 = vsel %vm1381_vm2, %v8237_v54, 0.0 }
0x2076   : > { %4386 = vadd.xlane.f32.xlu0 %v4385_v38  ;;  %v4546_v25 = vpop.permute.xlu1 %4545 }
0x2078   : > { %v8239_v34 = vpop.eup %8238 }
0x2079   : > { %v4388_v4 = vsel %vm1381_vm2, %v8239_v34, 0.0 }
0x207a   : > { %4389 = vadd.xlane.f32.xlu0 %v4388_v4 }
0x2090   : > { %4398 = vrot.lane.b32.xlu0 %v9742_v62, %s10290_s18 }
0x2094   : > { %4495 = vrot.lane.b32.xlu0 %v9746_v6, %s10291_s5 }
0x20ff   : > { %v4387_v27 = vpop.xlane.xlu0 %4386 }
0x2100   : > { %8240 = vrcp.f32 %v4387_v27 }
0x2103   : > { %v4390_v60 = vpop.xlane.xlu0 %4389 }
0x2104   : > { %8242 = vrcp.f32 %v4390_v60 }
0x2107   : > { %v4399_v63 = vpop.permute.xlu0 %4398 }
0x2108   : > { %v4404_v0 = vsel %vm1503_vm3, %v4399_v63, 0 }
0x2109   : > { %7589 = vmatpush3.bf16.msra.mxu0 %v4404_v0 }
0x210a   : > { %7600 = vmatprep.subr.bf16.mxu0 %v8868_v1 }
0x210b   : > { %v4496_v18 = vpop.permute.xlu0 %4495 }
0x210d   : > { %v8241_v7 = vpop.eup %8240 }
0x210e   : > { %v4393_v11 = vmul.f32 %v8241_v7, %v8237_v54 }
0x2110   : > { %v4395_v36 = vpack.c.bf16 %v4393_v11, %v4393_v11 }
0x2111   : > { %v8243_v39 = vpop.eup %8242 }
0x2112   : > { %7591 = vmatmul.mubr.msk.bf16.vlgmr.msra.gmra.mxu0 %vm1381_vm2, %v4395_v36  ;;  %v4394_v32 = vmul.f32 %v8243_v39, %v8239_v34 }
0x2113   : > { %7601 = vmatpush3.bf16.xpose.msra.mxu0 %v4503_v5  ;;  %7602 = vmatprep.mubr.msk.bf16.mxu0 %vm8869_vm0, %v8868_v1 }
0x2114   : > { %v4396_v42 = vpack.c.bf16 %v4394_v32, %v4394_v32  ;;  %7612 = vmatprep.subr.bf16.mxu0 %v8868_v1 }
0x2116   : > { %7597 = vmatmul.mubr.msk.bf16.vlgmr.msra.gmra.mxu1 %vm1381_vm2, %v4396_v42 }
0x2117   : > { %7607 = vmatpush3.bf16.xpose.msra.mxu1 %v4553_v43  ;;  %7608 = vmatprep.mubr.msk.bf16.mxu1 %vm8869_vm0, %v8868_v1 }
0x2118   : > { %7618 = vmatprep.subr.bf16.mxu1 %v8868_v1 }
0x211a   : > { %7603 = vmatmul.mubr.msk.bf16.vlgmr.msra.gmra.mxu0 %vm1381_vm2, %v4496_v18 }
0x211b   : > { %7614 = vmatprep.mubr.msk.bf16.mxu0 %vm8869_vm0, %v8868_v1 }
0x211e   : > { %7609 = vmatmul.mubr.msk.bf16.vlgmr.msra.gmra.mxu1 %vm1381_vm2, %v4546_v25 }
0x211f   : > { %7620 = vmatprep.mubr.msk.bf16.mxu1 %vm8869_vm0, %v8868_v1 }
0x21d2   : > { %v9835_v44 = vpop.f32.mrf.mxu0 }
0x21d4   : > { %v7592_v37 = vpop.f32.mrf.mxu0 }
0x21d6   : > { %v4443_v29 = vpop.f32.mrf.mxu0  ;;  %v9837_v45 = vpop.f32.mrf.mxu1 }
0x21d7   : > { %v8077_v46 = vpack.i.bf16 %v9837_v45, %v9835_v44 }
0x21d8   : > { %v7593_v20 = vpop.f32.mrf.mxu0  ;;  %v7598_v48 = vpop.f32.mrf.mxu1 }
0x21da   : > { %v4492_v50 = vpop.f32.mrf.mxu1  ;;  %v4539_v52 = vpop.f32.mrf.mxu0 }
0x21db   : > { %v4595_v53 = vmul.f32 0.35355338, %v4539_v52 }
0x21dc   : > { %v7599_v55 = vpop.f32.mrf.mxu1  ;;  %v7604_v56 = vpop.f32.mrf.mxu0 }
0x21dd   : > { %v4597_v57 = vsel %vm1381_vm2, %v4595_v53, -inf }
0x21de   : > { %4598 = vmax.xlane.f32.xlu0 %v4597_v57  ;;  %v4542_v58 = vpop.f32.mrf.mxu0  ;;  %v4589_v59 = vpop.f32.mrf.mxu1 }
0x21df   : > { %v4596_v3 = vmul.f32 0.35355338, %v4589_v59 }
0x21e0   : > { %v7605_v13 = vpop.f32.mrf.mxu0  ;;  %v7610_v9 = vpop.f32.mrf.mxu1 }
0x21e1   : > { %v4600_v12 = vsel %vm1381_vm2, %v4596_v3, -inf }
0x21e2   : > { %4601 = vmax.xlane.f32.xlu1 %v4600_v12  ;;  %v4592_v15 = vpop.f32.mrf.mxu1 }
0x21e4   : > { %v7611_v16 = vpop.f32.mrf.mxu1 }
0x21f3   : > { %4669 = vrot.lane.b32.xlu1 %v9749_v8, %s10291_s5 }
0x21f7   : > { %4719 = vrot.lane.b32.xlu1 %v9734_v51, %s10292_s6 }
0x21fb   : > { %4769 = vrot.lane.b32.xlu1 %v9739_v61, %s10292_s6 }
0x21ff   : > { %4767 = vrot.lane.b32.xlu1 %v9757_v19, %s10292_s6 }
0x2267   : > { %v4599_v17 = vpop.xlane.xlu0 %4598 }
0x2268   : > { %v4603_v21 = vsub.f32 %v4595_v53, %v4599_v17 }
0x226a   : > { %v4605_v22 = vmul.f32 1.442695, %v4603_v21 }
0x226b   : > { %v4602_v23 = vpop.xlane.xlu1 %4601 }
0x226c   : > { %8244 = vpow2.f32 %v4605_v22  ;;  %v4604_v24 = vsub.f32 %v4596_v3, %v4602_v23 }
0x226e   : > { %v4607_v26 = vmul.f32 1.442695, %v4604_v24 }
0x226f   : > { %v4670_v28 = vpop.permute.xlu1 %4669 }
0x2270   : > { %8246 = vpow2.f32 %v4607_v26  ;;  %v4675_v30 = vsel %vm1503_vm3, %v4670_v28, 0 }
0x2271   : > { %7619 = vmatpush3.bf16.msra.mxu1 %v4675_v30 }
0x2272   : > { %7630 = vmatprep.subr.bf16.mxu1 %v8868_v1 }
0x2273   : > { %v4720_v27 = vpop.permute.xlu1 %4719 }
0x2274   : > { %v4725_v7 = vsel %vm1381_vm2, %v4720_v27, 0 }
0x2279   : > { %v8245_v51 = vpop.eup %8244 }
0x227a   : > { %v4609_v61 = vsel %vm1381_vm2, %v8245_v51, 0.0 }
0x227b   : > { %4610 = vadd.xlane.f32.xlu0 %v4609_v61 }
0x227d   : > { %v8247_v31 = vpop.eup %8246 }
0x227e   : > { %v4612_v19 = vsel %vm1381_vm2, %v8247_v31, 0.0 }
0x227f   : > { %4613 = vadd.xlane.f32.xlu0 %v4612_v19 }
0x2295   : > { %4621 = vrot.lane.b32.xlu0 %v9742_v62, %s10291_s5 }
0x2299   : > { %4717 = vrot.lane.b32.xlu0 %v9746_v6, %s10292_s6  ;;  %v4770_v6 = vpop.permute.xlu1 %4769 }
0x229a   : > { %v4775_v36 = vsel %vm1381_vm2, %v4770_v6, 0 }
0x229d   : > { %v4768_v5 = vpop.permute.xlu1 %4767 }
0x2304   : > { %v4611_v33 = vpop.xlane.xlu0 %4610 }
0x2305   : > { %8248 = vrcp.f32 %v4611_v33 }
0x2308   : > { %v4614_v54 = vpop.xlane.xlu0 %4613 }
0x2309   : > { %8250 = vrcp.f32 %v4614_v54 }
0x230c   : > { %v4622_v38 = vpop.permute.xlu0 %4621 }
0x230d   : > { %v4627_v34 = vsel %vm1503_vm3, %v4622_v38, 0  ;;  %v8136_v38 = vld [vmem:[#allocation9 + $0x18] sm:$0xff]  }
0x230e   : > { %7613 = vmatpush3.bf16.msra.mxu0 %v4627_v34  ;;  %v8137_v34 = vld [vmem:[#allocation9 + $0x10] sm:$0xff]  }
0x230f   : > { %7624 = vmatprep.subr.bf16.mxu0 %v8868_v1 }
0x2310   : > { %v4718_v39 = vpop.permute.xlu0 %4717 }
0x2312   : > { %v8249_v4 = vpop.eup %8248 }
0x2313   : > { %v4617_v60 = vmul.f32 %v8249_v4, %v8245_v51 }
0x2315   : > { %v4619_v63 = vpack.c.bf16 %v4617_v60, %v4617_v60 }
0x2316   : > { %v8251_v0 = vpop.eup %8250 }
0x2317   : > { %v4618_v10 = vmul.f32 %v8251_v0, %v8247_v31  ;;  %7615 = vmatmul.mubr.msk.bf16.vlgmr.msra.gmra.mxu0 %vm1381_vm2, %v4619_v63 }
0x2318   : > { %7625 = vmatpush3.bf16.xpose.msra.mxu0 %v4725_v7  ;;  %7626 = vmatprep.mubr.msk.bf16.mxu0 %vm8869_vm0, %v8868_v1 }
0x2319   : > { %v4620_v11 = vpack.c.bf16 %v4618_v10, %v4618_v10  ;;  %7636 = vmatprep.subr.bf16.mxu0 %v8868_v1 }
0x231b   : > { %7621 = vmatmul.mubr.msk.bf16.vlgmr.msra.gmra.mxu1 %vm1381_vm2, %v4620_v11 }
0x231c   : > { %7631 = vmatpush3.bf16.xpose.msra.mxu1 %v4775_v36  ;;  %7632 = vmatprep.mubr.msk.bf16.mxu1 %vm8869_vm0, %v8868_v1 }
0x231d   : > { %7642 = vmatprep.subr.bf16.mxu1 %v8868_v1 }
0x231f   : > { %7627 = vmatmul.mubr.msk.bf16.vlgmr.msra.gmra.mxu0 %vm1381_vm2, %v4718_v39 }
0x2320   : > { %7638 = vmatprep.mubr.msk.bf16.mxu0 %vm8869_vm0, %v8868_v1 }
0x2323   : > { %7633 = vmatmul.mubr.msk.bf16.vlgmr.msra.gmra.mxu1 %vm1381_vm2, %v4768_v5 }
0x2324   : > { %7644 = vmatprep.mubr.msk.bf16.mxu1 %vm8869_vm0, %v8868_v1 }
0x23d7   : > { %v4663_v32 = vpop.f32.mrf.mxu0 }
0x23d9   : > { %v7616_v14 = vpop.f32.mrf.mxu0 }
0x23db   : > { %v4666_v42 = vpop.f32.mrf.mxu0  ;;  %v4711_v43 = vpop.f32.mrf.mxu1 }
0x23dc   : > { %v8082_v9 = vpack.i.bf16 %v4711_v43, %v4663_v32 }
0x23dd   : > { %v7617_v18 = vpop.f32.mrf.mxu0  ;;  %v7622_v25 = vpop.f32.mrf.mxu1 }
0x23df   : > { %v4714_v37 = vpop.f32.mrf.mxu1  ;;  %v4761_v29 = vpop.f32.mrf.mxu0 }
0x23e0   : > { %v4817_v20 = vmul.f32 0.35355338, %v4761_v29 }
0x23e1   : > { %v7623_v48 = vpop.f32.mrf.mxu1  ;;  %v7628_v50 = vpop.f32.mrf.mxu0 }
0x23e2   : > { %v4819_v52 = vsel %vm1381_vm2, %v4817_v20, -inf }
0x23e3   : > { %4820 = vmax.xlane.f32.xlu0 %v4819_v52  ;;  %v4764_v53 = vpop.f32.mrf.mxu0  ;;  %v4811_v55 = vpop.f32.mrf.mxu1 }
0x23e4   : > { %v4818_v56 = vmul.f32 0.35355338, %v4811_v55 }
0x23e5   : > { %v7629_v57 = vpop.f32.mrf.mxu0  ;;  %v7634_v58 = vpop.f32.mrf.mxu1 }
0x23e6   : > { %v4822_v59 = vsel %vm1381_vm2, %v4818_v56, -inf }
0x23e7   : > { %4823 = vmax.xlane.f32.xlu1 %v4822_v59  ;;  %v4814_v3 = vpop.f32.mrf.mxu1 }
0x23e9   : > { %v7635_v13 = vpop.f32.mrf.mxu1 }
0x23f8   : > { %4891 = vrot.lane.b32.xlu1 %v9749_v8, %s10292_s6 }
0x23fc   : > { %8078 = vrot.lane.b32.xlu1 %v8077_v46, %s10293_s7 }
0x2400   : > { %8083 = vrot.lane.b32.xlu1 %v8082_v9, %s10282_s17 }
0x246c   : > { %v4821_v12 = vpop.xlane.xlu0 %4820 }
0x246d   : > { %v4825_v15 = vsub.f32 %v4817_v20, %v4821_v12 }
0x246f   : > { %v4827_v16 = vmul.f32 1.442695, %v4825_v15 }
0x2470   : > { %v4824_v17 = vpop.xlane.xlu1 %4823 }
0x2471   : > { %8252 = vpow2.f32 %v4827_v16  ;;  %v4826_v21 = vsub.f32 %v4818_v56, %v4824_v17 }
0x2473   : > { %v4829_v22 = vmul.f32 1.442695, %v4826_v21 }
0x2474   : > { %v4892_v23 = vpop.permute.xlu1 %4891 }
0x2475   : > { %8254 = vpow2.f32 %v4829_v22  ;;  %v4897_v24 = vsel %vm1503_vm3, %v4892_v23, 0 }
0x2476   : > { %7643 = vmatpush3.bf16.msra.mxu1 %v4897_v24 }
0x2477   : > { %7656 = vmatprep.subr.bf16.mxu1 %v8868_v1 }
0x2478   : > { %v8079_v36 = vpop.permute.xlu1 %8078 }
0x2479   : > { %v8081_v5 = vunpack.i.h.bf16 %v8079_v36  ;;  %v8080_v32 = vunpack.i.l.bf16 %v8079_v36  ;;  %v6993_v36 = vld [vmem:[#allocation18 + $0x1] ss:$0 sm:$0xff] }
0x247b   : > { %v4964_v18 = vsel %vm1381_vm2, %v9797_v49, %v8081_v5  ;;  %v4963_v25 = vsel %vm1381_vm2, %v9795_v47, %v8080_v32  ;;  %v6981_v49 = vld [vmem:[#allocation11 + $0x1] ss:$0 sm:$0xff] }
0x247c   : > { %v8084_v39 = vpop.permute.xlu1 %8083 }
0x247d   : > { %v8086_v14 = vunpack.i.h.bf16 %v8084_v39  ;;  %v8085_v42 = vunpack.i.l.bf16 %v8084_v39 }
0x247e   : > { %v8253_v8 = vpop.eup %8252 }
0x247f   : > { %v4831_v44 = vsel %vm1381_vm2, %v8253_v8, 0.0  ;;  %v4965_v20 = vsel %vm2291_vm4, %v4963_v25, %v8085_v42  ;;  %v4966_v48 = vsel %vm2291_vm4, %v4964_v18, %v8086_v14 }
0x2480   : > { %4832 = vadd.xlane.f32.xlu0 %v4831_v44 }
0x2482   : > { %v8255_v45 = vpop.eup %8254 }
0x2483   : > { %v4834_v46 = vsel %vm1381_vm2, %v8255_v45, 0.0 }
0x2484   : > { %4835 = vadd.xlane.f32.xlu0 %v4834_v46  ;;  %v8140_v46 = vld [vmem:[#allocation12 + $0x18] sm:$0xff]  }
0x249a   : > { %4843 = vrot.lane.b32.xlu0 %v9742_v62, %s10292_s6 }
0x2509   : > { %v4833_v26 = vpop.xlane.xlu0 %4832 }
0x250a   : > { %8256 = vrcp.f32 %v4833_v26  ;;  %v8141_v26 = vld [vmem:[#allocation12 + $0x10] sm:$0xff]  }
0x250d   : > { %v4836_v28 = vpop.xlane.xlu0 %4835 }
0x250e   : > { %8258 = vrcp.f32 %v4836_v28  ;;  %v8142_v28 = vld [vmem:[#allocation15 + $0x18] sm:$0xff]  }
0x2511   : > { %v4844_v30 = vpop.permute.xlu0 %4843 }
0x2512   : > { %v4849_v51 = vsel %vm1503_vm3, %v4844_v30, 0 }
0x2513   : > { %7637 = vmatpush3.bf16.msra.mxu0 %v4849_v51 }
0x2514   : > { %7648 = vmatprep.subr.bf16.mxu0 %v8868_v1 }
0x2517   : > { %v8257_v61 = vpop.eup %8256 }
0x2518   : > { %v4839_v31 = vmul.f32 %v8257_v61, %v8253_v8 }
0x251a   : > { %v4841_v19 = vpack.c.bf16 %v4839_v31, %v4839_v31 }
0x251b   : > { %v8259_v33 = vpop.eup %8258 }
0x251c   : > { %v4840_v54 = vmul.f32 %v8259_v33, %v8255_v45  ;;  %7639 = vmatmul.mubr.msk.bf16.vlgmr.msra.gmra.mxu0 %vm1381_vm2, %v4841_v19  ;;  %v8138_v45 = vld [vmem:[#allocation14 + $0x18] sm:$0xff]  }
0x251d   : > { %7652 = vmatprep.mubr.msk.bf16.mxu0 %vm8869_vm0, %v8868_v1  ;;  %7649 = vmatpush3.bf16.msra.mxu0 %v8136_v38  ;;  %v6987_v38 = vld [vmem:[%s10279_s11 + $0x1] ss:$0 sm:$0xff] }
0x251e   : > { %v4842_v62 = vpack.c.bf16 %v4840_v54, %v4840_v54  ;;  %7650 = vmatprep.subr.bf16.mxu0 %v8868_v1 }
0x2520   : > { %7645 = vmatmul.mubr.msk.bf16.vlgmr.msra.gmra.mxu1 %vm1381_vm2, %v4842_v62 }
0x2521   : > { %7660 = vmatprep.mubr.msk.bf16.mxu1 %vm8869_vm0, %v8868_v1  ;;  %7651 = vmatpush3.bf16.msra.mxu0 %v8137_v34 }
0x2522   : > { %7664 = vmatprep.subr.bf16.mxu0 %v8138_v45  ;;  %7657 = vmatpush3.bf16.msra.mxu1 %v8140_v46 }
0x2523   : > { %7658 = vmatprep.subr.bf16.mxu1 %v8868_v1 }
0x2526   : > { %7659 = vmatpush3.bf16.msra.mxu1 %v8141_v26 }
0x2527   : > { %7672 = vmatprep.subr.bf16.mxu1 %v8142_v28 }
0x25dc   : > { %v4885_v4 = vpop.f32.mrf.mxu0 }
0x25de   : > { %v7640_v27 = vpop.f32.mrf.mxu0 }
0x25e0   : > { %v4888_v60 = vpop.f32.mrf.mxu0  ;;  %v4933_v63 = vpop.f32.mrf.mxu1 }
0x25e1   : > { %v8087_v0 = vpack.i.bf16 %v4933_v63, %v4885_v4  ;;  %v6988_v60 = vld [vmem:[%s10281_s28 + $0x1] ss:$0 sm:$0xff] }
0x25e2   : > { %v7641_v7 = vpop.f32.mrf.mxu0  ;;  %v7646_v10 = vpop.f32.mrf.mxu1 }
0x25e3   : > { %8088 = vrot.lane.b32.xlu0 %v8087_v0, %s10283_s15 }
0x25e4   : > { %v4936_v6 = vpop.f32.mrf.mxu1 }
0x25e5   : > { %v8143_v6 = vld [vmem:[#allocation15 + $0x10] sm:$0xff]  }
0x25e6   : > { %v7647_v11 = vpop.f32.mrf.mxu1 }
0x2655   : > { %v8089_v43 = vpop.permute.xlu0 %8088 }
0x2656   : > { %v8091_v37 = vunpack.i.h.bf16 %v8089_v43  ;;  %v8090_v29 = vunpack.i.l.bf16 %v8089_v43 }
0x2658   : > { %v4968_v50 = vsel %vm2294_vm5, %v4966_v48, %v8091_v37  ;;  %v4967_v52 = vsel %vm2294_vm5, %v4965_v20, %v8090_v29  ;;  %v6989_v29 = vld [vmem:[#allocation17 + $0x1] ss:$0 sm:$0xff] }
0x2659   : > { %v4969_v53 = vpack.c.bf16 %v4968_v50, %v4967_v52 }
0x265b   : > { %7653 = vmatmul.mubr.msk.bf16.vlgmr.msra.gmra.mxu0 %vm1212_vm1, %v4969_v53 }
0x265c   : > { %7668 = vmatprep.mubr.msk.bf16.mxu0 %vm1212_vm1, %v9480_v35  ;;  %7665 = vmatpush3.bf16.msra.mxu0 %v8138_v45 }
0x271b   : > { %v5025_v55 = vpop.f32.mrf.mxu0 }
0x271c   : > { %v5026_v56 = vadd.f32 %v6981_v49, %v5025_v55 }
0x271d   : > { %v7654_v47 = vpop.f32.mrf.mxu0 }
0x271e   : > { %v5032_v57 = vadd.f32 %v5026_v56, %v9715_v2 }
0x271f   : > { %v5028_v58 = vpop.f32.mrf.mxu0 }
0x2720   : > { %v5029_v59 = vadd.f32 %v6981_v49, %v5028_v58  ;;  %v5038_v3 = vsel %vm1212_vm1, %v5032_v57, 0.0 }
0x2721   : > { %5039 = vadd.xlane.f32.xlu1 %v5038_v3  ;;  %v7655_v13 = vpop.f32.mrf.mxu0 }
0x2722   : > { %v5033_v9 = vadd.f32 %v5029_v59, %v9717_v41  ;;  %v8139_v41 = vld [vmem:[#allocation14 + $0x10] sm:$0xff]  }
0x2723   : > { %7666 = vmatprep.subr.bf16.mxu0 %v8139_v41 }
0x2724   : > { %v5041_v12 = vsel %vm1212_vm1, %v5033_v9, 0.0  ;;  %7667 = vmatpush3.bf16.msra.mxu0 %v8139_v41 }
0x2725   : > { %5042 = vadd.xlane.f32.xlu0 %v5041_v12  ;;  %7680 = vmatprep.subr.bf16.mxu0 %v8868_v1 }
0x2727   : > { %7669 = vmatmul.mubr.msk.bf16.vlgmr.msra.gmra.mxu0 %vm1212_vm1, %v9482_v40 }
0x2728   : > { %7682 = vmatprep.mubr.msk.bf16.mxu0 %vm8869_vm0, %v8868_v1 }
0x27aa   : > { %v5040_v15 = vpop.xlane.xlu1 %5039 }
0x27ab   : > { %v5044_v16 = vmul.f32 0.03125, %v5040_v15 }
0x27ad   : > { %v5046_v17 = vsub.f32 %v5032_v57, %v5044_v16  ;;  %v6998_v57 = vld [vmem:[#allocation20 + $0x1] ss:$0 sm:$0xff] }
0x27ae   : > { %v5043_v21 = vpop.xlane.xlu0 %5042 }
0x27af   : > { %v5045_v22 = vmul.f32 0.03125, %v5043_v21  ;;  %v5048_v23 = vmul.f32 %v5046_v17, %v5046_v17 }
0x27b1   : > { %v5047_v24 = vsub.f32 %v5033_v9, %v5045_v22  ;;  %v5050_v2 = vsel %vm1212_vm1, %v5048_v23, 0.0 }
0x27b2   : > { %5051 = vadd.xlane.f32.xlu0 %v5050_v2 }
0x27b3   : > { %v5049_v8 = vmul.f32 %v5047_v24, %v5047_v24 }
0x27b5   : > { %v5053_v44 = vsel %vm1212_vm1, %v5049_v8, 0.0 }
0x27b6   : > { %5054 = vadd.xlane.f32.xlu0 %v5053_v44 }
0x27e7   : > { %v7670_v11 = vpop.f32.mrf.mxu0 }
0x27e8   : > { %v5232_v5 = vadd.f32 %v7670_v11, %v6993_v36 }
0x27e9   : > { %v5223_v39 = vpop.f32.mrf.mxu0 }
0x27ea   : > { %v5224_v14 = vadd.f32 %v6993_v36, %v5223_v39 }
0x27eb   : > { %v7671_v32 = vpop.f32.mrf.mxu0 }
0x27ec   : > { %v5235_v42 = vadd.f32 %v7671_v32, %v6993_v36 }
0x27ed   : > { %v5226_v43 = vpop.f32.mrf.mxu0 }
0x27ee   : > { %v9941_v18 = vpack.c.bf16 %v5235_v42, %v5232_v5 }
0x27f0   : > { %v5361_v37 = vsel %vm1381_vm2, %v9941_v18, 0 }
0x283b   : > { %v5052_v30 = vpop.xlane.xlu0 %5051 }
0x283c   : > { %v5056_v51 = vmul.f32 0.03125, %v5052_v30 }
0x283e   : > { %v5058_v61 = vadd.f32 1e-05, %v5056_v51 }
0x283f   : > { %v5055_v31 = vpop.xlane.xlu0 %5054 }
0x2840   : > { %8260 = vrsqrt.f32 %v5058_v61  ;;  %v5057_v19 = vmul.f32 0.03125, %v5055_v31 }
0x2842   : > { %v5059_v33 = vadd.f32 1e-05, %v5057_v19 }
0x2844   : > { %8262 = vrsqrt.f32 %v5059_v33 }
0x284d   : > { %v8261_v54 = vpop.eup %8260 }
0x284e   : > { %v5062_v62 = vmul.f32 %v8261_v54, %v5046_v17 }
0x2850   : > { %v5070_v4 = vmul.f32 %v6987_v38, %v5062_v62 }
0x2851   : > { %v8263_v34 = vpop.eup %8262 }
0x2852   : > { %v5063_v27 = vmul.f32 %v8263_v34, %v5047_v24  ;;  %v9927_v0 = vadd.f32 %v6988_v60, %v5070_v4 }
0x2854   : > { %v5071_v63 = vmul.f32 %v6987_v38, %v5063_v27 }
0x2856   : > { %v9929_v7 = vadd.f32 %v6988_v60, %v5071_v63 }
0x2858   : > { %v5108_v10 = vpack.c.bf16 %v9929_v7, %v9927_v0 }
0x285a   : > { %7661 = vmatmul.mubr.msk.bf16.vlgmr.msra.gmra.mxu1 %vm1212_vm1, %v5108_v10 }
0x285b   : > { %7673 = vmatpush3.bf16.msra.mxu1 %v8142_v28  ;;  %7676 = vmatprep.mubr.msk.bf16.mxu1 %vm1212_vm1, %v9480_v35  ;;  %v5227_v35 = vadd.f32 %v6993_v36, %v5226_v43 }
0x285c   : > { %7674 = vmatprep.subr.bf16.mxu1 %v8143_v6 }
0x285d   : > { %v9943_v25 = vpack.c.bf16 %v5227_v35, %v5224_v14 }
0x285f   : > { %7675 = vmatpush3.bf16.msra.mxu1 %v8143_v6 }
0x2860   : > { %7686 = vmatprep.subr.bf16.mxu1 %v8868_v1 }
0x2862   : > { %7677 = vmatmul.mubr.msk.bf16.vlgmr.msra.gmra.mxu1 %vm1212_vm1, %v9482_v40  ;;  %v5315_v40 = vsel %vm1381_vm2, %v9943_v25, 0 }
0x2863   : > { %7688 = vmatprep.mubr.msk.bf16.mxu1 %vm8869_vm0, %v8868_v1  ;;  %7687 = vmatpush3.bf16.xpose.msra.mxu1 %v5361_v37 }
0x2864   : > { %7698 = vmatprep.subr.bf16.mxu1 %v8868_v1  ;;  %7681 = vmatpush3.bf16.xpose.msra.mxu0 %v5315_v40 }
0x2865   : > { %7692 = vmatprep.subr.bf16.mxu0 %v8868_v1 }
0x291a   : > { %v5164_v20 = vpop.f32.mrf.mxu1 }
0x291b   : > { %v5165_v48 = vadd.f32 %v6989_v29, %v5164_v20 }
0x291c   : > { %v7662_v50 = vpop.f32.mrf.mxu1 }
0x291d   : > { %v9951_v52 = vpack.c.bf16 %v5165_v48, %v5165_v48 }
0x291e   : > { %v5167_v53 = vpop.f32.mrf.mxu1 }
0x291f   : > { %v5168_v49 = vadd.f32 %v6989_v29, %v5167_v53  ;;  %7683 = vmatmul.mubr.msk.bf16.vlgmr.msra.gmra.mxu0 %vm1381_vm2, %v9951_v52 }
0x2920   : > { %v7663_v55 = vpop.f32.mrf.mxu1  ;;  %7694 = vmatprep.mubr.msk.bf16.mxu0 %vm8869_vm0, %v8868_v1 }
0x2921   : > { %v9957_v56 = vpack.c.bf16 %v5168_v49, %v5168_v49 }
0x2922   : > { %v7678_v47 = vpop.f32.mrf.mxu1 }
0x2923   : > { %7689 = vmatmul.mubr.msk.bf16.vlgmr.msra.gmra.mxu1 %vm1381_vm2, %v9957_v56  ;;  %v5299_v59 = vadd.f32 %v7678_v47, %v6998_v57 }
0x2924   : > { %v5290_v58 = vpop.f32.mrf.mxu1  ;;  %7700 = vmatprep.mubr.msk.bf16.mxu1 %vm8869_vm0, %v8868_v1 }
0x2925   : > { %v5291_v13 = vadd.f32 %v6998_v57, %v5290_v58 }
0x2926   : > { %v7679_v3 = vpop.f32.mrf.mxu1 }
0x2927   : > { %v5302_v9 = vadd.f32 %v7679_v3, %v6998_v57 }
0x2928   : > { %v5293_v12 = vpop.f32.mrf.mxu1 }
0x2929   : > { %v9963_v15 = vpack.c.bf16 %v5302_v9, %v5299_v59  ;;  %v5294_v16 = vadd.f32 %v6998_v57, %v5293_v12 }
0x292b   : > { %v9965_v17 = vpack.c.bf16 %v5294_v16, %v5291_v13  ;;  %7699 = vmatpush3.bf16.msra.mxu1 %v9963_v15 }
0x292c   : > { %7710 = vmatprep.subr.bf16.mxu1 %v8868_v1 }
0x292d   : > { %7693 = vmatpush3.bf16.msra.mxu0 %v9965_v17 }
0x292e   : > { %7704 = vmatprep.subr.bf16.mxu0 %v8868_v1 }
0x29df   : > { %v5351_v21 = vpop.f32.mrf.mxu0 }
0x29e0   : > { %v5403_v22 = vmul.f32 0.35355338, %v5351_v21 }
0x29e1   : > { %v7684_v23 = vpop.f32.mrf.mxu0 }
0x29e2   : > { %v5405_v24 = vsel %vm2291_vm4, %v5403_v22, -inf }
0x29e3   : > { %5406 = vmax.xlane.f32.xlu1 %v5405_v24  ;;  %v5354_v2 = vpop.f32.mrf.mxu0  ;;  %v5397_v8 = vpop.f32.mrf.mxu1 }
0x29e4   : > { %v5404_v44 = vmul.f32 0.35355338, %v5397_v8 }
0x29e5   : > { %v7685_v45 = vpop.f32.mrf.mxu0  ;;  %v7690_v41 = vpop.f32.mrf.mxu1 }
0x29e6   : > { %v5408_v46 = vsel %vm2291_vm4, %v5404_v44, -inf }
0x29e7   : > { %5409 = vmax.xlane.f32.xlu0 %v5408_v46  ;;  %v5400_v26 = vpop.f32.mrf.mxu1 }
0x29e9   : > { %v7691_v28 = vpop.f32.mrf.mxu1 }
0x29f4   : > { %5519 = vrot.lane.b32.xlu1 %v9943_v25, %s10290_s18 }
0x2a6c   : > { %v5407_v30 = vpop.xlane.xlu1 %5406 }
0x2a6d   : > { %v5411_v51 = vsub.f32 %v5403_v22, %v5407_v30 }
0x2a6f   : > { %v5413_v61 = vmul.f32 1.442695, %v5411_v51 }
0x2a70   : > { %v5410_v31 = vpop.xlane.xlu0 %5409  ;;  %v5520_v4 = vpop.permute.xlu1 %5519 }
0x2a71   : > { %8264 = vpow2.f32 %v5413_v61  ;;  %v5412_v19 = vsub.f32 %v5404_v44, %v5410_v31  ;;  %v5525_v36 = vsel %vm1381_vm2, %v5520_v4, 0 }
0x2a73   : > { %v5415_v33 = vmul.f32 1.442695, %v5412_v19 }
0x2a75   : > { %8266 = vpow2.f32 %v5415_v33 }
0x2a7e   : > { %v8265_v54 = vpop.eup %8264 }
0x2a7f   : > { %v5417_v62 = vsel %vm2291_vm4, %v8265_v54, 0.0 }
0x2a80   : > { %5418 = vadd.xlane.f32.xlu1 %v5417_v62 }
0x2a82   : > { %v8267_v38 = vpop.eup %8266 }
0x2a83   : > { %v5420_v34 = vsel %vm2291_vm4, %v8267_v38, 0.0 }
0x2a84   : > { %5421 = vadd.xlane.f32.xlu0 %v5420_v34 }
0x2a91   : > { %5516 = vrot.lane.b32.xlu1 %v9951_v52, %s10290_s18 }
0x2a95   : > { %5568 = vrot.lane.b32.xlu1 %v9957_v56, %s10290_s18 }
0x2a9a   : > { %5571 = vrot.lane.b32.xlu0 %v9941_v18, %s10290_s18 }
0x2b09   : > { %v5419_v27 = vpop.xlane.xlu1 %5418 }
0x2b0a   : > { %8268 = vrcp.f32 %v5419_v27 }
0x2b0d   : > { %v5422_v60 = vpop.xlane.xlu0 %5421  ;;  %v5517_v42 = vpop.permute.xlu1 %5516 }
0x2b0e   : > { %8270 = vrcp.f32 %v5422_v60 }
0x2b11   : > { %v5572_v5 = vpop.permute.xlu0 %5571  ;;  %v5569_v43 = vpop.permute.xlu1 %5568 }
0x2b12   : > { %v5577_v14 = vsel %vm1381_vm2, %v5572_v5, 0 }
0x2b17   : > { %v8269_v63 = vpop.eup %8268 }
0x2b18   : > { %v5425_v10 = vmul.f32 %v8269_v63, %v8265_v54 }
0x2b1a   : > { %v5427_v6 = vpack.c.bf16 %v5425_v10, %v5425_v10 }
0x2b1b   : > { %v8271_v11 = vpop.eup %8270 }
0x2b1c   : > { %v5426_v39 = vmul.f32 %v8271_v11, %v8267_v38  ;;  %7695 = vmatmul.mubr.msk.bf16.vlgmr.msra.gmra.mxu0 %vm2291_vm4, %v5427_v6 }
0x2b1d   : > { %7705 = vmatpush3.bf16.xpose.msra.mxu0 %v5525_v36  ;;  %7706 = vmatprep.mubr.msk.bf16.mxu0 %vm8869_vm0, %v8868_v1 }
0x2b1e   : > { %v5428_v32 = vpack.c.bf16 %v5426_v39, %v5426_v39  ;;  %7716 = vmatprep.subr.bf16.mxu0 %v8868_v1 }
0x2b20   : > { %7701 = vmatmul.mubr.msk.bf16.vlgmr.msra.gmra.mxu1 %vm2291_vm4, %v5428_v32 }
0x2b21   : > { %7711 = vmatpush3.bf16.xpose.msra.mxu1 %v5577_v14  ;;  %7712 = vmatprep.mubr.msk.bf16.mxu1 %vm8869_vm0, %v8868_v1 }
0x2b22   : > { %7722 = vmatprep.subr.bf16.mxu1 %v8868_v1 }
0x2b24   : > { %7707 = vmatmul.mubr.msk.bf16.vlgmr.msra.gmra.mxu0 %vm1381_vm2, %v5517_v42 }
0x2b25   : > { %7718 = vmatprep.mubr.msk.bf16.mxu0 %vm8869_vm0, %v8868_v1 }
0x2b28   : > { %7713 = vmatmul.mubr.msk.bf16.vlgmr.msra.gmra.mxu1 %vm1381_vm2, %v5569_v43 }
0x2b29   : > { %7724 = vmatprep.mubr.msk.bf16.mxu1 %vm8869_vm0, %v8868_v1 }
0x2bdc   : > { %v9999_v35 = vpop.f32.mrf.mxu0 }
0x2bde   : > { %v7696_v37 = vpop.f32.mrf.mxu0 }
0x2be0   : > { %v5469_v40 = vpop.f32.mrf.mxu0  ;;  %v10001_v29 = vpop.f32.mrf.mxu1 }
0x2be2   : > { %v7697_v20 = vpop.f32.mrf.mxu0  ;;  %v7702_v48 = vpop.f32.mrf.mxu1 }
0x2be4   : > { %v5512_v50 = vpop.f32.mrf.mxu1  ;;  %v5561_v53 = vpop.f32.mrf.mxu0 }
0x2be5   : > { %v5619_v49 = vmul.f32 0.35355338, %v5561_v53 }
0x2be6   : > { %v7703_v55 = vpop.f32.mrf.mxu1  ;;  %v7708_v47 = vpop.f32.mrf.mxu0 }
0x2be7   : > { %v5621_v57 = vsel %vm2291_vm4, %v5619_v49, -inf }
0x2be8   : > { %v5613_v58 = vpop.f32.mrf.mxu1  ;;  %5622 = vmax.xlane.f32.xlu1 %v5621_v57  ;;  %v5564_v59 = vpop.f32.mrf.mxu0 }
0x2be9   : > { %v5620_v3 = vmul.f32 0.35355338, %v5613_v58 }
0x2bea   : > { %v7709_v13 = vpop.f32.mrf.mxu0  ;;  %v7714_v9 = vpop.f32.mrf.mxu1 }
0x2beb   : > { %v5624_v12 = vsel %vm2291_vm4, %v5620_v3, -inf }
0x2bec   : > { %5625 = vmax.xlane.f32.xlu0 %v5624_v12  ;;  %v5616_v16 = vpop.f32.mrf.mxu1 }
0x2bee   : > { %v7715_v21 = vpop.f32.mrf.mxu1 }
0x2bf9   : > { %5646 = vrot.lane.b32.xlu1 %v9965_v17, %s10290_s18 }
0x2bfd   : > { %5741 = vrot.lane.b32.xlu1 %v9943_v25, %s10291_s5 }
0x2c01   : > { %5791 = vrot.lane.b32.xlu1 %v9941_v18, %s10291_s5 }
0x2c05   : > { %5739 = vrot.lane.b32.xlu1 %v9951_v52, %s10291_s5 }
0x2c71   : > { %v5623_v22 = vpop.xlane.xlu1 %5622 }
0x2c72   : > { %v5627_v23 = vsub.f32 %v5619_v49, %v5623_v22 }
0x2c74   : > { %v5629_v24 = vmul.f32 1.442695, %v5627_v23 }
0x2c75   : > { %v5626_v2 = vpop.xlane.xlu0 %5625  ;;  %v5647_v8 = vpop.permute.xlu1 %5646 }
0x2c76   : > { %8272 = vpow2.f32 %v5629_v24  ;;  %v5628_v44 = vsub.f32 %v5620_v3, %v5626_v2  ;;  %7717 = vmatpush3.bf16.msra.mxu0 %v5647_v8 }
0x2c77   : > { %7728 = vmatprep.subr.bf16.mxu0 %v8868_v1 }
0x2c78   : > { %v5631_v45 = vmul.f32 1.442695, %v5628_v44 }
0x2c79   : > { %v5742_v19 = vpop.permute.xlu1 %5741 }
0x2c7a   : > { %8274 = vpow2.f32 %v5631_v45  ;;  %v5747_v38 = vsel %vm1381_vm2, %v5742_v19, 0 }
0x2c7d   : > { %v5792_v4 = vpop.permute.xlu1 %5791 }
0x2c7e   : > { %v5797_v60 = vsel %vm1381_vm2, %v5792_v4, 0 }
0x2c81   : > { %v5740_v63 = vpop.permute.xlu1 %5739 }
0x2c83   : > { %v8273_v41 = vpop.eup %8272 }
0x2c84   : > { %v5633_v46 = vsel %vm2291_vm4, %v8273_v41, 0.0 }
0x2c85   : > { %5634 = vadd.xlane.f32.xlu0 %v5633_v46 }
0x2c87   : > { %v8275_v26 = vpop.eup %8274 }
0x2c88   : > { %v5636_v28 = vsel %vm2291_vm4, %v8275_v26, 0.0 }
0x2c89   : > { %5637 = vadd.xlane.f32.xlu0 %v5636_v28 }
0x2c9f   : > { %5693 = vrot.lane.b32.xlu0 %v9963_v15, %s10290_s18 }
0x2ca3   : > { %5789 = vrot.lane.b32.xlu0 %v9957_v56, %s10291_s5 }
0x2d0e   : > { %v5635_v30 = vpop.xlane.xlu0 %5634 }
0x2d0f   : > { %8276 = vrcp.f32 %v5635_v30 }
0x2d12   : > { %v5638_v51 = vpop.xlane.xlu0 %5637 }
0x2d13   : > { %8278 = vrcp.f32 %v5638_v51 }
0x2d16   : > { %v5694_v61 = vpop.permute.xlu0 %5693 }
0x2d17   : > { %7723 = vmatpush3.bf16.msra.mxu1 %v5694_v61 }
0x2d18   : > { %7734 = vmatprep.subr.bf16.mxu1 %v8868_v1 }
0x2d1a   : > { %v5790_v10 = vpop.permute.xlu0 %5789 }
0x2d1c   : > { %v8277_v31 = vpop.eup %8276 }
0x2d1d   : > { %v5641_v33 = vmul.f32 %v8277_v31, %v8273_v41 }
0x2d1f   : > { %v5643_v54 = vpack.c.bf16 %v5641_v33, %v5641_v33 }
0x2d20   : > { %v8279_v62 = vpop.eup %8278 }
0x2d21   : > { %v5642_v34 = vmul.f32 %v8279_v62, %v8275_v26  ;;  %7719 = vmatmul.mubr.msk.bf16.vlgmr.msra.gmra.mxu0 %vm2291_vm4, %v5643_v54 }
0x2d22   : > { %7729 = vmatpush3.bf16.xpose.msra.mxu0 %v5747_v38  ;;  %7730 = vmatprep.mubr.msk.bf16.mxu0 %vm8869_vm0, %v8868_v1 }
0x2d23   : > { %v5644_v27 = vpack.c.bf16 %v5642_v34, %v5642_v34  ;;  %7740 = vmatprep.subr.bf16.mxu0 %v8868_v1 }
0x2d25   : > { %7725 = vmatmul.mubr.msk.bf16.vlgmr.msra.gmra.mxu1 %vm2291_vm4, %v5644_v27 }
0x2d26   : > { %7735 = vmatpush3.bf16.xpose.msra.mxu1 %v5797_v60  ;;  %7736 = vmatprep.mubr.msk.bf16.mxu1 %vm8869_vm0, %v8868_v1 }
0x2d27   : > { %7746 = vmatprep.subr.bf16.mxu1 %v8868_v1 }
0x2d29   : > { %7731 = vmatmul.mubr.msk.bf16.vlgmr.msra.gmra.mxu0 %vm1381_vm2, %v5740_v63 }
0x2d2a   : > { %7742 = vmatprep.mubr.msk.bf16.mxu0 %vm8869_vm0, %v8868_v1 }
0x2d2d   : > { %7737 = vmatmul.mubr.msk.bf16.vlgmr.msra.gmra.mxu1 %vm1381_vm2, %v5790_v10 }
0x2d2e   : > { %7748 = vmatprep.mubr.msk.bf16.mxu1 %vm8869_vm0, %v8868_v1 }
0x2de1   : > { %v10037_v6 = vpop.f32.mrf.mxu0 }
0x2de3   : > { %v7720_v11 = vpop.f32.mrf.mxu0 }
0x2de5   : > { %v5689_v36 = vpop.f32.mrf.mxu0  ;;  %v10039_v39 = vpop.f32.mrf.mxu1 }
0x2de6   : > { %v8092_v5 = vpack.i.bf16 %v10039_v39, %v10037_v6 }
0x2de7   : > { %v7721_v32 = vpop.f32.mrf.mxu0  ;;  %v7726_v14 = vpop.f32.mrf.mxu1 }
0x2de9   : > { %v5736_v42 = vpop.f32.mrf.mxu1  ;;  %v5783_v43 = vpop.f32.mrf.mxu0 }
0x2dea   : > { %v5839_v37 = vmul.f32 0.35355338, %v5783_v43 }
0x2deb   : > { %v7727_v40 = vpop.f32.mrf.mxu1  ;;  %v7732_v20 = vpop.f32.mrf.mxu0 }
0x2dec   : > { %v5841_v48 = vsel %vm2291_vm4, %v5839_v37, -inf }
0x2ded   : > { %v5833_v50 = vpop.f32.mrf.mxu1  ;;  %5842 = vmax.xlane.f32.xlu1 %v5841_v48  ;;  %v5786_v53 = vpop.f32.mrf.mxu0 }
0x2dee   : > { %v5840_v49 = vmul.f32 0.35355338, %v5833_v50 }
0x2def   : > { %v7733_v55 = vpop.f32.mrf.mxu0  ;;  %v7738_v47 = vpop.f32.mrf.mxu1 }
0x2df0   : > { %v5844_v57 = vsel %vm2291_vm4, %v5840_v49, -inf }
0x2df1   : > { %5845 = vmax.xlane.f32.xlu0 %v5844_v57  ;;  %v5836_v58 = vpop.f32.mrf.mxu1 }
0x2df3   : > { %v7739_v59 = vpop.f32.mrf.mxu1 }
0x2dfe   : > { %5865 = vrot.lane.b32.xlu1 %v9965_v17, %s10291_s5 }
0x2e02   : > { %5959 = vrot.lane.b32.xlu1 %v9943_v25, %s10292_s6 }
0x2e06   : > { %6009 = vrot.lane.b32.xlu1 %v9941_v18, %s10292_s6 }
0x2e0a   : > { %5957 = vrot.lane.b32.xlu1 %v9951_v52, %s10292_s6 }
0x2e76   : > { %v5843_v3 = vpop.xlane.xlu1 %5842 }
0x2e77   : > { %v5847_v13 = vsub.f32 %v5839_v37, %v5843_v3 }
0x2e79   : > { %v5849_v9 = vmul.f32 1.442695, %v5847_v13 }
0x2e7a   : > { %v5846_v12 = vpop.xlane.xlu0 %5845  ;;  %v5866_v16 = vpop.permute.xlu1 %5865 }
0x2e7b   : > { %8280 = vpow2.f32 %v5849_v9  ;;  %v5848_v21 = vsub.f32 %v5840_v49, %v5846_v12  ;;  %7741 = vmatpush3.bf16.msra.mxu0 %v5866_v16 }
0x2e7c   : > { %7752 = vmatprep.subr.bf16.mxu0 %v8868_v1 }
0x2e7d   : > { %v5851_v22 = vmul.f32 1.442695, %v5848_v21 }
0x2e7e   : > { %v5960_v45 = vpop.permute.xlu1 %5959 }
0x2e7f   : > { %8282 = vpow2.f32 %v5851_v22  ;;  %v5965_v28 = vsel %vm1381_vm2, %v5960_v45, 0 }
0x2e82   : > { %v6010_v51 = vpop.permute.xlu1 %6009 }
0x2e83   : > { %v6015_v61 = vsel %vm1381_vm2, %v6010_v51, 0 }
0x2e86   : > { %v5958_v31 = vpop.permute.xlu1 %5957 }
0x2e88   : > { %v8281_v23 = vpop.eup %8280 }
0x2e89   : > { %v5853_v25 = vsel %vm2291_vm4, %v8281_v23, 0.0 }
0x2e8a   : > { %5854 = vadd.xlane.f32.xlu0 %v5853_v25 }
0x2e8c   : > { %v8283_v18 = vpop.eup %8282 }
0x2e8d   : > { %v5856_v24 = vsel %vm2291_vm4, %v8283_v18, 0.0 }
0x2e8e   : > { %5857 = vadd.xlane.f32.xlu0 %v5856_v24 }
0x2ea4   : > { %5911 = vrot.lane.b32.xlu0 %v9963_v15, %s10291_s5  ;;  %s1157_s5 = sand.u32 1, %s8808_s16  }
0x2ea8   : > { %6007 = vrot.lane.b32.xlu0 %v9957_v56, %s10292_s6 }
0x2f13   : > { %v5855_v52 = vpop.xlane.xlu0 %5854 }
0x2f14   : > { %8284 = vrcp.f32 %v5855_v52 }
0x2f17   : > { %v5858_v2 = vpop.xlane.xlu0 %5857 }
0x2f18   : > { %8286 = vrcp.f32 %v5858_v2 }
0x2f1b   : > { %v5912_v8 = vpop.permute.xlu0 %5911 }
0x2f1c   : > { %7747 = vmatpush3.bf16.msra.mxu1 %v5912_v8 }
0x2f1d   : > { %7758 = vmatprep.subr.bf16.mxu1 %v8868_v1 }
0x2f1f   : > { %v6008_v19 = vpop.permute.xlu0 %6007 }
0x2f21   : > { %v8285_v44 = vpop.eup %8284 }
0x2f22   : > { %v5861_v41 = vmul.f32 %v8285_v44, %v8281_v23 }
0x2f24   : > { %v5863_v46 = vpack.c.bf16 %v5861_v41, %v5861_v41 }
0x2f25   : > { %v8287_v26 = vpop.eup %8286 }
0x2f26   : > { %v5862_v30 = vmul.f32 %v8287_v26, %v8283_v18  ;;  %7743 = vmatmul.mubr.msk.bf16.vlgmr.msra.gmra.mxu0 %vm2291_vm4, %v5863_v46  ;;  %v8145_v18 = vld [vmem:[#allocation21 + $0x10] sm:$0xff]  }
0x2f27   : > { %7753 = vmatpush3.bf16.xpose.msra.mxu0 %v5965_v28  ;;  %7754 = vmatprep.mubr.msk.bf16.mxu0 %vm8869_vm0, %v8868_v1 }
0x2f28   : > { %v5864_v56 = vpack.c.bf16 %v5862_v30, %v5862_v30  ;;  %7764 = vmatprep.subr.bf16.mxu0 %v8868_v1 }
0x2f2a   : > { %7749 = vmatmul.mubr.msk.bf16.vlgmr.msra.gmra.mxu1 %vm2291_vm4, %v5864_v56 }
0x2f2b   : > { %7759 = vmatpush3.bf16.xpose.msra.mxu1 %v6015_v61  ;;  %7760 = vmatprep.mubr.msk.bf16.mxu1 %vm8869_vm0, %v8868_v1 }
0x2f2c   : > { %7770 = vmatprep.subr.bf16.mxu1 %v8868_v1 }
0x2f2e   : > { %7755 = vmatmul.mubr.msk.bf16.vlgmr.msra.gmra.mxu0 %vm1381_vm2, %v5958_v31 }
0x2f2f   : > { %7766 = vmatprep.mubr.msk.bf16.mxu0 %vm8869_vm0, %v8868_v1 }
0x2f32   : > { %7761 = vmatmul.mubr.msk.bf16.vlgmr.msra.gmra.mxu1 %vm1381_vm2, %v6008_v19 }
0x2f33   : > { %7772 = vmatprep.mubr.msk.bf16.mxu1 %vm8869_vm0, %v8868_v1 }
0x2fe6   : > { %v5905_v33 = vpop.f32.mrf.mxu0 }
0x2fe8   : > { %v7744_v54 = vpop.f32.mrf.mxu0 }
0x2fea   : > { %v5908_v62 = vpop.f32.mrf.mxu0  ;;  %v5951_v38 = vpop.f32.mrf.mxu1 }
0x2feb   : > { %v8097_v50 = vpack.i.bf16 %v5951_v38, %v5905_v33 }
0x2fec   : > { %v7745_v34 = vpop.f32.mrf.mxu0  ;;  %v7750_v4 = vpop.f32.mrf.mxu1 }
0x2fee   : > { %v5954_v27 = vpop.f32.mrf.mxu1  ;;  %v6001_v60 = vpop.f32.mrf.mxu0 }
0x2fef   : > { %v6057_v63 = vmul.f32 0.35355338, %v6001_v60 }
0x2ff0   : > { %v7751_v10 = vpop.f32.mrf.mxu1  ;;  %v7756_v11 = vpop.f32.mrf.mxu0 }
0x2ff1   : > { %v6059_v36 = vsel %vm2291_vm4, %v6057_v63, -inf }
0x2ff2   : > { %v6051_v32 = vpop.f32.mrf.mxu1  ;;  %6060 = vmax.xlane.f32.xlu1 %v6059_v36  ;;  %v6004_v14 = vpop.f32.mrf.mxu0 }
0x2ff3   : > { %v6058_v42 = vmul.f32 0.35355338, %v6051_v32 }
0x2ff4   : > { %v7757_v43 = vpop.f32.mrf.mxu0  ;;  %v7762_v37 = vpop.f32.mrf.mxu1 }
0x2ff5   : > { %v6062_v40 = vsel %vm2291_vm4, %v6058_v42, -inf }
0x2ff6   : > { %6063 = vmax.xlane.f32.xlu0 %v6062_v40  ;;  %v6054_v20 = vpop.f32.mrf.mxu1 }
0x2ff8   : > { %v7763_v48 = vpop.f32.mrf.mxu1 }
0x3003   : > { %6083 = vrot.lane.b32.xlu1 %v9965_v17, %s10292_s6 }
0x3007   : > { %8093 = vrot.lane.b32.xlu1 %v8092_v5, %s10293_s7  ;;  %s7052_s7 = sshll.u32 %s9057_s29, 5 }
0x3008   : > { %s10142_s18 = scalar_lea.hbm %s9034_s13, %s7052_s7 }
0x300b   : > { %8098 = vrot.lane.b32.xlu1 %v8097_v50, %s10282_s17 }
0x307b   : > { %v6061_v53 = vpop.xlane.xlu1 %6060 }
0x307c   : > { %v6065_v49 = vsub.f32 %v6057_v63, %v6061_v53 }
0x307e   : > { %v6067_v55 = vmul.f32 1.442695, %v6065_v49 }
0x307f   : > { %v6064_v47 = vpop.xlane.xlu0 %6063  ;;  %v6084_v57 = vpop.permute.xlu1 %6083 }
0x3080   : > { %8288 = vpow2.f32 %v6067_v55  ;;  %v6066_v58 = vsub.f32 %v6058_v42, %v6064_v47  ;;  %7765 = vmatpush3.bf16.msra.mxu0 %v6084_v57 }
0x3081   : > { %7776 = vmatprep.subr.bf16.mxu0 %v8868_v1 }
0x3082   : > { %v6069_v59 = vmul.f32 1.442695, %v6066_v58 }
0x3083   : > { %v8094_v28 = vpop.permute.xlu1 %8093 }
0x3084   : > { %8290 = vpow2.f32 %v6069_v59  ;;  %v8096_v51 = vunpack.i.h.bf16 %v8094_v28  ;;  %v8095_v56 = vunpack.i.l.bf16 %v8094_v28  ;;  %v8146_v59 = vld [vmem:[#allocation24 + $0x18] sm:$0xff]  }
0x3086   : > { %v6200_v33 = vsel %vm1381_vm2, %v10001_v29, %v8096_v51  ;;  %v6199_v54 = vsel %vm1381_vm2, %v9999_v35, %v8095_v56  ;;  %v7019_v29 = vld [vmem:[#allocation23 + $0x1] ss:$0 sm:$0xff] }
0x3087   : > { %v8099_v30 = vpop.permute.xlu1 %8098 }
0x3088   : > { %v8101_v61 = vunpack.i.h.bf16 %v8099_v30  ;;  %v8100_v31 = vunpack.i.l.bf16 %v8099_v30 }
0x308a   : > { %v6201_v34 = vsel %vm2291_vm4, %v6199_v54, %v8100_v31  ;;  %v6202_v4 = vsel %vm2291_vm4, %v6200_v33, %v8101_v61  ;;  %v7039_v33 = vld [vmem:[%s10287_s1 + $0x1] ss:$0 sm:$0xff]  ;;  %s6567_s1 = scalar_lea.sflag [#allocation5], %s1157_s5 }
0x308d   : > { %v8289_v17 = vpop.eup %8288 }
0x308e   : > { %v6071_v3 = vsel %vm2291_vm4, %v8289_v17, 0.0 }
0x308f   : > { %6072 = vadd.xlane.f32.xlu0 %v6071_v3 }
0x3091   : > { %v8291_v6 = vpop.eup %8290 }
0x3092   : > { %v6074_v39 = vsel %vm2291_vm4, %v8291_v6, 0.0 }
0x3093   : > { %6075 = vadd.xlane.f32.xlu0 %v6074_v39 }
0x30a9   : > { %6129 = vrot.lane.b32.xlu0 %v9963_v15, %s10292_s6  ;;  %v8144_v15 = vld [vmem:[#allocation21 + $0x18] sm:$0xff]   ;;  %s6860_s6 = sshll.u32 %s1157_s5, 1 }
0x30aa   : > { %s1159_s17 = scalar_lea.vmem [#allocation29], %s6860_s6 }
0x3118   : > { %v6073_v5 = vpop.xlane.xlu0 %6072 }
0x3119   : > { %8292 = vrcp.f32 %v6073_v5 }
0x311c   : > { %v6076_v13 = vpop.xlane.xlu0 %6075 }
0x311d   : > { %8294 = vrcp.f32 %v6076_v13 }
0x3120   : > { %v6130_v9 = vpop.permute.xlu0 %6129 }
0x3121   : > { %7771 = vmatpush3.bf16.msra.mxu1 %v6130_v9 }
0x3122   : > { %7784 = vmatprep.subr.bf16.mxu1 %v8868_v1 }
0x3126   : > { %v8293_v12 = vpop.eup %8292 }
0x3127   : > { %v6079_v16 = vmul.f32 %v8293_v12, %v8289_v17  ;;  %v8148_v17 = vld [vmem:[%s10284_s22 + $0x38] sm:$0xff]  }
0x3129   : > { %v6081_v21 = vpack.c.bf16 %v6079_v16, %v6079_v16 }
0x312a   : > { %v8295_v22 = vpop.eup %8294 }
0x312b   : > { %v6080_v23 = vmul.f32 %v8295_v22, %v8291_v6  ;;  %7767 = vmatmul.mubr.msk.bf16.vlgmr.msra.gmra.mxu0 %vm2291_vm4, %v6081_v21  ;;  %v7024_v21 = vld [vmem:[#allocation27 + $0x1] ss:$0 sm:$0xff] }
0x312c   : > { %7780 = vmatprep.mubr.msk.bf16.mxu0 %vm8869_vm0, %v8868_v1  ;;  %7777 = vmatpush3.bf16.msra.mxu0 %v8144_v15  ;;  %v7025_v15 = vld [vmem:[%s10285_s23 + $0x1] ss:$0 sm:$0xff] }
0x312d   : > { %v6082_v25 = vpack.c.bf16 %v6080_v23, %v6080_v23  ;;  %7778 = vmatprep.subr.bf16.mxu0 %v8868_v1 }
0x312f   : > { %7773 = vmatmul.mubr.msk.bf16.vlgmr.msra.gmra.mxu1 %vm2291_vm4, %v6082_v25 }
0x3130   : > { %7788 = vmatprep.mubr.msk.bf16.mxu1 %vm8869_vm0, %v8868_v1  ;;  %7779 = vmatpush3.bf16.msra.mxu0 %v8145_v18 }
0x3131   : > { %7792 = vmatprep.subr.bf16.mxu0 %v8868_v1  ;;  %7785 = vmatpush3.bf16.msra.mxu1 %v8146_v59  ;;  %v7048_v59 = vld [vmem:[%s10234_s3 + $0x1] ss:$0 sm:$0xff] }
0x3132   : > { %7786 = vmatprep.subr.bf16.mxu1 %v8868_v1 }
0x31eb   : > { %v6123_v24 = vpop.f32.mrf.mxu0 }
0x31ed   : > { %v7768_v52 = vpop.f32.mrf.mxu0 }
0x31ef   : > { %v6126_v2 = vpop.f32.mrf.mxu0  ;;  %v6169_v8 = vpop.f32.mrf.mxu1 }
0x31f0   : > { %v8102_v44 = vpack.i.bf16 %v6169_v8, %v6123_v24  ;;  %v8149_v8 = vld [vmem:[%s10284_s22 + $0x30] sm:$0xff]  }
0x31f1   : > { %v7769_v45 = vpop.f32.mrf.mxu0  ;;  %v7774_v41 = vpop.f32.mrf.mxu1 }
0x31f2   : > { %8103 = vrot.lane.b32.xlu1 %v8102_v44, %s10283_s15  ;;  %v8150_v44 = vld [vmem:[%s10284_s22 + $0x28] sm:$0xff]   ;;  %v8151_v45 = vld [vmem:[%s10284_s22 + $0x20] sm:$0xff]   ;;  %v7026_v41 = vld [vmem:[#allocation26 + $0x1] ss:$0 sm:$0xff]  ;;  %s6580_s15 = sshll.u32 %s1159_s17, 4  ;;  %s6581_s15 = int_to_ptr.vmem [resolvable:$true] %s6580_s15 }
0x31f3   : > { %v6172_v46 = vpop.f32.mrf.mxu1  ;;  %s8720_s3 = scalar_lea.vmem %s6581_s15, 32 }
0x31f4   : > { %p8721_p12 = scmp.ne.s32.totalorder %s6581_s15, %s8720_s3 }
0x31f5   : > { %v7775_v26 = vpop.f32.mrf.mxu1 }
0x31f6   : > { %p8722_p2 = pnand %p8721_p12, %p10294_p3 }
0x31f8   : > { %p8723_p4 = pneg %p8722_p2 }
0x3264   : > { %v8104_v19 = vpop.permute.xlu1 %8103 }
0x3265   : > { %v8106_v62 = vunpack.i.h.bf16 %v8104_v19  ;;  %v8105_v38 = vunpack.i.l.bf16 %v8104_v19 }
0x3267   : > { %v6204_v27 = vsel %vm2294_vm5, %v6202_v4, %v8106_v62  ;;  %v6203_v60 = vsel %vm2294_vm5, %v6201_v34, %v8105_v38 }
0x3268   : > { %v6205_v63 = vpack.c.bf16 %v6204_v27, %v6203_v60 }
0x326a   : > { %7781 = vmatmul.mubr.msk.bf16.vlgmr.msra.gmra.mxu0 %vm1212_vm1, %v6205_v63 }
0x326b   : > { %7800 = vmatprep.mubr.msk.bf16.mxu0 %vm8869_vm0, %v8868_v1  ;;  %7793 = vmatpush3.bf16.msra.mxu0 %v8148_v17 }
0x326c   : > { %7794 = vmatprep.subr.bf16.mxu0 %v8868_v1 }
0x326f   : > { %7795 = vmatpush3.bf16.msra.mxu0 %v8149_v8 }
0x3270   : > { %7796 = vmatprep.subr.bf16.mxu0 %v8868_v1 }
0x3273   : > { %7797 = vmatpush3.bf16.msra.mxu0 %v8150_v44 }
0x3274   : > { %7798 = vmatprep.subr.bf16.mxu0 %v8868_v1 }
0x3277   : > { %7799 = vmatpush3.bf16.msra.mxu0 %v8151_v45 }
0x332a   : > { %v6261_v10 = vpop.f32.mrf.mxu0 }
0x332b   : > { %v6262_v11 = vadd.f32 %v7019_v29, %v6261_v10 }
0x332c   : > { %v7782_v35 = vpop.f32.mrf.mxu0 }
0x332d   : > { %v6268_v36 = vadd.f32 %v6262_v11, %v9927_v0 }
0x332e   : > { %v6264_v32 = vpop.f32.mrf.mxu0 }
0x332f   : > { %v6265_v14 = vadd.f32 %v7019_v29, %v6264_v32  ;;  %v6274_v42 = vsel %vm1212_vm1, %v6268_v36, 0.0 }
0x3330   : > { %6275 = vadd.xlane.f32.xlu0 %v6274_v42  ;;  %v7783_v43 = vpop.f32.mrf.mxu0 }
0x3331   : > { %v6269_v37 = vadd.f32 %v6265_v14, %v9929_v7  ;;  %v8147_v7 = vld [vmem:[#allocation24 + $0x10] sm:$0xff]  }
0x3332   : > { %7787 = vmatpush3.bf16.msra.mxu1 %v8147_v7 }
0x3333   : > { %v6277_v40 = vsel %vm1212_vm1, %v6269_v37, 0.0 }
0x3334   : > { %6278 = vadd.xlane.f32.xlu1 %v6277_v40 }
0x33b9   : > { %v6276_v20 = vpop.xlane.xlu0 %6275 }
0x33ba   : > { %v6280_v48 = vmul.f32 0.03125, %v6276_v20  ;;  %v8876_v20 = vmov 0  }
0x33bb   : > { %8107 = vset.pattern.permute.xlu0 %v8876_v20 }
0x33bc   : > { %v6282_v50 = vsub.f32 %v6268_v36, %v6280_v48 }
0x33bd   : > { %v6279_v53 = vpop.xlane.xlu1 %6278 }
0x33be   : > { %v6281_v49 = vmul.f32 0.03125, %v6279_v53  ;;  %v6284_v55 = vmul.f32 %v6282_v50, %v6282_v50 }
0x33c0   : > { %v6283_v47 = vsub.f32 %v6269_v37, %v6281_v49  ;;  %v6286_v0 = vsel %vm1212_vm1, %v6284_v55, 0.0 }
0x33c1   : > { %6287 = vadd.xlane.f32.xlu0 %v6286_v0 }
0x33c2   : > { %v6285_v57 = vmul.f32 %v6283_v47, %v6283_v47 }
0x33c4   : > { %v6289_v58 = vsel %vm1212_vm1, %v6285_v57, 0.0  ;;  %v7047_v57 = vld [vmem:[%s10289_s4 + $0x1] ss:$0 sm:$0xff]  ;;  %s8877_s4 = smov [#allocation29]  }
0x33c5   : > { %6290 = vadd.xlane.f32.xlu0 %v6289_v58  ;;  %s8724_s8 = sshll.u32 %s8877_s4, 4  ;;  %s8725_s8 = int_to_ptr.vmem [resolvable:$false] %s8724_s8 }
0x33c6   : > { %s8726_s29 = scalar_lea.vmem %s8725_s8, 64  ;;  %p8727_p5 = scmp.lt.s32.totalorder %s6581_s15, %s8725_s8 }
0x33c7   : > { %p8728_p7 = scmp.lt.s32.totalorder %s8726_s29, %s8720_s3 }
0x33c9   : > { %p8729_p10 = por %p8728_p7, %p8727_p5 }
0x33cb   : > { %p8730_p8 = pnand %p8729_p10, %p8723_p4 }
0x344a   : > { %v6288_v3 = vpop.xlane.xlu0 %6287 }
0x344b   : > { %v6292_v6 = vmul.f32 0.03125, %v6288_v3  ;;  %v7049_v3 = vld [vmem:[%s9026_s25] ss:$0 sm:$0xff] }
0x344d   : > { %v6294_v39 = vadd.f32 1e-05, %v6292_v6 }
0x344e   : > { %v6291_v5 = vpop.xlane.xlu0 %6290 }
0x344f   : > { %8296 = vrsqrt.f32 %v6294_v39  ;;  %v6293_v13 = vmul.f32 0.03125, %v6291_v5 }
0x3451   : > { %v6295_v9 = vadd.f32 1e-05, %v6293_v13 }
0x3453   : > { %8298 = vrsqrt.f32 %v6295_v9 }
0x345c   : > { %v8297_v12 = vpop.eup %8296 }
0x345d   : > { %v6298_v16 = vmul.f32 %v8297_v12, %v6282_v50 }
0x345f   : > { %v6306_v23 = vmul.f32 %v7024_v21, %v6298_v16 }
0x3460   : > { %v8299_v22 = vpop.eup %8298 }
0x3461   : > { %v6299_v25 = vmul.f32 %v8299_v22, %v6283_v47  ;;  %v6314_v24 = vadd.f32 %v7025_v15, %v6306_v23  ;;  %v7050_v22 = vld [vmem:[#allocation2] ss:$0 sm:$0xff]  ;;  %v6551_v23 = vlaneseq }
0x3463   : > { %v6307_v18 = vmul.f32 %v7024_v21, %v6299_v25  ;;  %v6552_v25 = vand.u32 127, %v6551_v23 }
0x3465   : > { %v6315_v52 = vadd.f32 %v7025_v15, %v6307_v18  ;;  %v6554_v15 = vshrl.u32 %v6551_v23, 7 }
0x3467   : > { %v6321_v2 = vpack.c.bf16 %v6315_v52, %v6314_v24 }
0x3469   : > { %7789 = vmatmul.mubr.msk.bf16.vlgmr.msra.gmra.mxu1 %vm1212_vm1, %v6321_v2 }
0x3529   : > { %v6379_v46 = vpop.f32.mrf.mxu1 }
0x352a   : > { %v6380_v28 = vadd.f32 %v7026_v41, %v6379_v46 }
0x352b   : > { %v7790_v26 = vpop.f32.mrf.mxu1 }
0x352c   : > { %v6386_v61 = vmax.f32 %v6380_v28, 0.0 }
0x352d   : > { %v6382_v30 = vpop.f32.mrf.mxu1 }
0x352e   : > { %v6383_v51 = vadd.f32 %v7026_v41, %v6382_v30 }
0x352f   : > { %v7791_v56 = vpop.f32.mrf.mxu1 }
0x3530   : > { %v6387_v31 = vmax.f32 %v6383_v51, 0.0 }
0x3532   : > { %v6397_v19 = vpack.c.bf16 %v6387_v31, %v6386_v61 }
0x3534   : > { %7801 = vmatmul.mubr.msk.bf16.vlgmr.msra.gmra.mxu0 %vm3751_vm6, %v6397_v19 }
0x35f4   : > { %v6467_v54 = vpop.f32.mrf.mxu0 }
0x35f5   : > { %v6468_v62 = vadd.f32 %v7039_v33, %v6467_v54 }
0x35f6   : > { %v7802_v38 = vpop.f32.mrf.mxu0 }
0x35f7   : > { %v6474_v34 = vadd.f32 %v6468_v62, %v6314_v24  ;;  %v6555_v24 = vsub.s32 %v6552_v25, %v6554_v15 }
0x35f8   : > { %v6470_v1 = vpop.f32.mrf.mxu0 }
0x35f9   : > { %v6471_v4 = vadd.f32 %v7039_v33, %v6470_v1  ;;  %v6480_v27 = vsel %vm1212_vm1, %v6474_v34, 0.0 }
0x35fa   : > { %6481 = vadd.xlane.f32.xlu0 %v6480_v27  ;;  %v7803_v60 = vpop.f32.mrf.mxu0 }
0x35fb   : > { %v6475_v63 = vadd.f32 %v6471_v4, %v6315_v52 }
0x35fd   : > { %v6483_v29 = vsel %vm1212_vm1, %v6475_v63, 0.0 }
0x35fe   : > { %6484 = vadd.xlane.f32.xlu1 %v6483_v29 }
0x3683   : > { %v6482_v10 = vpop.xlane.xlu0 %6481 }
0x3684   : > { %v6486_v11 = vmul.f32 0.03125, %v6482_v10 }
0x3686   : > { %v6488_v35 = vsub.f32 %v6474_v34, %v6486_v11 }
0x3687   : > { %v6485_v36 = vpop.xlane.xlu1 %6484 }
0x3688   : > { %v6487_v32 = vmul.f32 0.03125, %v6485_v36  ;;  %v6490_v14 = vmul.f32 %v6488_v35, %v6488_v35 }
0x368a   : > { %v6489_v42 = vsub.f32 %v6475_v63, %v6487_v32  ;;  %v6492_v43 = vsel %vm1212_vm1, %v6490_v14, 0.0 }
0x368b   : > { %6493 = vadd.xlane.f32.xlu0 %v6492_v43 }
0x368c   : > { %v6491_v37 = vmul.f32 %v6489_v42, %v6489_v42 }
0x368e   : > { %v6495_v40 = vsel %vm1212_vm1, %v6491_v37, 0.0 }
0x368f   : > { %6496 = vadd.xlane.f32.xlu1 %v6495_v40 }
0x3714   : > { %v6494_v48 = vpop.xlane.xlu0 %6493 }
0x3715   : > { %v6498_v50 = vmul.f32 0.03125, %v6494_v48 }
0x3717   : > { %v6500_v53 = vadd.f32 1e-05, %v6498_v50 }
0x3718   : > { %v6497_v49 = vpop.xlane.xlu1 %6496 }
0x3719   : > { %8300 = vrsqrt.f32 %v6500_v53  ;;  %v6499_v55 = vmul.f32 0.03125, %v6497_v49 }
0x371b   : > { %v6501_v47 = vadd.f32 1e-05, %v6499_v55 }
0x371d   : > { %8302 = vrsqrt.f32 %v6501_v47 }
0x3726   : > { %v8301_v0 = vpop.eup %8300 }
0x3727   : > { %v6504_v58 = vmul.f32 %v8301_v0, %v6488_v35 }
0x3729   : > { %v6512_v7 = vmul.f32 %v7047_v57, %v6504_v58 }
0x372a   : > { %v8303_v17 = vpop.eup %8302 }
0x372b   : > { %v6520_v6 = vadd.f32 %v7048_v59, %v6512_v7  ;;  %v6505_v39 = vmul.f32 %v8303_v17, %v6489_v42 }
0x372d   : > { %v6529_v5 = vmul.f32 %v7049_v3, %v6520_v6  ;;  %v6513_v13 = vmul.f32 %v7047_v57, %v6505_v39 }
0x372f   : > { %v6531_v9 = vsel %vm1212_vm1, %v6529_v5, 0.0  ;;  %v6521_v12 = vadd.f32 %v7048_v59, %v6513_v13 }
0x3730   : > { %6532 = vadd.xlane.f32.xlu0 %v6531_v9 }
0x3731   : > { %v6530_v16 = vmul.f32 %v7049_v3, %v6521_v12 }
0x3733   : > { %v6534_v21 = vsel %vm1212_vm1, %v6530_v16, 0.0 }
0x3734   : > { %6535 = vadd.xlane.f32.xlu1 %v6534_v21 }
0x3746   : > { %6544 = vperm.xlu0 %8107, %v7050_v22  }
0x37b9   : > { %v6533_v18 = vpop.xlane.xlu0 %6532 }
0x37bd   : > { %v6536_v52 = vpop.xlane.xlu1 %6535 }
0x37c1   : > { %v6545_v2 = vpop.permute.xlu0 %6544 }
0x37c2   : > { %v6547_v8 = vadd.f32 %v6545_v2, %v6533_v18  ;;  %v6548_v44 = vadd.f32 %v6545_v2, %v6536_v52 }
0x37c4   : > { %v6556_v45 = vrot.slane %v6547_v8, %v6555_v24  ;;  %v6560_v41 = vrot.slane %v6548_v44, %v6555_v24 }
0x37c6   : > { %v6562_v46 = vsel %vm6561_vm7, %v6560_v41, %v6556_v45 }
0x37c7   : > { %6565 = vst.msk [vmem:[%s1159_s17] sm:$0x3] %vm6564_vm8, %v6562_v46 }
0x37c8   : > { %8733 = shalt.err (!%p8730_p8)
}
0x37c9   : > { %s8734_s5 = scalar_lea.hbm %s10142_s18, 32  ;;  %s8738_s6 = scalar_lea.hbm %s9034_s13, 64 }
0x37ca   : > { %p8735_p11 = scmp.ne.s32.totalorder %s10142_s18, %s8734_s5  ;;  %p8739_p6 = scmp.lt.s32.totalorder %s10142_s18, %s9034_s13 }
0x37cb   : > { %p8740_p9 = scmp.lt.s32.totalorder %s8738_s6, %s8734_s5 }
0x37cc   : > { %p8736_p0 = pnand %p8735_p11, %p10294_p3 }
0x37cd   : > { %p8741_p1 = por %p8740_p9, %p8739_p6 }
0x37ce   : > { %p8737_p13 = pneg %p8736_p0 }
0x37d0   : > { %p8742_p12 = pnand %p8741_p1, %p8737_p13 }
0x37d2   : > { %8745 = shalt.err (!%p8742_p12)
}
0x37d3   : > { %7868 = dma.vmem_to_hbm [thread:$0]  (%p10294_p3), %s6581_s15, 32, %s10142_s18, %s6567_s1  }
0x37d4 PF: > { %s10295_s3 = sld [smem:[#allocation59_spill]]  ;;  %p7955_p2 = scmp.ge.s32.totalorder %s8816_s0, 2 }
0x37d5   : > { %s10296_s4 = sld [smem:[#allocation63_spill]] }
0x37da   : > { %s6592_s8 = sand.u32 1, %s10295_s3  }
0x37db   : > { %p10297_p4 = scmp.ne.s32.totalorder %s10296_s4, 0  ;;  %s6593_s7 = scalar_lea.sflag [#allocation5], %s6592_s8 }
0x37dd   : > { %p7920_p5 = pnand %p7955_p2, %p10297_p4 }
0x37df   : > { %p7921_p7 = pneg %p7920_p5 }
0x37e1   : > { %8799 = dma.done.wait (%p7921_p7), %s6593_s7, 32  }
0x37e2   : > { %8801 = vsyncadd (%p7921_p7), %s6593_s7, 4294967264  ;;  %s10298_s0 = sld [smem:[#allocation61_spill]]  ;;  %s10301_s15 = smov %s8808_s16 }
0x37e3   : > { %s10299_s17 = sld [smem:[#allocation60_spill]] }
0x37e4   : > { %s10300_s18 = sld [smem:[#allocation62_spill]] }
0x37e8   : > { %p82_p10 = scmp.ge.s32.totalorder %s10298_s0, 4  }
0x37e9   : > { %s10302_s16 = smov %s10299_s17 }
0x37ea   :  { %84 = sbr.rel (!%p82_p10) target bundleno = 69 (0x45), region = 296 }
0x37ef   :  { %6598 = vsyncpa [#allocation4], 1 }
0x37f0   :  { %6600 = vsyncpa [#allocation4 + $0x1], 1 }
0x37f1   :  { %6601 = vsyncpa [#allocation7], 1 }
0x37f2   :  { %6602 = vsyncpa [#allocation10], 1 }
0x37f3   :  { %6603 = vsyncpa [#allocation13], 1 }
0x37f4   :  { %6604 = vsyncpa [#allocation16], 1 }
0x37f5   :  { %6605 = vsyncpa [#allocation19], 1 }
0x37f6   :  { %6606 = vsyncpa [#allocation22], 1 }
0x37f7   :  { %6607 = vsyncpa [#allocation25], 1 }
0x37f8   :  { %6608 = vsyncpa [#allocation28], 1 }
0x37f9   :  { %6609 = vsyncpa [#allocation5], 1 }
0x37fa   :  { %6611 = vsyncpa [#allocation5 + $0x1], 1 }

</bundles_post_ra>
